<compile_context>
chip_gen: v5e
topology: v5e:2x2
jax: 0.10.0
libtpu: 0.0.40
codegen_flags: <defaults>
</compile_context>

<pallas_src>
import jax
import jax.numpy as jnp
from jax.experimental import pallas as pl
from jax.experimental.pallas import tpu as pltpu


def attention_kernel(q_ref, xs_ref, pm_ref, mem_ref, bias_ref,
                     wq_ref, wfold_ref, v_ref,
                     ctx_ref, wts_ref):
    f32 = jnp.float32
    Bb, Tp, I = xs_ref.shape          # batch block, padded T, 2*K taps
    A = wfold_ref.shape[1]

    # ---- query path: (Bb, R) @ (R, A) -> (Bb, A); bf16 in, f32 accumulate (MXU)
    # NOTE: in a fused decoder-step kernel this tiny matmul should be hoisted /
    # batched across decoder steps and passed in (it is ~1% MXU-utilized here).
    pq = jnp.dot(q_ref[...], wq_ref[...], preferred_element_type=f32)

    # ---- location path with the dense layer folded into the taps:
    #      pa[b,t,:] = sum_i xs[b,t,i] * wfold[i,:]
    # Pure VPU broadcast-multiply-add; the lane axis stays A the whole way.
    xs = xs_ref[...]                                   # (Bb, Tp, 2K) f32
    wfold = wfold_ref[...]                             # (2K, A)      f32
    pa = jnp.zeros((Bb, Tp, A), f32)
    for i in range(I):                                 # I = 2K, small & static
        pa = pa + xs[:, :, i:i + 1] * wfold[i][None, None, :]

    # ---- energies = v . tanh(pq + pa + pm)  (f32 VPU + EUP tanh, XLU reduce)
    act = jnp.tanh(pq[:, None, :] + pa + pm_ref[...].astype(f32))   # (Bb, Tp, A)
    energies = jnp.sum(act * v_ref[...], axis=-1)                   # (Bb, Tp)

    # ---- additive mask bias (0 / -1e30); T-padding positions are -1e30 too.
    energies = energies + bias_ref[...]

    # ---- softmax over T (finite bias => no NaN even for fully-masked rows)
    m = jnp.max(energies, axis=-1, keepdims=True)
    e = jnp.exp(energies - m)
    s = jnp.sum(e, axis=-1, keepdims=True)
    w = e / s
    wts_ref[...] = w                                   # lane-dense (Bb, Tp) store

    # ---- context = sum_t w[b,t] * memory[b,t,:]  (f32 accumulate)
    ctx_ref[...] = jnp.sum(w[:, :, None] * mem_ref[...].astype(f32), axis=1)


def _round_up(x, m):
    return (x + m - 1) // m * m


def tacotron2_attention(query, memory, processed_memory, attention_weights_cat,
                        mask, wq_t, conv_taps, wl_t, v_vec):
    B, T, E = memory.shape
    R = query.shape[1]
    K, C, F = conv_taps.shape                       # (K, 2, F)
    A = wl_t.shape[1]
    pad = (K - 1) // 2

    # -- fold location_dense into the conv taps: (K,2,F) @ (F,A) -> (2K, A)
    wfold = jnp.einsum('kcf,fa->kca', conv_taps, wl_t).reshape(K * C, A)
    wfold = wfold.astype(jnp.float32)

    # -- pre-shift the conv input so the kernel never slices along lanes:
    #    xs[b, t, k*C + c] = attention_weights_cat[b, c, t + k - pad]
    xpad = jnp.pad(attention_weights_cat, ((0, 0), (0, 0), (pad, pad)))
    cols = [xpad[:, c, k:k + T] for k in range(K) for c in range(C)]
    xs = jnp.stack(cols, axis=-1).astype(jnp.float32)          # (B, T, 2K)

    # -- lane/sublane-dense padded sizes (at real Tacotron T (~hundreds) the
    #    input-side padding overhead is <~20%; outputs become full-width stores)
    T_pad = _round_up(T, 128)
    E_pad = _round_up(E, 128)
    B_blk = B if B <= 8 else 8
    B_pad = _round_up(B, B_blk)

    # -- mask -> additive f32 bias (0 / -1e30); padded T and B rows fully biased
    bias = jnp.full((B_pad, T_pad), -1e30, jnp.float32)
    bias = bias.at[:B, :T].set(jnp.where(mask != 0, -1e30, 0.0).astype(jnp.float32))

    def pad_to(x, shape):
        return jnp.pad(x, [(0, s - d) for s, d in zip(shape, x.shape)])

    # -- bf16 for the dominant HBM->VMEM movers; accumulation stays f32 in-kernel
    q_p   = pad_to(query.astype(jnp.bfloat16), (B_pad, R))
    xs_p  = pad_to(xs, (B_pad, T_pad, K * C))
    pm_p  = pad_to(processed_memory.astype(jnp.bfloat16), (B_pad, T_pad, A))
    mem_p = pad_to(memory.astype(jnp.bfloat16), (B_pad, T_pad, E_pad))
    wq_b  = wq_t.astype(jnp.bfloat16)
    v_2d  = v_vec.reshape(1, A).astype(jnp.float32)

    # NOTE: for very long T (>> a few thousand) a T-grid with an online-softmax
    # accumulator would bound VMEM further; at Tacotron2 scales a batch grid
    # with whole-T blocks fits comfortably (bf16 pm+mem per 8-row block ~10 MB).
    grid = (B_pad // B_blk,)
    ctx_p, wts_p = pl.pallas_call(
        attention_kernel,
        out_shape=(jax.ShapeDtypeStruct((B_pad, E_pad), jnp.float32),
                   jax.ShapeDtypeStruct((B_pad, T_pad), jnp.float32)),
        grid_spec=pltpu.PrefetchScalarGridSpec(
            num_scalar_prefetch=0,
            grid=grid,
            in_specs=[
                pl.BlockSpec((B_blk, R),            lambda i: (i, 0)),
                pl.BlockSpec((B_blk, T_pad, K * C), lambda i: (i, 0, 0)),
                pl.BlockSpec((B_blk, T_pad, A),     lambda i: (i, 0, 0)),
                pl.BlockSpec((B_blk, T_pad, E_pad), lambda i: (i, 0, 0)),
                pl.BlockSpec((B_blk, T_pad),        lambda i: (i, 0)),
                pl.BlockSpec((R, A),                lambda i: (0, 0)),
                pl.BlockSpec((K * C, A),            lambda i: (0, 0)),
                pl.BlockSpec((1, A),                lambda i: (0, 0)),
            ],
            out_specs=(pl.BlockSpec((B_blk, E_pad), lambda i: (i, 0)),
                       pl.BlockSpec((B_blk, T_pad), lambda i: (i, 0))),
        ),
        compiler_params=pltpu.CompilerParams(
            dimension_semantics=("parallel",)),   # batch blocks shard across TCs on v7x
    )(q_p, xs_p, pm_p, mem_p, bias, wq_b, wfold, v_2d)

    return ctx_p[:B, :E], wts_p[:B, :T]


def reference_attention(query, memory, processed_memory, attention_weights_cat,
                        mask, wq_t, conv_taps, wl_t, v_vec):
    """Pure-JAX reference (same math as the PyTorch module); mirrors the
    kernel's bf16 input rounding so the comparison is tight."""
    f32 = jnp.float32
    bf = lambda x: x.astype(jnp.bfloat16).astype(f32)
    B, T, E = memory.shape
    K = conv_taps.shape[0]
    pad = (K - 1) // 2
    pq = bf(query) @ bf(wq_t)                                        # (B, A)
    xpad = jnp.pad(attention_weights_cat, ((0, 0), (0, 0), (pad, pad)))
    conv = jnp.zeros((B, T, conv_taps.shape[2]), f32)
    for k in range(K):
        conv = conv + jnp.einsum('bct,cf->btf', xpad[:, :, k:k + T], conv_taps[k])
    pa = jnp.einsum('btf,fa->bta', conv, wl_t)
    energies = jnp.einsum('bta,a->bt',
                          jnp.tanh(pq[:, None, :] + pa + bf(processed_memory)), v_vec)
    # -1e30 is semantically equivalent to the module's -inf masked_fill (and NaN-safe)
    energies = jnp.where(mask != 0, -1e30, energies)
    w = jax.nn.softmax(energies, axis=1)
    ctx = jnp.einsum('bt,bte->be', w, bf(memory))
    return ctx, w


if __name__ == "__main__":
    # Config (small, consistent with AttentionConfig)
    B = 2          # batch
    R = 32         # attention_rnn_dim
    A = 128        # attention_dim
    E = 64         # encoder_embedding_dim
    F = 8          # attention_location_n_filters
    K = 5          # attention_location_kernel_size (odd, 'same' padding)
    T = 16         # max_time

    key = jax.random.PRNGKey(0)
    ks = jax.random.split(key, 8)

    # Deterministic synthetic parameters (PyTorch (out,in[,k]) -> transposed here)
    wq_t      = 0.1 * jax.random.normal(ks[0], (R, A), jnp.float32)      # query_layer.weight.T
    conv_w    = 0.1 * jax.random.normal(ks[1], (F, 2, K), jnp.float32)   # location_conv (F, C=2, K)
    conv_taps = jnp.transpose(conv_w, (2, 1, 0))                          # (K, 2, F)
    wl_t      = 0.1 * jax.random.normal(ks[2], (F, A), jnp.float32)      # location_dense.weight.T
    v_vec     = 0.1 * jax.random.normal(ks[3], (A,), jnp.float32)        # v.weight (1, A) -> (A,)
    # memory_layer weight (used upstream to build processed_memory)
    wm_t      = 0.1 * jax.random.normal(ks[4], (E, A), jnp.float32)

    # Deterministic inputs
    query  = jax.random.normal(ks[5], (B, R), jnp.float32)
    memory = jax.random.normal(ks[6], (B, T, E), jnp.float32)
    processed_memory = jnp.einsum('bte,ea->bta', memory, wm_t)
    aw_prev = jax.nn.softmax(jax.random.normal(ks[7], (B, T), jnp.float32), axis=-1)
    aw_cum  = jnp.cumsum(aw_prev, axis=-1) * 0.1
    attention_weights_cat = jnp.stack([aw_prev, aw_cum], axis=1)          # (B, 2, T)

    lengths = jnp.array([T, T - 5], jnp.int32)
    mask = (jnp.arange(T)[None, :] >= lengths[:, None]).astype(jnp.int32)  # 1 == padded

    ctx, wts = tacotron2_attention(query, memory, processed_memory,
                                   attention_weights_cat, mask,
                                   wq_t, conv_taps, wl_t, v_vec)
    jax.block_until_ready((ctx, wts))

    ctx_ref, wts_ref = reference_attention(query, memory, processed_memory,
                                           attention_weights_cat, mask,
                                           wq_t, conv_taps, wl_t, v_vec)

    assert ctx.shape == (B, E) and wts.shape == (B, T)
    assert jnp.allclose(jnp.sum(wts, axis=1), 1.0, atol=1e-4)
    assert jnp.allclose(wts, wts_ref, rtol=5e-4, atol=5e-4)
    assert jnp.allclose(ctx, ctx_ref, rtol=5e-4, atol=5e-4)
    print("KERNEL_OK")
</pallas_src>

<mosaic_0001>
module attributes {stable_mosaic.version = 11 : i64} {
  func.func @attention_kernel(%arg0: i32, %arg1: memref<2x32xbf16, #tpu.memory_space<vmem>>, %arg2: memref<2x128x10xf32, #tpu.memory_space<vmem>>, %arg3: memref<2x128x128xbf16, #tpu.memory_space<vmem>>, %arg4: memref<2x128x128xbf16, #tpu.memory_space<vmem>>, %arg5: memref<2x128xf32, #tpu.memory_space<vmem>>, %arg6: memref<32x128xbf16, #tpu.memory_space<vmem>>, %arg7: memref<10x128xf32, #tpu.memory_space<vmem>>, %arg8: memref<1x128xf32, #tpu.memory_space<vmem>>, %arg9: memref<2x128xf32, #tpu.memory_space<vmem>>, %arg10: memref<2x128xf32, #tpu.memory_space<vmem>>) attributes {dimension_semantics = [#tpu.dimension_semantics<parallel>], iteration_bounds = array<i64: 1>, scalar_prefetch = 0 : i64, scratch_operands = 0 : i64, tpu.core_type = #tpu.core_type<tc>, window_params = [{transform_indices = @transform_0, window_bounds = array<i64: 2, 32>}, {transform_indices = @transform_1, window_bounds = array<i64: 2, 128, 10>}, {transform_indices = @transform_2, window_bounds = array<i64: 2, 128, 128>}, {transform_indices = @transform_3, window_bounds = array<i64: 2, 128, 128>}, {transform_indices = @transform_4, window_bounds = array<i64: 2, 128>}, {pipeline_mode = #tpu.pipeline_mode<synchronous>, transform_indices = @transform_5, window_bounds = array<i64: 32, 128>}, {pipeline_mode = #tpu.pipeline_mode<synchronous>, transform_indices = @transform_6, window_bounds = array<i64: 10, 128>}, {pipeline_mode = #tpu.pipeline_mode<synchronous>, transform_indices = @transform_7, window_bounds = array<i64: 1, 128>}, {transform_indices = @transform_8, window_bounds = array<i64: 2, 128>}, {transform_indices = @transform_9, window_bounds = array<i64: 2, 128>}]} {
    %c0 = arith.constant 0 : index
    %c0_0 = arith.constant 0 : index
    %0 = vector.load %arg1[%c0, %c0_0] : memref<2x32xbf16, #tpu.memory_space<vmem>>, vector<2x32xbf16>
    %c0_1 = arith.constant 0 : index
    %c0_2 = arith.constant 0 : index
    %1 = vector.load %arg6[%c0_1, %c0_2] : memref<32x128xbf16, #tpu.memory_space<vmem>>, vector<32x128xbf16>
    %cst = arith.constant dense<0.000000e+00> : vector<2x128xf32>
    %2 = tpu.matmul %0, %1, %cst {dimension_numbers = #tpu.dot_dimension_numbers<[1], [0], [0], [1], [0, 0, 1, 1], [], []>} : vector<2x32xbf16>, vector<32x128xbf16>, vector<2x128xf32> -> vector<2x128xf32>
    %c0_3 = arith.constant 0 : index
    %c0_4 = arith.constant 0 : index
    %c0_5 = arith.constant 0 : index
    %3 = vector.load %arg2[%c0_3, %c0_4, %c0_5] : memref<2x128x10xf32, #tpu.memory_space<vmem>>, vector<2x128x10xf32>
    %c0_6 = arith.constant 0 : index
    %c0_7 = arith.constant 0 : index
    %4 = vector.load %arg7[%c0_6, %c0_7] : memref<10x128xf32, #tpu.memory_space<vmem>>, vector<10x128xf32>
    %cst_8 = arith.constant 0.000000e+00 : f32
    %5 = vector.broadcast %cst_8 : f32 to vector<2x128x128xf32>
    %6 = vector.extract_strided_slice %3 {offsets = [0, 0, 0], sizes = [2, 128, 1], strides = [1, 1, 1]} : vector<2x128x10xf32> to vector<2x128x1xf32>
    %7 = vector.extract_strided_slice %4 {offsets = [0, 0], sizes = [1, 128], strides = [1, 1]} : vector<10x128xf32> to vector<1x128xf32>
    %8 = vector.shape_cast %7 : vector<1x128xf32> to vector<128xf32>
    %9 = vector.shape_cast %8 : vector<128xf32> to vector<1x1x128xf32>
    %10 = vector.broadcast %6 : vector<2x128x1xf32> to vector<2x128x128xf32>
    %11 = vector.broadcast %9 : vector<1x1x128xf32> to vector<2x128x128xf32>
    %12 = arith.mulf %10, %11 : vector<2x128x128xf32>
    %13 = arith.addf %5, %12 : vector<2x128x128xf32>
    %14 = vector.extract_strided_slice %3 {offsets = [0, 0, 1], sizes = [2, 128, 1], strides = [1, 1, 1]} : vector<2x128x10xf32> to vector<2x128x1xf32>
    %15 = vector.extract_strided_slice %4 {offsets = [1, 0], sizes = [1, 128], strides = [1, 1]} : vector<10x128xf32> to vector<1x128xf32>
    %16 = vector.shape_cast %15 : vector<1x128xf32> to vector<128xf32>
    %17 = vector.shape_cast %16 : vector<128xf32> to vector<1x1x128xf32>
    %18 = vector.broadcast %14 : vector<2x128x1xf32> to vector<2x128x128xf32>
    %19 = vector.broadcast %17 : vector<1x1x128xf32> to vector<2x128x128xf32>
    %20 = arith.mulf %18, %19 : vector<2x128x128xf32>
    %21 = arith.addf %13, %20 : vector<2x128x128xf32>
    %22 = vector.extract_strided_slice %3 {offsets = [0, 0, 2], sizes = [2, 128, 1], strides = [1, 1, 1]} : vector<2x128x10xf32> to vector<2x128x1xf32>
    %23 = vector.extract_strided_slice %4 {offsets = [2, 0], sizes = [1, 128], strides = [1, 1]} : vector<10x128xf32> to vector<1x128xf32>
    %24 = vector.shape_cast %23 : vector<1x128xf32> to vector<128xf32>
    %25 = vector.shape_cast %24 : vector<128xf32> to vector<1x1x128xf32>
    %26 = vector.broadcast %22 : vector<2x128x1xf32> to vector<2x128x128xf32>
    %27 = vector.broadcast %25 : vector<1x1x128xf32> to vector<2x128x128xf32>
    %28 = arith.mulf %26, %27 : vector<2x128x128xf32>
    %29 = arith.addf %21, %28 : vector<2x128x128xf32>
    %30 = vector.extract_strided_slice %3 {offsets = [0, 0, 3], sizes = [2, 128, 1], strides = [1, 1, 1]} : vector<2x128x10xf32> to vector<2x128x1xf32>
    %31 = vector.extract_strided_slice %4 {offsets = [3, 0], sizes = [1, 128], strides = [1, 1]} : vector<10x128xf32> to vector<1x128xf32>
    %32 = vector.shape_cast %31 : vector<1x128xf32> to vector<128xf32>
    %33 = vector.shape_cast %32 : vector<128xf32> to vector<1x1x128xf32>
    %34 = vector.broadcast %30 : vector<2x128x1xf32> to vector<2x128x128xf32>
    %35 = vector.broadcast %33 : vector<1x1x128xf32> to vector<2x128x128xf32>
    %36 = arith.mulf %34, %35 : vector<2x128x128xf32>
    %37 = arith.addf %29, %36 : vector<2x128x128xf32>
    %38 = vector.extract_strided_slice %3 {offsets = [0, 0, 4], sizes = [2, 128, 1], strides = [1, 1, 1]} : vector<2x128x10xf32> to vector<2x128x1xf32>
    %39 = vector.extract_strided_slice %4 {offsets = [4, 0], sizes = [1, 128], strides = [1, 1]} : vector<10x128xf32> to vector<1x128xf32>
    %40 = vector.shape_cast %39 : vector<1x128xf32> to vector<128xf32>
    %41 = vector.shape_cast %40 : vector<128xf32> to vector<1x1x128xf32>
    %42 = vector.broadcast %38 : vector<2x128x1xf32> to vector<2x128x128xf32>
    %43 = vector.broadcast %41 : vector<1x1x128xf32> to vector<2x128x128xf32>
    %44 = arith.mulf %42, %43 : vector<2x128x128xf32>
    %45 = arith.addf %37, %44 : vector<2x128x128xf32>
    %46 = vector.extract_strided_slice %3 {offsets = [0, 0, 5], sizes = [2, 128, 1], strides = [1, 1, 1]} : vector<2x128x10xf32> to vector<2x128x1xf32>
    %47 = vector.extract_strided_slice %4 {offsets = [5, 0], sizes = [1, 128], strides = [1, 1]} : vector<10x128xf32> to vector<1x128xf32>
    %48 = vector.shape_cast %47 : vector<1x128xf32> to vector<128xf32>
    %49 = vector.shape_cast %48 : vector<128xf32> to vector<1x1x128xf32>
    %50 = vector.broadcast %46 : vector<2x128x1xf32> to vector<2x128x128xf32>
    %51 = vector.broadcast %49 : vector<1x1x128xf32> to vector<2x128x128xf32>
    %52 = arith.mulf %50, %51 : vector<2x128x128xf32>
    %53 = arith.addf %45, %52 : vector<2x128x128xf32>
    %54 = vector.extract_strided_slice %3 {offsets = [0, 0, 6], sizes = [2, 128, 1], strides = [1, 1, 1]} : vector<2x128x10xf32> to vector<2x128x1xf32>
    %55 = vector.extract_strided_slice %4 {offsets = [6, 0], sizes = [1, 128], strides = [1, 1]} : vector<10x128xf32> to vector<1x128xf32>
    %56 = vector.shape_cast %55 : vector<1x128xf32> to vector<128xf32>
    %57 = vector.shape_cast %56 : vector<128xf32> to vector<1x1x128xf32>
    %58 = vector.broadcast %54 : vector<2x128x1xf32> to vector<2x128x128xf32>
    %59 = vector.broadcast %57 : vector<1x1x128xf32> to vector<2x128x128xf32>
    %60 = arith.mulf %58, %59 : vector<2x128x128xf32>
    %61 = arith.addf %53, %60 : vector<2x128x128xf32>
    %62 = vector.extract_strided_slice %3 {offsets = [0, 0, 7], sizes = [2, 128, 1], strides = [1, 1, 1]} : vector<2x128x10xf32> to vector<2x128x1xf32>
    %63 = vector.extract_strided_slice %4 {offsets = [7, 0], sizes = [1, 128], strides = [1, 1]} : vector<10x128xf32> to vector<1x128xf32>
    %64 = vector.shape_cast %63 : vector<1x128xf32> to vector<128xf32>
    %65 = vector.shape_cast %64 : vector<128xf32> to vector<1x1x128xf32>
    %66 = vector.broadcast %62 : vector<2x128x1xf32> to vector<2x128x128xf32>
    %67 = vector.broadcast %65 : vector<1x1x128xf32> to vector<2x128x128xf32>
    %68 = arith.mulf %66, %67 : vector<2x128x128xf32>
    %69 = arith.addf %61, %68 : vector<2x128x128xf32>
    %70 = vector.extract_strided_slice %3 {offsets = [0, 0, 8], sizes = [2, 128, 1], strides = [1, 1, 1]} : vector<2x128x10xf32> to vector<2x128x1xf32>
    %71 = vector.extract_strided_slice %4 {offsets = [8, 0], sizes = [1, 128], strides = [1, 1]} : vector<10x128xf32> to vector<1x128xf32>
    %72 = vector.shape_cast %71 : vector<1x128xf32> to vector<128xf32>
    %73 = vector.shape_cast %72 : vector<128xf32> to vector<1x1x128xf32>
    %74 = vector.broadcast %70 : vector<2x128x1xf32> to vector<2x128x128xf32>
    %75 = vector.broadcast %73 : vector<1x1x128xf32> to vector<2x128x128xf32>
    %76 = arith.mulf %74, %75 : vector<2x128x128xf32>
    %77 = arith.addf %69, %76 : vector<2x128x128xf32>
    %78 = vector.extract_strided_slice %3 {offsets = [0, 0, 9], sizes = [2, 128, 1], strides = [1, 1, 1]} : vector<2x128x10xf32> to vector<2x128x1xf32>
    %79 = vector.extract_strided_slice %4 {offsets = [9, 0], sizes = [1, 128], strides = [1, 1]} : vector<10x128xf32> to vector<1x128xf32>
    %80 = vector.shape_cast %79 : vector<1x128xf32> to vector<128xf32>
    %81 = vector.shape_cast %80 : vector<128xf32> to vector<1x1x128xf32>
    %82 = vector.broadcast %78 : vector<2x128x1xf32> to vector<2x128x128xf32>
    %83 = vector.broadcast %81 : vector<1x1x128xf32> to vector<2x128x128xf32>
    %84 = arith.mulf %82, %83 : vector<2x128x128xf32>
    %85 = arith.addf %77, %84 : vector<2x128x128xf32>
    %86 = vector.shape_cast %2 : vector<2x128xf32> to vector<2x1x128xf32>
    %87 = vector.broadcast %86 : vector<2x1x128xf32> to vector<2x128x128xf32>
    %88 = arith.addf %87, %85 : vector<2x128x128xf32>
    %c0_9 = arith.constant 0 : index
    %c0_10 = arith.constant 0 : index
    %c0_11 = arith.constant 0 : index
    %89 = vector.load %arg3[%c0_9, %c0_10, %c0_11] : memref<2x128x128xbf16, #tpu.memory_space<vmem>>, vector<2x128x128xbf16>
    %90 = arith.extf %89 : vector<2x128x128xbf16> to vector<2x128x128xf32>
    %91 = arith.addf %88, %90 : vector<2x128x128xf32>
    %92 = math.tanh %91 : vector<2x128x128xf32>
    %c0_12 = arith.constant 0 : index
    %c0_13 = arith.constant 0 : index
    %93 = vector.load %arg8[%c0_12, %c0_13] : memref<1x128xf32, #tpu.memory_space<vmem>>, vector<1x128xf32>
    %94 = vector.shape_cast %93 : vector<1x128xf32> to vector<1x1x128xf32>
    %95 = vector.broadcast %94 : vector<1x1x128xf32> to vector<2x128x128xf32>
    %96 = arith.mulf %92, %95 : vector<2x128x128xf32>
    %cst_14 = arith.constant dense<0.000000e+00> : vector<2x128xf32>
    %97 = vector.multi_reduction <add>, %96, %cst_14 [2] : vector<2x128x128xf32> to vector<2x128xf32>
    %c0_15 = arith.constant 0 : index
    %c0_16 = arith.constant 0 : index
    %98 = vector.load %arg5[%c0_15, %c0_16] : memref<2x128xf32, #tpu.memory_space<vmem>>, vector<2x128xf32>
    %99 = arith.addf %97, %98 : vector<2x128xf32>
    %cst_17 = arith.constant dense<0xFF800000> : vector<2xf32>
    %100 = vector.multi_reduction <maximumf>, %99, %cst_17 [1] : vector<2x128xf32> to vector<2xf32>
    %101 = vector.shape_cast %100 : vector<2xf32> to vector<2x1xf32>
    %102 = vector.broadcast %101 : vector<2x1xf32> to vector<2x128xf32>
    %103 = arith.subf %99, %102 : vector<2x128xf32>
    %104 = math.exp %103 : vector<2x128xf32>
    %cst_18 = arith.constant dense<0.000000e+00> : vector<2xf32>
    %105 = vector.multi_reduction <add>, %104, %cst_18 [1] : vector<2x128xf32> to vector<2xf32>
    %106 = vector.shape_cast %105 : vector<2xf32> to vector<2x1xf32>
    %107 = vector.broadcast %106 : vector<2x1xf32> to vector<2x128xf32>
    %108 = arith.divf %104, %107 : vector<2x128xf32>
    %c0_19 = arith.constant 0 : index
    %c0_20 = arith.constant 0 : index
    %109 = vector.load %arg10[%c0_19, %c0_20] : memref<2x128xf32, #tpu.memory_space<vmem>>, vector<2x128xf32>
    tpu.vector_store %arg10[%c0_19, %c0_20], %108 {strides = array<i32>} : memref<2x128xf32, #tpu.memory_space<vmem>>, vector<2x128xf32>,
    %110 = vector.shape_cast %108 : vector<2x128xf32> to vector<2x128x1xf32>
    %c0_21 = arith.constant 0 : index
    %c0_22 = arith.constant 0 : index
    %c0_23 = arith.constant 0 : index
    %111 = vector.load %arg4[%c0_21, %c0_22, %c0_23] : memref<2x128x128xbf16, #tpu.memory_space<vmem>>, vector<2x128x128xbf16>
    %112 = arith.extf %111 : vector<2x128x128xbf16> to vector<2x128x128xf32>
    %113 = vector.broadcast %110 : vector<2x128x1xf32> to vector<2x128x128xf32>
    %114 = arith.mulf %113, %112 : vector<2x128x128xf32>
    %cst_24 = arith.constant dense<0.000000e+00> : vector<2x128xf32>
    %115 = vector.multi_reduction <add>, %114, %cst_24 [1] : vector<2x128x128xf32> to vector<2x128xf32>
    %c0_25 = arith.constant 0 : index
    %c0_26 = arith.constant 0 : index
    %116 = vector.load %arg9[%c0_25, %c0_26] : memref<2x128xf32, #tpu.memory_space<vmem>>, vector<2x128xf32>
    tpu.vector_store %arg9[%c0_25, %c0_26], %115 {strides = array<i32>} : memref<2x128xf32, #tpu.memory_space<vmem>>, vector<2x128xf32>,
    return
  }
  func.func @transform_0(%arg0: i32) -> (i32, i32) {
    %c0_i32 = arith.constant 0 : i32
    %c0_i32_0 = arith.constant 0 : i32
    return %arg0, %c0_i32 : i32, i32
  }
  func.func @transform_1(%arg0: i32) -> (i32, i32, i32) {
    %c0_i32 = arith.constant 0 : i32
    %c0_i32_0 = arith.constant 0 : i32
    %c0_i32_1 = arith.constant 0 : i32
    return %arg0, %c0_i32, %c0_i32_0 : i32, i32, i32
  }
  func.func @transform_2(%arg0: i32) -> (i32, i32, i32) {
    %c0_i32 = arith.constant 0 : i32
    %c0_i32_0 = arith.constant 0 : i32
    %c0_i32_1 = arith.constant 0 : i32
    return %arg0, %c0_i32, %c0_i32_0 : i32, i32, i32
  }
  func.func @transform_3(%arg0: i32) -> (i32, i32, i32) {
    %c0_i32 = arith.constant 0 : i32
    %c0_i32_0 = arith.constant 0 : i32
    %c0_i32_1 = arith.constant 0 : i32
    return %arg0, %c0_i32, %c0_i32_0 : i32, i32, i32
  }
  func.func @transform_4(%arg0: i32) -> (i32, i32) {
    %c0_i32 = arith.constant 0 : i32
    %c0_i32_0 = arith.constant 0 : i32
    return %arg0, %c0_i32 : i32, i32
  }
  func.func @transform_5(%arg0: i32) -> (i32, i32) {
    %c0_i32 = arith.constant 0 : i32
    %c0_i32_0 = arith.constant 0 : i32
    %c0_i32_1 = arith.constant 0 : i32
    return %c0_i32, %c0_i32_0 : i32, i32
  }
  func.func @transform_6(%arg0: i32) -> (i32, i32) {
    %c0_i32 = arith.constant 0 : i32
    %c0_i32_0 = arith.constant 0 : i32
    %c0_i32_1 = arith.constant 0 : i32
    return %c0_i32, %c0_i32_0 : i32, i32
  }
  func.func @transform_7(%arg0: i32) -> (i32, i32) {
    %c0_i32 = arith.constant 0 : i32
    %c0_i32_0 = arith.constant 0 : i32
    %c0_i32_1 = arith.constant 0 : i32
    return %c0_i32, %c0_i32_0 : i32, i32
  }
  func.func @transform_8(%arg0: i32) -> (i32, i32) {
    %c0_i32 = arith.constant 0 : i32
    %c0_i32_0 = arith.constant 0 : i32
    return %arg0, %c0_i32 : i32, i32
  }
  func.func @transform_9(%arg0: i32) -> (i32, i32) {
    %c0_i32 = arith.constant 0 : i32
    %c0_i32_0 = arith.constant 0 : i32
    return %arg0, %c0_i32 : i32, i32
  }
}

</mosaic_0001>

<bundles_post_ra>
// kernel: tpu_custom_call.1
= control target key start
LH: loop header
LB: loop body
LE: loop exit
PB: predicated region body
PF: predicated region fallthrough
CT: control target
= control target key end

     0   :  { %15 = vsyncpa [#allocation3], 0  ;;  %s7605_s0 = inlined_call_operand.vmem [shape: bf16[2,32], index: 0, kind: input, shape index: {}]   ;;  %s7606_s1 = inlined_call_operand.vmem [shape: f32[2,128,10], index: 1, kind: input, shape index: {}]   ;;  %s7607_s2 = inlined_call_operand.vmem [shape: bf16[2,128,128], index: 2, kind: input, shape index: {}]   ;;  %s7608_s3 = inlined_call_operand.vmem [shape: bf16[2,128,128], index: 3, kind: input, shape index: {}]   ;;  %s7609_s4 = inlined_call_operand.vmem [shape: f32[2,128], index: 4, kind: input, shape index: {}]   ;;  %s7610_s5 = inlined_call_operand.vmem [shape: bf16[32,128], index: 5, kind: input, shape index: {}]   ;;  %s7611_s6 = inlined_call_operand.hbm [shape: f32[10,128], index: 6, kind: input, shape index: {}]   ;;  %s7612_s7 = inlined_call_operand.vmem [shape: f32[1,128], index: 7, kind: input, shape index: {}]   ;;  %s7613_s8 = inlined_call_operand.hbm [shape: f32[2,128], index: 8, kind: output, shape index: {0}]   ;;  %s7614_s9 = inlined_call_operand.hbm [shape: f32[2,128], index: 9, kind: output, shape index: {1}]  }
   0x1   :  { %16 = vsyncpa [#allocation4], 0 }
   0x2   :  { %17 = vsyncpa [#allocation7], 0  ;;  %s34_s11 = sshll.u32 %s7611_s6, 4  ;;  %s4090_s12 = smov [#allocation2]   ;;  %s35_s11 = int_to_ptr.hbm [resolvable:$true] %s34_s11 }
   0x3   :  { %s36_s13 = sshll.u32 %s4090_s12, 4  ;;  %s4091_s14 = smov 128   ;;  %s37_s13 = int_to_ptr.vmem [resolvable:$true] %s36_s13 }
   0x4   :  { %s4092_s15 = smov 8  }
   0x5   :  { %42 = dma.hbm_to_vmem [thread:$0]  %s35_s11, 256, %s37_s13, [#allocation3], %s4091_s14, %s4091_s14, %s4092_s15  }
   0x6   :  { %4084 = dma.done.wait [#allocation3], 256  }
   0x7   :  { %4085 = vsyncadd [#allocation3], 4294967040  ;;  %v7615_v0 = vmov 0   ;;  %v4164_v1 = vld [vmem:[%s7606_s1 + $0x20] sm:$0xff]  ;;  %v4169_v2 = vld [vmem:[%s7606_s1 + $0x10] sm:$0xff]  ;;  %v4094_v33 = vmov 1  }
   0x8   :  { %3783 = vset.pattern.permute.xlu2 %v7615_v0  ;;  %3782 = vset.pattern.permute.xlu1 %v7615_v0  ;;  %v4174_v3 = vld [vmem:[%s7606_s1] sm:$0xff]  ;;  %v4182_v4 = vld [vmem:[%s7606_s1 + $0x28] sm:$0xff]  ;;  %v4187_v5 = vld [vmem:[%s7606_s1 + $0x18] sm:$0xff]  ;;  %v4095_v58 = vmov 2   ;;  %vm67_vm0 = vcmask 261120   ;;  %vm2739_vm1 = vcmask 130112  }
   0x9   :  { %3781 = vset.pattern.permute.xlu0 %v7615_v0  ;;  %140 = vperm.xlu2 %3783, %v4164_v1   ;;  %v4192_v6 = vld [vmem:[%s7606_s1 + $0x8] sm:$0xff]  ;;  %v4200_v7 = vld [vmem:[%s7606_s1 + $0x40] sm:$0xff]  ;;  %v4205_v8 = vld [vmem:[%s7606_s1 + $0x38] sm:$0xff]  ;;  %vm2743_vm2 = vcmask 195712   ;;  %vm2747_vm3 = vcmask 261312   ;;  %vm2751_vm4 = vcmask 326912  }
   0xa   :  { %130 = vperm.xlu1 %3782, %v4169_v2   ;;  %120 = vperm.xlu0 %3781, %v4174_v3   ;;  %v4210_v9 = vld [vmem:[%s7606_s1 + $0x30] sm:$0xff]  ;;  %v4218_v10 = vld [vmem:[%s7606_s1 + $0x58] sm:$0xff]  ;;  %v4228_v12 = vld [vmem:[%s7606_s1 + $0x48] sm:$0xff]  ;;  %vm2755_vm5 = vcmask 392512   ;;  %vm2759_vm6 = vcmask 458112   ;;  %vm7656_vm7 = vcmask 523712  }
   0xb   :  { %v4223_v11 = vld [vmem:[%s7606_s1 + $0x50] sm:$0xff]  ;;  %v4241_v14 = vld [vmem:[%s7606_s1 + $0x68] sm:$0xff]  ;;  %v4246_v15 = vld [vmem:[%s7606_s1 + $0x60] sm:$0xff]  ;;  %vm7655_vm8 = vcmask 589312   ;;  %vm2771_vm9 = vcmask 654912   ;;  %vm2775_vm10 = vcmask 720512  }
   0xc   :  { %v4236_v13 = vld [vmem:[%s7606_s1 + $0x70] sm:$0xff]  ;;  %v4254_v16 = vld [vmem:[%s7606_s1 + $0x88] sm:$0xff]  ;;  %v4259_v17 = vld [vmem:[%s7606_s1 + $0x80] sm:$0xff]  ;;  %vm7642_vm11 = vcmask 786112   ;;  %vm2783_vm12 = vcmask 851712   ;;  %vm7660_vm13 = vcmask 917312  }
   0xd   :  { %v4264_v18 = vld [vmem:[%s7606_s1 + $0x78] sm:$0xff]  ;;  %v4272_v19 = vld [vmem:[%s7606_s1 + $0xa0] sm:$0xff]  ;;  %v4282_v21 = vld [vmem:[%s7606_s1 + $0x90] sm:$0xff]  ;;  %vm7659_vm14 = vcmask 982912   ;;  %vm7658_vm15 = vcmask 1048512   ;;  %s3582_s25 = sshll.u32 %s7614_s9, 4  ;;  %s3583_s25 = int_to_ptr.hbm [resolvable:$true] %s3582_s25 }
   0xe   :  { %v4277_v20 = vld [vmem:[%s7606_s1 + $0x98] sm:$0xff]  ;;  %v4295_v23 = vld [vmem:[%s7606_s1 + $0xb0] sm:$0xff]  ;;  %v4300_v24 = vld [vmem:[%s7606_s1 + $0xa8] sm:$0xff]  ;;  %s4104_s9 = smov [#allocation5]   ;;  %s3571_s29 = sshll.u32 %s7613_s8, 4  ;;  %s3572_s29 = int_to_ptr.hbm [resolvable:$true] %s3571_s29 }
   0xf   :  { %v4290_v22 = vld [vmem:[%s7606_s1 + $0xb8] sm:$0xff]  ;;  %v4308_v25 = vld [vmem:[%s7606_s1 + $0xd0] sm:$0xff]  ;;  %v4313_v26 = vld [vmem:[%s7606_s1 + $0xc8] sm:$0xff]  ;;  %s3569_s26 = sshll.u32 %s4104_s9, 4  ;;  %s3570_s26 = int_to_ptr.vmem [resolvable:$true] %s3569_s26 }
  0x10   :  { %v4318_v27 = vld [vmem:[%s7606_s1 + $0xc0] sm:$0xff]  ;;  %v4326_v28 = vld [vmem:[%s7606_s1 + $0xe8] sm:$0xff]  ;;  %v4336_v30 = vld [vmem:[%s7606_s1 + $0xd8] sm:$0xff] }
  0x11   :  { %145 = vperm.xlu2 %3783, %v4182_v4   ;;  %v4331_v29 = vld [vmem:[%s7606_s1 + $0xe0] sm:$0xff]  ;;  %v4344_v31 = vld [vmem:[%s7606_s1 + $0xf8] sm:$0xff]  ;;  %v4349_v32 = vld [vmem:[%s7606_s1 + $0xf0] sm:$0xff] }
  0x12   :  { %135 = vperm.xlu1 %3782, %v4187_v5   ;;  %125 = vperm.xlu0 %3781, %v4192_v6  }
  0x19   :  { %160 = vperm.xlu2 %3783, %v4200_v7  }
  0x1a   :  { %155 = vperm.xlu1 %3782, %v4205_v8   ;;  %150 = vperm.xlu0 %3781, %v4210_v9  }
  0x21   :  { %175 = vperm.xlu2 %3783, %v4218_v10  }
  0x22   :  { %170 = vperm.xlu1 %3782, %v4223_v11   ;;  %165 = vperm.xlu0 %3781, %v4228_v12  }
  0x29   :  { %190 = vperm.xlu2 %3783, %v4236_v13  }
  0x2a   :  { %185 = vperm.xlu1 %3782, %v4241_v14   ;;  %180 = vperm.xlu0 %3781, %v4246_v15  }
  0x31   :  { %205 = vperm.xlu2 %3783, %v4254_v16  }
  0x32   :  { %200 = vperm.xlu1 %3782, %v4259_v17   ;;  %195 = vperm.xlu0 %3781, %v4264_v18  }
  0x39   :  { %220 = vperm.xlu2 %3783, %v4272_v19  }
  0x3a   :  { %215 = vperm.xlu1 %3782, %v4277_v20   ;;  %210 = vperm.xlu0 %3781, %v4282_v21  }
  0x41   :  { %235 = vperm.xlu2 %3783, %v4290_v22  }
  0x42   :  { %230 = vperm.xlu1 %3782, %v4295_v23   ;;  %225 = vperm.xlu0 %3781, %v4300_v24  }
  0x49   :  { %250 = vperm.xlu2 %3783, %v4308_v25  }
  0x4a   :  { %245 = vperm.xlu1 %3782, %v4313_v26   ;;  %240 = vperm.xlu0 %3781, %v4318_v27  }
  0x51   :  { %265 = vperm.xlu2 %3783, %v4326_v28  }
  0x52   :  { %260 = vperm.xlu1 %3782, %v4331_v29   ;;  %255 = vperm.xlu0 %3781, %v4336_v30  }
  0x59   :  { %3784 = vset.pattern.permute.xlu2 %v4094_v33 }
  0x5a   :  { %275 = vperm.xlu1 %3782, %v4344_v31   ;;  %270 = vperm.xlu0 %3781, %v4349_v32  }
  0x5b   :  { %344 = vperm.xlu2 %3784, %v4174_v3  }
  0x62   :  { %3786 = vset.pattern.permute.xlu1 %v4094_v33  ;;  %3785 = vset.pattern.permute.xlu0 %v4094_v33 }
  0x63   :  { %352 = vperm.xlu1 %3786, %v4169_v2   ;;  %356 = vperm.xlu2 %3784, %v4187_v5   ;;  %v4357_v34 = vpop.permute.xlu2 %140 }
  0x64   :  { %348 = vperm.xlu0 %3785, %v4192_v6  }
  0x6b   :  { %360 = vperm.xlu1 %3786, %v4164_v1   ;;  %364 = vperm.xlu2 %3784, %v4182_v4   ;;  %v4362_v35 = vpop.permute.xlu2 %145 }
  0x6c   :  { %368 = vperm.xlu0 %3785, %v4210_v9  }
  0x73   :  { %372 = vperm.xlu1 %3786, %v4205_v8   ;;  %376 = vperm.xlu2 %3784, %v4200_v7   ;;  %v4367_v36 = vpop.permute.xlu2 %160 }
  0x74   :  { %380 = vperm.xlu0 %3785, %v4228_v12  }
  0x7b   :  { %384 = vperm.xlu1 %3786, %v4223_v11   ;;  %388 = vperm.xlu2 %3784, %v4218_v10   ;;  %v4372_v37 = vpop.permute.xlu2 %175 }
  0x7c   :  { %392 = vperm.xlu0 %3785, %v4246_v15   ;;  %v4374_v38 = vpop.permute.xlu1 %130  ;;  %v4376_v39 = vpop.permute.xlu0 %120 }
  0x83   :  { %396 = vperm.xlu1 %3786, %v4241_v14   ;;  %400 = vperm.xlu2 %3784, %v4236_v13   ;;  %v4381_v40 = vpop.permute.xlu2 %190 }
  0x84   :  { %404 = vperm.xlu0 %3785, %v4264_v18   ;;  %v4383_v41 = vpop.permute.xlu1 %135  ;;  %v4385_v42 = vpop.permute.xlu0 %125 }
  0x8b   :  { %408 = vperm.xlu1 %3786, %v4259_v17   ;;  %412 = vperm.xlu2 %3784, %v4254_v16   ;;  %v4390_v43 = vpop.permute.xlu2 %205 }
  0x8c   :  { %416 = vperm.xlu0 %3785, %v4282_v21   ;;  %v4392_v44 = vpop.permute.xlu1 %155  ;;  %v4394_v45 = vpop.permute.xlu0 %150 }
  0x93   :  { %420 = vperm.xlu1 %3786, %v4277_v20   ;;  %424 = vperm.xlu2 %3784, %v4272_v19   ;;  %v4399_v46 = vpop.permute.xlu2 %220 }
  0x94   :  { %428 = vperm.xlu0 %3785, %v4300_v24   ;;  %v4401_v47 = vpop.permute.xlu1 %170  ;;  %v4403_v48 = vpop.permute.xlu0 %165 }
  0x9b   :  { %432 = vperm.xlu1 %3786, %v4295_v23   ;;  %436 = vperm.xlu2 %3784, %v4290_v22   ;;  %v4408_v49 = vpop.permute.xlu2 %235 }
  0x9c   :  { %440 = vperm.xlu0 %3785, %v4318_v27   ;;  %v4410_v50 = vpop.permute.xlu1 %185  ;;  %v4412_v51 = vpop.permute.xlu0 %180 }
  0xa3   :  { %444 = vperm.xlu1 %3786, %v4313_v26   ;;  %448 = vperm.xlu2 %3784, %v4308_v25   ;;  %v4417_v52 = vpop.permute.xlu2 %250 }
  0xa4   :  { %452 = vperm.xlu0 %3785, %v4336_v30   ;;  %v4419_v53 = vpop.permute.xlu1 %200  ;;  %v4421_v54 = vpop.permute.xlu0 %195 }
  0xab   :  { %456 = vperm.xlu1 %3786, %v4331_v29   ;;  %460 = vperm.xlu2 %3784, %v4326_v28   ;;  %v4426_v55 = vpop.permute.xlu2 %265 }
  0xac   :  { %464 = vperm.xlu0 %3785, %v4349_v32   ;;  %v4428_v56 = vpop.permute.xlu1 %215  ;;  %v4430_v57 = vpop.permute.xlu0 %210 }
  0xad   :  { %7661 = vst [vmem:[#allocation11_spill] sm:$0xff] %v4430_v57 }
  0xb3   :  { %468 = vperm.xlu1 %3786, %v4344_v31   ;;  %3787 = vset.pattern.permute.xlu2 %v4095_v58 }
  0xb4   :  { %3788 = vset.pattern.permute.xlu0 %v4095_v58  ;;  %v4433_v59 = vpop.permute.xlu1 %230  ;;  %537 = vperm.xlu2 %3787, %v4174_v3   ;;  %v4437_v60 = vpop.permute.xlu0 %225 }
  0xb5   :  { %7662 = vst [vmem:[#allocation12_spill] sm:$0xff] %v4433_v59  ;;  %541 = vperm.xlu0 %3788, %v4192_v6   ;;  %v4439_v61 = vpop.permute.xlu2 %344 }
  0xb6   :  { %7663 = vst [vmem:[#allocation13_spill] sm:$0xff] %v4437_v60 }
  0xbb   :  { %3789 = vset.pattern.permute.xlu1 %v4095_v58 }
  0xbc   :  { %545 = vperm.xlu1 %3789, %v4169_v2   ;;  %v4442_v62 = vpop.permute.xlu1 %245  ;;  %549 = vperm.xlu2 %3787, %v4187_v5   ;;  %v4446_v63 = vpop.permute.xlu0 %240 }
  0xbd   :  { %7664 = vst [vmem:[#allocation14_spill] sm:$0xff] %v4442_v62  ;;  %561 = vperm.xlu0 %3788, %v4210_v9   ;;  %v4448_v33 = vpop.permute.xlu2 %356 }
  0xbe   :  { %7665 = vst [vmem:[#allocation15_spill] sm:$0xff] %v4446_v63 }
  0xc4   :  { %553 = vperm.xlu1 %3789, %v4164_v1   ;;  %v4451_v0 = vpop.permute.xlu1 %260  ;;  %557 = vperm.xlu2 %3787, %v4182_v4   ;;  %v4455_v58 = vpop.permute.xlu0 %255 }
  0xc5   :  { %7666 = vst [vmem:[#allocation16_spill] sm:$0xff] %v4451_v0  ;;  %573 = vperm.xlu0 %3788, %v4228_v12   ;;  %v4457_v60 = vpop.permute.xlu2 %364 }
  0xc6   :  { %7667 = vst [vmem:[#allocation17_spill] sm:$0xff] %v4455_v58 }
  0xc7   :  { %7668 = vst [vmem:[#allocation18_spill] sm:$0xff] %v4457_v60 }
  0xcc   :  { %565 = vperm.xlu1 %3789, %v4205_v8   ;;  %v4460_v62 = vpop.permute.xlu1 %275  ;;  %569 = vperm.xlu2 %3787, %v4200_v7   ;;  %v4464_v63 = vpop.permute.xlu0 %270 }
  0xcd   :  { %7669 = vst [vmem:[#allocation19_spill] sm:$0xff] %v4460_v62  ;;  %585 = vperm.xlu0 %3788, %v4246_v15   ;;  %v4466_v59 = vpop.permute.xlu2 %376 }
  0xce   :  { %7670 = vst [vmem:[#allocation20_spill] sm:$0xff] %v4464_v63 }
  0xcf   :  { %7671 = vst [vmem:[#allocation21_spill] sm:$0xff] %v4466_v59 }
  0xd4   :  { %577 = vperm.xlu1 %3789, %v4223_v11   ;;  %581 = vperm.xlu2 %3787, %v4218_v10  }
  0xd5   :  { %597 = vperm.xlu0 %3788, %v4264_v18   ;;  %v4471_v58 = vpop.permute.xlu1 %352  ;;  %v4473_v0 = vpop.permute.xlu2 %388 }
  0xd6   :  { %7672 = vst [vmem:[#allocation22_spill] sm:$0xff] %v4471_v58  ;;  %v4475_v60 = vpop.permute.xlu0 %348 }
  0xd7   :  { %7673 = vst [vmem:[#allocation23_spill] sm:$0xff] %v4473_v0 }
  0xd8   :  { %7674 = vst [vmem:[#allocation24_spill] sm:$0xff] %v4475_v60 }
  0xdc   :  { %589 = vperm.xlu1 %3789, %v4241_v14   ;;  %593 = vperm.xlu2 %3787, %v4236_v13  }
  0xdd   :  { %609 = vperm.xlu0 %3788, %v4282_v21   ;;  %v4480_v63 = vpop.permute.xlu1 %360  ;;  %v4482_v62 = vpop.permute.xlu2 %400 }
  0xde   :  { %7675 = vst [vmem:[#allocation25_spill] sm:$0xff] %v4480_v63  ;;  %v4484_v59 = vpop.permute.xlu0 %368 }
  0xdf   :  { %7676 = vst [vmem:[#allocation26_spill] sm:$0xff] %v4482_v62 }
  0xe0   :  { %7677 = vst [vmem:[#allocation27_spill] sm:$0xff] %v4484_v59 }
  0xe4   :  { %601 = vperm.xlu1 %3789, %v4259_v17   ;;  %605 = vperm.xlu2 %3787, %v4254_v16  }
  0xe5   :  { %621 = vperm.xlu0 %3788, %v4300_v24   ;;  %v4489_v0 = vpop.permute.xlu1 %372  ;;  %v4491_v60 = vpop.permute.xlu2 %412 }
  0xe6   :  { %7678 = vst [vmem:[#allocation28_spill] sm:$0xff] %v4489_v0  ;;  %v4493_v58 = vpop.permute.xlu0 %380 }
  0xe7   :  { %7679 = vst [vmem:[#allocation29_spill] sm:$0xff] %v4491_v60 }
  0xe8   :  { %7680 = vst [vmem:[#allocation30_spill] sm:$0xff] %v4493_v58 }
  0xec   :  { %613 = vperm.xlu1 %3789, %v4277_v20   ;;  %617 = vperm.xlu2 %3787, %v4272_v19  }
  0xed   :  { %633 = vperm.xlu0 %3788, %v4318_v27   ;;  %v4498_v62 = vpop.permute.xlu1 %384  ;;  %v4500_v59 = vpop.permute.xlu2 %424 }
  0xee   :  { %7681 = vst [vmem:[#allocation31_spill] sm:$0xff] %v4498_v62  ;;  %v4502_v63 = vpop.permute.xlu0 %392 }
  0xef   :  { %7682 = vst [vmem:[#allocation32_spill] sm:$0xff] %v4500_v59 }
  0xf0   :  { %7683 = vst [vmem:[#allocation33_spill] sm:$0xff] %v4502_v63 }
  0xf4   :  { %625 = vperm.xlu1 %3789, %v4295_v23   ;;  %629 = vperm.xlu2 %3787, %v4290_v22  }
  0xf5   :  { %645 = vperm.xlu0 %3788, %v4336_v30   ;;  %v4507_v60 = vpop.permute.xlu1 %396  ;;  %v4509_v58 = vpop.permute.xlu2 %436 }
  0xf6   :  { %7684 = vst [vmem:[#allocation34_spill] sm:$0xff] %v4507_v60  ;;  %v4511_v0 = vpop.permute.xlu0 %404  ;;  %v4096_v60 = vmov 3  }
  0xf7   :  { %7685 = vst [vmem:[#allocation35_spill] sm:$0xff] %v4509_v58 }
  0xf8   :  { %7686 = vst [vmem:[#allocation36_spill] sm:$0xff] %v4511_v0 }
  0xfc   :  { %637 = vperm.xlu1 %3789, %v4313_v26   ;;  %641 = vperm.xlu2 %3787, %v4308_v25  }
  0xfd   :  { %657 = vperm.xlu0 %3788, %v4349_v32   ;;  %v4516_v59 = vpop.permute.xlu1 %408  ;;  %v4518_v63 = vpop.permute.xlu2 %448 }
  0xfe   :  { %7687 = vst [vmem:[#allocation37_spill] sm:$0xff] %v4516_v59  ;;  %v4520_v62 = vpop.permute.xlu0 %416 }
  0xff   :  { %7688 = vst [vmem:[#allocation38_spill] sm:$0xff] %v4518_v63 }
 0x100   :  { %7689 = vst [vmem:[#allocation39_spill] sm:$0xff] %v4520_v62 }
 0x104   :  { %649 = vperm.xlu1 %3789, %v4331_v29   ;;  %653 = vperm.xlu2 %3787, %v4326_v28  }
 0x105   :  { %3791 = vset.pattern.permute.xlu0 %v4096_v60  ;;  %v4524_v58 = vpop.permute.xlu1 %420  ;;  %v4526_v0 = vpop.permute.xlu2 %460 }
 0x106   :  { %7690 = vst [vmem:[#allocation40_spill] sm:$0xff] %v4524_v58  ;;  %734 = vperm.xlu0 %3791, %v4192_v6   ;;  %v4529_v57 = vpop.permute.xlu0 %428 }
 0x107   :  { %7691 = vst [vmem:[#allocation41_spill] sm:$0xff] %v4526_v0 }
 0x108   :  { %7692 = vst [vmem:[#allocation42_spill] sm:$0xff] %v4529_v57 }
 0x10c   :  { %661 = vperm.xlu1 %3789, %v4344_v31   ;;  %3790 = vset.pattern.permute.xlu2 %v4096_v60 }
 0x10d   :  { %v4532_v63 = vpop.permute.xlu1 %432  ;;  %730 = vperm.xlu2 %3790, %v4174_v3  }
 0x10e   :  { %7693 = vst [vmem:[#allocation43_spill] sm:$0xff] %v4532_v63  ;;  %754 = vperm.xlu0 %3791, %v4210_v9   ;;  %v4536_v62 = vpop.permute.xlu0 %440  ;;  %v4538_v59 = vpop.permute.xlu2 %537 }
 0x10f   :  { %7694 = vst [vmem:[#allocation44_spill] sm:$0xff] %v4536_v62 }
 0x110   :  { %7695 = vst [vmem:[#allocation45_spill] sm:$0xff] %v4538_v59 }
 0x114   :  { %3792 = vset.pattern.permute.xlu1 %v4096_v60 }
 0x115   :  { %738 = vperm.xlu1 %3792, %v4169_v2   ;;  %v4541_v0 = vpop.permute.xlu1 %444  ;;  %742 = vperm.xlu2 %3790, %v4187_v5  }
 0x116   :  { %7696 = vst [vmem:[#allocation46_spill] sm:$0xff] %v4541_v0  ;;  %766 = vperm.xlu0 %3791, %v4228_v12   ;;  %v4545_v57 = vpop.permute.xlu0 %452  ;;  %v4547_v63 = vpop.permute.xlu2 %549 }
 0x117   :  { %7697 = vst [vmem:[#allocation47_spill] sm:$0xff] %v4545_v57 }
 0x118   :  { %7698 = vst [vmem:[#allocation48_spill] sm:$0xff] %v4547_v63 }
 0x11d   :  { %746 = vperm.xlu1 %3792, %v4164_v1   ;;  %v4550_v58 = vpop.permute.xlu1 %456  ;;  %750 = vperm.xlu2 %3790, %v4182_v4  }
 0x11e   :  { %7699 = vst [vmem:[#allocation49_spill] sm:$0xff] %v4550_v58  ;;  %778 = vperm.xlu0 %3791, %v4246_v15   ;;  %v4554_v60 = vpop.permute.xlu0 %464  ;;  %v4556_v59 = vpop.permute.xlu2 %557 }
 0x11f   :  { %7700 = vst [vmem:[#allocation50_spill] sm:$0xff] %v4554_v60 }
 0x120   :  { %7701 = vst [vmem:[#allocation51_spill] sm:$0xff] %v4556_v59 }
 0x125   :  { %758 = vperm.xlu1 %3792, %v4205_v8   ;;  %v4559_v0 = vpop.permute.xlu1 %468  ;;  %762 = vperm.xlu2 %3790, %v4200_v7  }
 0x126   :  { %7702 = vst [vmem:[#allocation52_spill] sm:$0xff] %v4559_v0  ;;  %790 = vperm.xlu0 %3791, %v4264_v18   ;;  %v4563_v63 = vpop.permute.xlu2 %569 }
 0x127   :  { %7703 = vst [vmem:[#allocation53_spill] sm:$0xff] %v4563_v63  ;;  %v4565_v57 = vpop.permute.xlu0 %541 }
 0x128   :  { %7704 = vst [vmem:[#allocation54_spill] sm:$0xff] %v4565_v57 }
 0x12d   :  { %770 = vperm.xlu1 %3792, %v4223_v11   ;;  %774 = vperm.xlu2 %3790, %v4218_v10  }
 0x12e   :  { %802 = vperm.xlu0 %3791, %v4282_v21   ;;  %v4570_v60 = vpop.permute.xlu1 %545  ;;  %v4572_v59 = vpop.permute.xlu2 %581 }
 0x12f   :  { %7705 = vst [vmem:[#allocation55_spill] sm:$0xff] %v4570_v60  ;;  %v4574_v58 = vpop.permute.xlu0 %561 }
 0x130   :  { %7706 = vst [vmem:[#allocation56_spill] sm:$0xff] %v4572_v59 }
 0x131   :  { %7707 = vst [vmem:[#allocation57_spill] sm:$0xff] %v4574_v58 }
 0x135   :  { %782 = vperm.xlu1 %3792, %v4241_v14   ;;  %786 = vperm.xlu2 %3790, %v4236_v13  }
 0x136   :  { %814 = vperm.xlu0 %3791, %v4300_v24   ;;  %v4579_v0 = vpop.permute.xlu1 %553  ;;  %v4581_v57 = vpop.permute.xlu2 %593 }
 0x137   :  { %7708 = vst [vmem:[#allocation58_spill] sm:$0xff] %v4579_v0  ;;  %v4583_v63 = vpop.permute.xlu0 %573 }
 0x138   :  { %7709 = vst [vmem:[#allocation59_spill] sm:$0xff] %v4581_v57 }
 0x139   :  { %7710 = vst [vmem:[#allocation60_spill] sm:$0xff] %v4583_v63 }
 0x13d   :  { %794 = vperm.xlu1 %3792, %v4259_v17   ;;  %798 = vperm.xlu2 %3790, %v4254_v16  }
 0x13e   :  { %826 = vperm.xlu0 %3791, %v4318_v27   ;;  %v4588_v59 = vpop.permute.xlu1 %565  ;;  %v4590_v58 = vpop.permute.xlu2 %605 }
 0x13f   :  { %7711 = vst [vmem:[#allocation61_spill] sm:$0xff] %v4588_v59  ;;  %v4592_v60 = vpop.permute.xlu0 %585 }
 0x140   :  { %7712 = vst [vmem:[#allocation62_spill] sm:$0xff] %v4590_v58 }
 0x141   :  { %7713 = vst [vmem:[#allocation63_spill] sm:$0xff] %v4592_v60 }
 0x145   :  { %806 = vperm.xlu1 %3792, %v4277_v20   ;;  %810 = vperm.xlu2 %3790, %v4272_v19  }
 0x146   :  { %838 = vperm.xlu0 %3791, %v4336_v30   ;;  %v4597_v57 = vpop.permute.xlu1 %577  ;;  %v4599_v63 = vpop.permute.xlu2 %617 }
 0x147   :  { %7714 = vst [vmem:[#allocation64_spill] sm:$0xff] %v4597_v57  ;;  %v4601_v0 = vpop.permute.xlu0 %597  ;;  %v4097_v57 = vmov 4  }
 0x148   :  { %7715 = vst [vmem:[#allocation65_spill] sm:$0xff] %v4599_v63 }
 0x149   :  { %7716 = vst [vmem:[#allocation66_spill] sm:$0xff] %v4601_v0 }
 0x14d   :  { %818 = vperm.xlu1 %3792, %v4295_v23   ;;  %822 = vperm.xlu2 %3790, %v4290_v22  }
 0x14e   :  { %850 = vperm.xlu0 %3791, %v4349_v32   ;;  %v4606_v58 = vpop.permute.xlu1 %589  ;;  %v4608_v60 = vpop.permute.xlu2 %629 }
 0x14f   :  { %7717 = vst [vmem:[#allocation67_spill] sm:$0xff] %v4606_v58  ;;  %v4610_v59 = vpop.permute.xlu0 %609 }
 0x150   :  { %7718 = vst [vmem:[#allocation68_spill] sm:$0xff] %v4608_v60 }
 0x151   :  { %7719 = vst [vmem:[#allocation69_spill] sm:$0xff] %v4610_v59 }
 0x155   :  { %830 = vperm.xlu1 %3792, %v4313_v26   ;;  %834 = vperm.xlu2 %3790, %v4308_v25  }
 0x156   :  { %3794 = vset.pattern.permute.xlu0 %v4097_v57  ;;  %v4614_v63 = vpop.permute.xlu1 %601  ;;  %v4616_v0 = vpop.permute.xlu2 %641 }
 0x157   :  { %7720 = vst [vmem:[#allocation70_spill] sm:$0xff] %v4614_v63  ;;  %927 = vperm.xlu0 %3794, %v4192_v6   ;;  %v4619_v62 = vpop.permute.xlu0 %621 }
 0x158   :  { %7721 = vst [vmem:[#allocation71_spill] sm:$0xff] %v4616_v0 }
 0x159   :  { %7722 = vst [vmem:[#allocation72_spill] sm:$0xff] %v4619_v62 }
 0x15d   :  { %842 = vperm.xlu1 %3792, %v4331_v29   ;;  %846 = vperm.xlu2 %3790, %v4326_v28  }
 0x15e   :  { %v4623_v60 = vpop.permute.xlu1 %613  ;;  %v4625_v59 = vpop.permute.xlu2 %653 }
 0x15f   :  { %7723 = vst [vmem:[#allocation73_spill] sm:$0xff] %v4623_v60  ;;  %947 = vperm.xlu0 %3794, %v4210_v9   ;;  %v4628_v58 = vpop.permute.xlu0 %633 }
 0x160   :  { %7724 = vst [vmem:[#allocation74_spill] sm:$0xff] %v4625_v59 }
 0x161   :  { %7725 = vst [vmem:[#allocation75_spill] sm:$0xff] %v4628_v58 }
 0x165   :  { %854 = vperm.xlu1 %3792, %v4344_v31   ;;  %3793 = vset.pattern.permute.xlu2 %v4097_v57 }
 0x166   :  { %v4631_v0 = vpop.permute.xlu1 %625  ;;  %923 = vperm.xlu2 %3793, %v4174_v3  }
 0x167   :  { %7726 = vst [vmem:[#allocation76_spill] sm:$0xff] %v4631_v0  ;;  %959 = vperm.xlu0 %3794, %v4228_v12   ;;  %v4635_v62 = vpop.permute.xlu0 %645  ;;  %v4637_v63 = vpop.permute.xlu2 %730 }
 0x168   :  { %7727 = vst [vmem:[#allocation77_spill] sm:$0xff] %v4635_v62 }
 0x169   :  { %7728 = vst [vmem:[#allocation78_spill] sm:$0xff] %v4637_v63 }
 0x16d   :  { %3795 = vset.pattern.permute.xlu1 %v4097_v57 }
 0x16e   :  { %931 = vperm.xlu1 %3795, %v4169_v2   ;;  %v4640_v59 = vpop.permute.xlu1 %637  ;;  %935 = vperm.xlu2 %3793, %v4187_v5  }
 0x16f   :  { %7729 = vst [vmem:[#allocation79_spill] sm:$0xff] %v4640_v59  ;;  %971 = vperm.xlu0 %3794, %v4246_v15   ;;  %v4644_v58 = vpop.permute.xlu0 %657  ;;  %v4646_v0 = vpop.permute.xlu2 %742 }
 0x170   :  { %7730 = vst [vmem:[#allocation80_spill] sm:$0xff] %v4644_v58 }
 0x171   :  { %7731 = vst [vmem:[#allocation81_spill] sm:$0xff] %v4646_v0 }
 0x176   :  { %939 = vperm.xlu1 %3795, %v4164_v1   ;;  %v4649_v60 = vpop.permute.xlu1 %649  ;;  %943 = vperm.xlu2 %3793, %v4182_v4  }
 0x177   :  { %7732 = vst [vmem:[#allocation82_spill] sm:$0xff] %v4649_v60  ;;  %983 = vperm.xlu0 %3794, %v4264_v18   ;;  %v4653_v57 = vpop.permute.xlu2 %750 }
 0x178   :  { %7733 = vst [vmem:[#allocation83_spill] sm:$0xff] %v4653_v57  ;;  %v4655_v63 = vpop.permute.xlu0 %734 }
 0x179   :  { %7734 = vst [vmem:[#allocation84_spill] sm:$0xff] %v4655_v63 }
 0x17e   :  { %951 = vperm.xlu1 %3795, %v4205_v8   ;;  %v4658_v59 = vpop.permute.xlu1 %661  ;;  %955 = vperm.xlu2 %3793, %v4200_v7  }
 0x17f   :  { %7735 = vst [vmem:[#allocation85_spill] sm:$0xff] %v4658_v59  ;;  %995 = vperm.xlu0 %3794, %v4282_v21   ;;  %v4662_v0 = vpop.permute.xlu2 %762 }
 0x180   :  { %7736 = vst [vmem:[#allocation86_spill] sm:$0xff] %v4662_v0  ;;  %v4664_v58 = vpop.permute.xlu0 %754 }
 0x181   :  { %7737 = vst [vmem:[#allocation87_spill] sm:$0xff] %v4664_v58 }
 0x186   :  { %963 = vperm.xlu1 %3795, %v4223_v11   ;;  %967 = vperm.xlu2 %3793, %v4218_v10  }
 0x187   :  { %1007 = vperm.xlu0 %3794, %v4300_v24   ;;  %v4669_v57 = vpop.permute.xlu1 %738  ;;  %v4671_v63 = vpop.permute.xlu2 %774 }
 0x188   :  { %7738 = vst [vmem:[#allocation88_spill] sm:$0xff] %v4669_v57  ;;  %v4673_v60 = vpop.permute.xlu0 %766 }
 0x189   :  { %7739 = vst [vmem:[#allocation89_spill] sm:$0xff] %v4671_v63 }
 0x18a   :  { %7740 = vst [vmem:[#allocation90_spill] sm:$0xff] %v4673_v60 }
 0x18e   :  { %975 = vperm.xlu1 %3795, %v4241_v14   ;;  %979 = vperm.xlu2 %3793, %v4236_v13  }
 0x18f   :  { %1019 = vperm.xlu0 %3794, %v4318_v27   ;;  %v4678_v59 = vpop.permute.xlu1 %746  ;;  %v4680_v58 = vpop.permute.xlu2 %786 }
 0x190   :  { %7741 = vst [vmem:[#allocation91_spill] sm:$0xff] %v4678_v59  ;;  %v4682_v0 = vpop.permute.xlu0 %778 }
 0x191   :  { %7742 = vst [vmem:[#allocation92_spill] sm:$0xff] %v4680_v58 }
 0x192   :  { %7743 = vst [vmem:[#allocation93_spill] sm:$0xff] %v4682_v0 }
 0x196   :  { %987 = vperm.xlu1 %3795, %v4259_v17   ;;  %991 = vperm.xlu2 %3793, %v4254_v16  }
 0x197   :  { %1031 = vperm.xlu0 %3794, %v4336_v30   ;;  %v4687_v63 = vpop.permute.xlu1 %758  ;;  %v4689_v60 = vpop.permute.xlu2 %798 }
 0x198   :  { %7744 = vst [vmem:[#allocation94_spill] sm:$0xff] %v4687_v63  ;;  %v4691_v57 = vpop.permute.xlu0 %790  ;;  %v4098_v63 = vmov 5  }
 0x199   :  { %7745 = vst [vmem:[#allocation95_spill] sm:$0xff] %v4689_v60 }
 0x19a   :  { %7746 = vst [vmem:[#allocation96_spill] sm:$0xff] %v4691_v57 }
 0x19e   :  { %999 = vperm.xlu1 %3795, %v4277_v20   ;;  %1003 = vperm.xlu2 %3793, %v4272_v19  }
 0x19f   :  { %1043 = vperm.xlu0 %3794, %v4349_v32   ;;  %v4696_v58 = vpop.permute.xlu1 %770  ;;  %v4698_v0 = vpop.permute.xlu2 %810 }
 0x1a0   :  { %7747 = vst [vmem:[#allocation97_spill] sm:$0xff] %v4696_v58  ;;  %v4700_v59 = vpop.permute.xlu0 %802 }
 0x1a1   :  { %7748 = vst [vmem:[#allocation98_spill] sm:$0xff] %v4698_v0 }
 0x1a2   :  { %7749 = vst [vmem:[#allocation99_spill] sm:$0xff] %v4700_v59 }
 0x1a6   :  { %1011 = vperm.xlu1 %3795, %v4295_v23   ;;  %1015 = vperm.xlu2 %3793, %v4290_v22  }
 0x1a7   :  { %3797 = vset.pattern.permute.xlu0 %v4098_v63  ;;  %v4704_v60 = vpop.permute.xlu1 %782  ;;  %v4706_v57 = vpop.permute.xlu2 %822 }
 0x1a8   :  { %7750 = vst [vmem:[#allocation100_spill] sm:$0xff] %v4704_v60  ;;  %1120 = vperm.xlu0 %3797, %v4192_v6   ;;  %v4709_v62 = vpop.permute.xlu0 %814 }
 0x1a9   :  { %7751 = vst [vmem:[#allocation101_spill] sm:$0xff] %v4706_v57 }
 0x1aa   :  { %7752 = vst [vmem:[#allocation102_spill] sm:$0xff] %v4709_v62 }
 0x1ae   :  { %1023 = vperm.xlu1 %3795, %v4313_v26   ;;  %1027 = vperm.xlu2 %3793, %v4308_v25  }
 0x1af   :  { %v4713_v0 = vpop.permute.xlu1 %794  ;;  %v4715_v59 = vpop.permute.xlu2 %834 }
 0x1b0   :  { %7753 = vst [vmem:[#allocation103_spill] sm:$0xff] %v4713_v0  ;;  %1140 = vperm.xlu0 %3797, %v4210_v9   ;;  %v4718_v58 = vpop.permute.xlu0 %826 }
 0x1b1   :  { %7754 = vst [vmem:[#allocation104_spill] sm:$0xff] %v4715_v59 }
 0x1b2   :  { %7755 = vst [vmem:[#allocation105_spill] sm:$0xff] %v4718_v58 }
 0x1b6   :  { %1035 = vperm.xlu1 %3795, %v4331_v29   ;;  %1039 = vperm.xlu2 %3793, %v4326_v28  }
 0x1b7   :  { %v4722_v57 = vpop.permute.xlu1 %806  ;;  %v4724_v60 = vpop.permute.xlu2 %846 }
 0x1b8   :  { %7756 = vst [vmem:[#allocation106_spill] sm:$0xff] %v4722_v57  ;;  %1152 = vperm.xlu0 %3797, %v4228_v12   ;;  %v4727_v62 = vpop.permute.xlu0 %838 }
 0x1b9   :  { %7757 = vst [vmem:[#allocation107_spill] sm:$0xff] %v4724_v60 }
 0x1ba   :  { %7758 = vst [vmem:[#allocation108_spill] sm:$0xff] %v4727_v62 }
 0x1be   :  { %1047 = vperm.xlu1 %3795, %v4344_v31   ;;  %3796 = vset.pattern.permute.xlu2 %v4098_v63 }
 0x1bf   :  { %v4730_v59 = vpop.permute.xlu1 %818  ;;  %1116 = vperm.xlu2 %3796, %v4174_v3  }
 0x1c0   :  { %7759 = vst [vmem:[#allocation109_spill] sm:$0xff] %v4730_v59  ;;  %1164 = vperm.xlu0 %3797, %v4246_v15   ;;  %v4734_v58 = vpop.permute.xlu0 %850  ;;  %v4736_v0 = vpop.permute.xlu2 %923 }
 0x1c1   :  { %7760 = vst [vmem:[#allocation110_spill] sm:$0xff] %v4734_v58 }
 0x1c2   :  { %7761 = vst [vmem:[#allocation111_spill] sm:$0xff] %v4736_v0 }
 0x1c6   :  { %3798 = vset.pattern.permute.xlu1 %v4098_v63 }
 0x1c7   :  { %1124 = vperm.xlu1 %3798, %v4169_v2   ;;  %v4739_v60 = vpop.permute.xlu1 %830  ;;  %1128 = vperm.xlu2 %3796, %v4187_v5  }
 0x1c8   :  { %7762 = vst [vmem:[#allocation112_spill] sm:$0xff] %v4739_v60  ;;  %1176 = vperm.xlu0 %3797, %v4264_v18   ;;  %v4743_v62 = vpop.permute.xlu2 %935 }
 0x1c9   :  { %7763 = vst [vmem:[#allocation113_spill] sm:$0xff] %v4743_v62  ;;  %v4745_v59 = vpop.permute.xlu0 %927 }
 0x1ca   :  { %7764 = vst [vmem:[#allocation114_spill] sm:$0xff] %v4745_v59 }
 0x1cf   :  { %1132 = vperm.xlu1 %3798, %v4164_v1   ;;  %v4748_v57 = vpop.permute.xlu1 %842  ;;  %1136 = vperm.xlu2 %3796, %v4182_v4  }
 0x1d0   :  { %7765 = vst [vmem:[#allocation115_spill] sm:$0xff] %v4748_v57  ;;  %1188 = vperm.xlu0 %3797, %v4282_v21   ;;  %v4752_v63 = vpop.permute.xlu2 %943 }
 0x1d1   :  { %7766 = vst [vmem:[#allocation116_spill] sm:$0xff] %v4752_v63  ;;  %v4754_v0 = vpop.permute.xlu0 %947 }
 0x1d2   :  { %7767 = vst [vmem:[#allocation117_spill] sm:$0xff] %v4754_v0 }
 0x1d7   :  { %1144 = vperm.xlu1 %3798, %v4205_v8   ;;  %v4757_v60 = vpop.permute.xlu1 %854  ;;  %1148 = vperm.xlu2 %3796, %v4200_v7  }
 0x1d8   :  { %7768 = vst [vmem:[#allocation118_spill] sm:$0xff] %v4757_v60  ;;  %1200 = vperm.xlu0 %3797, %v4300_v24   ;;  %v4761_v62 = vpop.permute.xlu2 %955 }
 0x1d9   :  { %7769 = vst [vmem:[#allocation119_spill] sm:$0xff] %v4761_v62  ;;  %v4763_v58 = vpop.permute.xlu0 %959 }
 0x1da   :  { %7770 = vst [vmem:[#allocation120_spill] sm:$0xff] %v4763_v58 }
 0x1df   :  { %1156 = vperm.xlu1 %3798, %v4223_v11   ;;  %1160 = vperm.xlu2 %3796, %v4218_v10  }
 0x1e0   :  { %1212 = vperm.xlu0 %3797, %v4318_v27   ;;  %v4768_v63 = vpop.permute.xlu1 %931  ;;  %v4770_v0 = vpop.permute.xlu2 %967 }
 0x1e1   :  { %7771 = vst [vmem:[#allocation121_spill] sm:$0xff] %v4768_v63  ;;  %v4772_v57 = vpop.permute.xlu0 %971 }
 0x1e2   :  { %7772 = vst [vmem:[#allocation122_spill] sm:$0xff] %v4770_v0 }
 0x1e3   :  { %7773 = vst [vmem:[#allocation123_spill] sm:$0xff] %v4772_v57 }
 0x1e7   :  { %1168 = vperm.xlu1 %3798, %v4241_v14   ;;  %1172 = vperm.xlu2 %3796, %v4236_v13  }
 0x1e8   :  { %1224 = vperm.xlu0 %3797, %v4336_v30   ;;  %v4777_v60 = vpop.permute.xlu1 %939  ;;  %v4779_v58 = vpop.permute.xlu2 %979 }
 0x1e9   :  { %7774 = vst [vmem:[#allocation124_spill] sm:$0xff] %v4777_v60  ;;  %v4781_v62 = vpop.permute.xlu0 %983  ;;  %v4099_v60 = vmov 6  }
 0x1ea   :  { %7775 = vst [vmem:[#allocation125_spill] sm:$0xff] %v4779_v58 }
 0x1eb   :  { %7776 = vst [vmem:[#allocation126_spill] sm:$0xff] %v4781_v62 }
 0x1ef   :  { %1180 = vperm.xlu1 %3798, %v4259_v17   ;;  %1184 = vperm.xlu2 %3796, %v4254_v16  }
 0x1f0   :  { %1236 = vperm.xlu0 %3797, %v4349_v32   ;;  %v4786_v0 = vpop.permute.xlu1 %951  ;;  %v4788_v57 = vpop.permute.xlu2 %991 }
 0x1f1   :  { %7777 = vst [vmem:[#allocation127_spill] sm:$0xff] %v4786_v0  ;;  %v4790_v63 = vpop.permute.xlu0 %995 }
 0x1f2   :  { %7778 = vst [vmem:[#allocation128_spill] sm:$0xff] %v4788_v57 }
 0x1f3   :  { %7779 = vst [vmem:[#allocation129_spill] sm:$0xff] %v4790_v63 }
 0x1f7   :  { %1192 = vperm.xlu1 %3798, %v4277_v20   ;;  %1196 = vperm.xlu2 %3796, %v4272_v19  }
 0x1f8   :  { %3800 = vset.pattern.permute.xlu0 %v4099_v60  ;;  %v4794_v58 = vpop.permute.xlu1 %963  ;;  %v4796_v62 = vpop.permute.xlu2 %1003 }
 0x1f9   :  { %7780 = vst [vmem:[#allocation130_spill] sm:$0xff] %v4794_v58  ;;  %1313 = vperm.xlu0 %3800, %v4192_v6   ;;  %v4799_v59 = vpop.permute.xlu0 %1007 }
 0x1fa   :  { %7781 = vst [vmem:[#allocation131_spill] sm:$0xff] %v4796_v62 }
 0x1fb   :  { %7782 = vst [vmem:[#allocation132_spill] sm:$0xff] %v4799_v59 }
 0x1ff   :  { %1204 = vperm.xlu1 %3798, %v4295_v23   ;;  %1208 = vperm.xlu2 %3796, %v4290_v22  }
 0x200   :  { %v4803_v57 = vpop.permute.xlu1 %975  ;;  %v4805_v63 = vpop.permute.xlu2 %1015 }
 0x201   :  { %7783 = vst [vmem:[#allocation133_spill] sm:$0xff] %v4803_v57  ;;  %1333 = vperm.xlu0 %3800, %v4210_v9   ;;  %v4808_v0 = vpop.permute.xlu0 %1019 }
 0x202   :  { %7784 = vst [vmem:[#allocation134_spill] sm:$0xff] %v4805_v63 }
 0x203   :  { %7785 = vst [vmem:[#allocation135_spill] sm:$0xff] %v4808_v0 }
 0x207   :  { %1216 = vperm.xlu1 %3798, %v4313_v26   ;;  %1220 = vperm.xlu2 %3796, %v4308_v25  }
 0x208   :  { %v4812_v62 = vpop.permute.xlu1 %987  ;;  %v4814_v58 = vpop.permute.xlu2 %1027 }
 0x209   :  { %7786 = vst [vmem:[#allocation136_spill] sm:$0xff] %v4812_v62  ;;  %1345 = vperm.xlu0 %3800, %v4228_v12   ;;  %v4817_v59 = vpop.permute.xlu0 %1031 }
 0x20a   :  { %7787 = vst [vmem:[#allocation137_spill] sm:$0xff] %v4814_v58 }
 0x20b   :  { %7788 = vst [vmem:[#allocation138_spill] sm:$0xff] %v4817_v59 }
 0x20f   :  { %1228 = vperm.xlu1 %3798, %v4331_v29   ;;  %1232 = vperm.xlu2 %3796, %v4326_v28  }
 0x210   :  { %v4821_v63 = vpop.permute.xlu1 %999  ;;  %v4823_v57 = vpop.permute.xlu2 %1039 }
 0x211   :  { %7789 = vst [vmem:[#allocation139_spill] sm:$0xff] %v4821_v63  ;;  %1357 = vperm.xlu0 %3800, %v4246_v15   ;;  %v4826_v0 = vpop.permute.xlu0 %1043 }
 0x212   :  { %7790 = vst [vmem:[#allocation140_spill] sm:$0xff] %v4823_v57 }
 0x213   :  { %7791 = vst [vmem:[#allocation141_spill] sm:$0xff] %v4826_v0 }
 0x217   :  { %1240 = vperm.xlu1 %3798, %v4344_v31   ;;  %3799 = vset.pattern.permute.xlu2 %v4099_v60 }
 0x218   :  { %v4829_v58 = vpop.permute.xlu1 %1011  ;;  %1309 = vperm.xlu2 %3799, %v4174_v3  }
 0x219   :  { %7792 = vst [vmem:[#allocation142_spill] sm:$0xff] %v4829_v58  ;;  %1369 = vperm.xlu0 %3800, %v4264_v18   ;;  %v4833_v59 = vpop.permute.xlu2 %1116 }
 0x21a   :  { %7793 = vst [vmem:[#allocation143_spill] sm:$0xff] %v4833_v59  ;;  %v4835_v62 = vpop.permute.xlu0 %1120 }
 0x21b   :  { %7794 = vst [vmem:[#allocation144_spill] sm:$0xff] %v4835_v62 }
 0x21f   :  { %3801 = vset.pattern.permute.xlu1 %v4099_v60 }
 0x220   :  { %1317 = vperm.xlu1 %3801, %v4169_v2   ;;  %v4838_v57 = vpop.permute.xlu1 %1023  ;;  %1321 = vperm.xlu2 %3799, %v4187_v5  }
 0x221   :  { %7795 = vst [vmem:[#allocation145_spill] sm:$0xff] %v4838_v57  ;;  %1381 = vperm.xlu0 %3800, %v4282_v21   ;;  %v4842_v0 = vpop.permute.xlu2 %1128 }
 0x222   :  { %7796 = vst [vmem:[#allocation146_spill] sm:$0xff] %v4842_v0  ;;  %v4844_v58 = vpop.permute.xlu0 %1140 }
 0x223   :  { %7797 = vst [vmem:[#allocation147_spill] sm:$0xff] %v4844_v58 }
 0x228   :  { %1325 = vperm.xlu1 %3801, %v4164_v1   ;;  %v4847_v63 = vpop.permute.xlu1 %1035  ;;  %1329 = vperm.xlu2 %3799, %v4182_v4  }
 0x229   :  { %7798 = vst [vmem:[#allocation148_spill] sm:$0xff] %v4847_v63  ;;  %1393 = vperm.xlu0 %3800, %v4300_v24   ;;  %v4851_v60 = vpop.permute.xlu2 %1136 }
 0x22a   :  { %7799 = vst [vmem:[#allocation149_spill] sm:$0xff] %v4851_v60  ;;  %v4853_v59 = vpop.permute.xlu0 %1152 }
 0x22b   :  { %7800 = vst [vmem:[#allocation150_spill] sm:$0xff] %v4853_v59 }
 0x230   :  { %1337 = vperm.xlu1 %3801, %v4205_v8   ;;  %v4856_v57 = vpop.permute.xlu1 %1047  ;;  %1341 = vperm.xlu2 %3799, %v4200_v7  }
 0x231   :  { %7801 = vst [vmem:[#allocation151_spill] sm:$0xff] %v4856_v57  ;;  %1405 = vperm.xlu0 %3800, %v4318_v27   ;;  %v4860_v58 = vpop.permute.xlu2 %1148 }
 0x232   :  { %7802 = vst [vmem:[#allocation152_spill] sm:$0xff] %v4860_v58  ;;  %v4862_v0 = vpop.permute.xlu0 %1164 }
 0x233   :  { %7803 = vst [vmem:[#allocation153_spill] sm:$0xff] %v4862_v0 }
 0x238   :  { %1349 = vperm.xlu1 %3801, %v4223_v11   ;;  %1353 = vperm.xlu2 %3799, %v4218_v10  }
 0x239   :  { %1417 = vperm.xlu0 %3800, %v4336_v30   ;;  %v4867_v63 = vpop.permute.xlu1 %1124  ;;  %v4869_v59 = vpop.permute.xlu2 %1160 }
 0x23a   :  { %7804 = vst [vmem:[#allocation154_spill] sm:$0xff] %v4867_v63  ;;  %v4871_v60 = vpop.permute.xlu0 %1176  ;;  %v4100_v63 = vmov 7  }
 0x23b   :  { %7805 = vst [vmem:[#allocation155_spill] sm:$0xff] %v4869_v59 }
 0x23c   :  { %7806 = vst [vmem:[#allocation156_spill] sm:$0xff] %v4871_v60 }
 0x240   :  { %1361 = vperm.xlu1 %3801, %v4241_v14   ;;  %1365 = vperm.xlu2 %3799, %v4236_v13  }
 0x241   :  { %1429 = vperm.xlu0 %3800, %v4349_v32   ;;  %v4876_v57 = vpop.permute.xlu1 %1132  ;;  %v4878_v0 = vpop.permute.xlu2 %1172 }
 0x242   :  { %7807 = vst [vmem:[#allocation157_spill] sm:$0xff] %v4876_v57  ;;  %v4880_v58 = vpop.permute.xlu0 %1188 }
 0x243   :  { %7808 = vst [vmem:[#allocation158_spill] sm:$0xff] %v4878_v0 }
 0x244   :  { %7809 = vst [vmem:[#allocation159_spill] sm:$0xff] %v4880_v58 }
 0x248   :  { %1373 = vperm.xlu1 %3801, %v4259_v17   ;;  %1377 = vperm.xlu2 %3799, %v4254_v16  }
 0x249   :  { %3803 = vset.pattern.permute.xlu0 %v4100_v63  ;;  %v4884_v59 = vpop.permute.xlu1 %1144  ;;  %v4886_v60 = vpop.permute.xlu2 %1184 }
 0x24a   :  { %7810 = vst [vmem:[#allocation160_spill] sm:$0xff] %v4884_v59  ;;  %1506 = vperm.xlu0 %3803, %v4192_v6   ;;  %v4889_v62 = vpop.permute.xlu0 %1200 }
 0x24b   :  { %7811 = vst [vmem:[#allocation161_spill] sm:$0xff] %v4886_v60 }
 0x24c   :  { %7812 = vst [vmem:[#allocation162_spill] sm:$0xff] %v4889_v62 }
 0x250   :  { %1385 = vperm.xlu1 %3801, %v4277_v20   ;;  %1389 = vperm.xlu2 %3799, %v4272_v19  }
 0x251   :  { %v4893_v0 = vpop.permute.xlu1 %1156  ;;  %v4895_v58 = vpop.permute.xlu2 %1196 }
 0x252   :  { %7813 = vst [vmem:[#allocation163_spill] sm:$0xff] %v4893_v0  ;;  %1526 = vperm.xlu0 %3803, %v4210_v9   ;;  %v4898_v57 = vpop.permute.xlu0 %1212 }
 0x253   :  { %7814 = vst [vmem:[#allocation164_spill] sm:$0xff] %v4895_v58 }
 0x254   :  { %7815 = vst [vmem:[#allocation165_spill] sm:$0xff] %v4898_v57 }
 0x258   :  { %1397 = vperm.xlu1 %3801, %v4295_v23   ;;  %1401 = vperm.xlu2 %3799, %v4290_v22  }
 0x259   :  { %v4902_v60 = vpop.permute.xlu1 %1168  ;;  %v4904_v59 = vpop.permute.xlu2 %1208 }
 0x25a   :  { %7816 = vst [vmem:[#allocation166_spill] sm:$0xff] %v4902_v60  ;;  %1538 = vperm.xlu0 %3803, %v4228_v12   ;;  %v4907_v62 = vpop.permute.xlu0 %1224 }
 0x25b   :  { %7817 = vst [vmem:[#allocation167_spill] sm:$0xff] %v4904_v59 }
 0x25c   :  { %7818 = vst [vmem:[#allocation168_spill] sm:$0xff] %v4907_v62 }
 0x260   :  { %1409 = vperm.xlu1 %3801, %v4313_v26   ;;  %1413 = vperm.xlu2 %3799, %v4308_v25  }
 0x261   :  { %v4911_v58 = vpop.permute.xlu1 %1180  ;;  %v4913_v0 = vpop.permute.xlu2 %1220 }
 0x262   :  { %7819 = vst [vmem:[#allocation169_spill] sm:$0xff] %v4911_v58  ;;  %1550 = vperm.xlu0 %3803, %v4246_v15   ;;  %v4916_v57 = vpop.permute.xlu0 %1236 }
 0x263   :  { %7820 = vst [vmem:[#allocation170_spill] sm:$0xff] %v4913_v0 }
 0x264   :  { %7821 = vst [vmem:[#allocation171_spill] sm:$0xff] %v4916_v57 }
 0x268   :  { %1421 = vperm.xlu1 %3801, %v4331_v29   ;;  %1425 = vperm.xlu2 %3799, %v4326_v28  }
 0x269   :  { %v4920_v59 = vpop.permute.xlu1 %1192  ;;  %v4922_v60 = vpop.permute.xlu2 %1232 }
 0x26a   :  { %7822 = vst [vmem:[#allocation172_spill] sm:$0xff] %v4920_v59  ;;  %1562 = vperm.xlu0 %3803, %v4264_v18  }
 0x26b   :  { %7823 = vst [vmem:[#allocation173_spill] sm:$0xff] %v4922_v60  ;;  %v4925_v62 = vpop.permute.xlu0 %1313 }
 0x270   :  { %1433 = vperm.xlu1 %3801, %v4344_v31   ;;  %3802 = vset.pattern.permute.xlu2 %v4100_v63 }
 0x271   :  { %v4928_v0 = vpop.permute.xlu1 %1204  ;;  %1502 = vperm.xlu2 %3802, %v4174_v3  }
 0x272   :  { %7824 = vst [vmem:[#allocation174_spill] sm:$0xff] %v4928_v0  ;;  %1574 = vperm.xlu0 %3803, %v4282_v21   ;;  %v4932_v57 = vpop.permute.xlu2 %1309 }
 0x273   :  { %7825 = vst [vmem:[#allocation175_spill] sm:$0xff] %v4932_v57  ;;  %v4934_v58 = vpop.permute.xlu0 %1333 }
 0x274   :  { %7826 = vst [vmem:[#allocation176_spill] sm:$0xff] %v4934_v58 }
 0x278   :  { %3804 = vset.pattern.permute.xlu1 %v4100_v63 }
 0x279   :  { %1510 = vperm.xlu1 %3804, %v4169_v2   ;;  %v4937_v60 = vpop.permute.xlu1 %1216  ;;  %1514 = vperm.xlu2 %3802, %v4187_v5  }
 0x27a   :  { %7827 = vst [vmem:[#allocation177_spill] sm:$0xff] %v4937_v60  ;;  %1586 = vperm.xlu0 %3803, %v4300_v24   ;;  %v4941_v59 = vpop.permute.xlu2 %1321 }
 0x27b   :  { %7828 = vst [vmem:[#allocation178_spill] sm:$0xff] %v4941_v59  ;;  %v4943_v0 = vpop.permute.xlu0 %1345 }
 0x27c   :  { %7829 = vst [vmem:[#allocation179_spill] sm:$0xff] %v4943_v0 }
 0x281   :  { %1518 = vperm.xlu1 %3804, %v4164_v1   ;;  %v4946_v3 = vpop.permute.xlu1 %1228  ;;  %1522 = vperm.xlu2 %3802, %v4182_v4  }
 0x282   :  { %7830 = vst [vmem:[#allocation180_spill] sm:$0xff] %v4946_v3  ;;  %1598 = vperm.xlu0 %3803, %v4318_v27   ;;  %v4950_v63 = vpop.permute.xlu2 %1329 }
 0x283   :  { %7831 = vst [vmem:[#allocation181_spill] sm:$0xff] %v4950_v63  ;;  %v4952_v2 = vpop.permute.xlu0 %1357  ;;  %v7899_v63 = vmov 9  }
 0x284   :  { %7832 = vst [vmem:[#allocation182_spill] sm:$0xff] %v4952_v2  ;;  %v5277_v2 = vld [vmem:[%s7606_s1 + $0xf8] sm:$0xff] }
 0x285   :  { %7898 = vst [vmem:[#allocation248_spill] sm:$0xff] %v5277_v2 }
 0x289   :  { %1530 = vperm.xlu1 %3804, %v4205_v8   ;;  %v4955_v5 = vpop.permute.xlu1 %1240  ;;  %1534 = vperm.xlu2 %3802, %v4200_v7   ;;  %v4101_v7 = vmov 8  }
 0x28a   :  { %7833 = vst [vmem:[#allocation183_spill] sm:$0xff] %v4955_v5  ;;  %1610 = vperm.xlu0 %3803, %v4336_v30   ;;  %v4959_v24 = vpop.permute.xlu2 %1341 }
 0x28b   :  { %7834 = vst [vmem:[#allocation184_spill] sm:$0xff] %v4959_v24  ;;  %v4961_v1 = vpop.permute.xlu0 %1369 }
 0x28c   :  { %7835 = vst [vmem:[#allocation185_spill] sm:$0xff] %v4961_v1 }
 0x291   :  { %1542 = vperm.xlu1 %3804, %v4223_v11   ;;  %1546 = vperm.xlu2 %3802, %v4218_v10  }
 0x292   :  { %1622 = vperm.xlu0 %3803, %v4349_v32   ;;  %v4966_v4 = vpop.permute.xlu1 %1317  ;;  %v4968_v27 = vpop.permute.xlu2 %1353 }
 0x293   :  { %7836 = vst [vmem:[#allocation186_spill] sm:$0xff] %v4966_v4  ;;  %v4970_v8 = vpop.permute.xlu0 %1381  ;;  %v5235_v4 = vld [vmem:[%s7606_s1 + $0xc8] sm:$0xff] }
 0x294   :  { %7837 = vst [vmem:[#allocation187_spill] sm:$0xff] %v4968_v27 }
 0x295   :  { %7838 = vst [vmem:[#allocation188_spill] sm:$0xff] %v4970_v8  ;;  %v5214_v8 = vld [vmem:[%s7606_s1 + $0xb0] sm:$0xff] }
 0x296   :  { %7883 = vst [vmem:[#allocation233_spill] sm:$0xff] %v5214_v8 }
 0x297   :  { %7888 = vst [vmem:[#allocation238_spill] sm:$0xff] %v5235_v4 }
 0x299   :  { %1554 = vperm.xlu1 %3804, %v4241_v14   ;;  %1558 = vperm.xlu2 %3802, %v4236_v13  }
 0x29a   :  { %3806 = vset.pattern.permute.xlu0 %v4101_v7  ;;  %v4974_v30 = vpop.permute.xlu1 %1325  ;;  %v4976_v5 = vpop.permute.xlu2 %1365 }
 0x29b   :  { %7839 = vst [vmem:[#allocation189_spill] sm:$0xff] %v4974_v30  ;;  %1699 = vperm.xlu0 %3806, %v4192_v6   ;;  %v4979_v10 = vpop.permute.xlu0 %1393 }
 0x29c   :  { %7840 = vst [vmem:[#allocation190_spill] sm:$0xff] %v4976_v5  ;;  %v5193_v5 = vld [vmem:[%s7606_s1 + $0x98] sm:$0xff] }
 0x29d   :  { %7841 = vst [vmem:[#allocation191_spill] sm:$0xff] %v4979_v10 }
 0x29e   :  { %7878 = vst [vmem:[#allocation228_spill] sm:$0xff] %v5193_v5 }
 0x2a1   :  { %1566 = vperm.xlu1 %3804, %v4259_v17   ;;  %1570 = vperm.xlu2 %3802, %v4254_v16  }
 0x2a2   :  { %v4983_v11 = vpop.permute.xlu1 %1337  ;;  %v4985_v32 = vpop.permute.xlu2 %1377 }
 0x2a3   :  { %7842 = vst [vmem:[#allocation192_spill] sm:$0xff] %v4983_v11  ;;  %1719 = vperm.xlu0 %3806, %v4210_v9   ;;  %v4988_v13 = vpop.permute.xlu0 %1405  ;;  %v5172_v11 = vld [vmem:[%s7606_s1 + $0x80] sm:$0xff] }
 0x2a4   :  { %7843 = vst [vmem:[#allocation193_spill] sm:$0xff] %v4985_v32 }
 0x2a5   :  { %7844 = vst [vmem:[#allocation194_spill] sm:$0xff] %v4988_v13  ;;  %v3992_v13 = vld [vmem:[%s7606_s1 + $0x8] sm:$0xff] }
 0x2a9   :  { %1578 = vperm.xlu1 %3804, %v4277_v20   ;;  %1582 = vperm.xlu2 %3802, %v4272_v19  }
 0x2aa   :  { %v4992_v14 = vpop.permute.xlu1 %1349  ;;  %v4994_v6 = vpop.permute.xlu2 %1389 }
 0x2ab   :  { %7845 = vst [vmem:[#allocation195_spill] sm:$0xff] %v4992_v14  ;;  %1731 = vperm.xlu0 %3806, %v4228_v12   ;;  %v4997_v17 = vpop.permute.xlu0 %1417  ;;  %v3607_v12 = vld [vmem:[%s7610_s5 + $0x8] sm:$0xff]  ;;  %v7617_v14 = vmov 9  }
 0x2ac   :  { %7846 = vst [vmem:[#allocation196_spill] sm:$0xff] %v4994_v6  ;;  %77 = vmatpush.bf16.msra.mxu0 %v3607_v12  ;;  %v5135_v6 = vld [vmem:[%s7606_s1 + $0x58] sm:$0xff] }
 0x2ad   :  { %7847 = vst [vmem:[#allocation197_spill] sm:$0xff] %v4997_v17 }
 0x2b1   :  { %1590 = vperm.xlu1 %3804, %v4295_v23   ;;  %1594 = vperm.xlu2 %3802, %v4290_v22  }
 0x2b2   :  { %v5001_v16 = vpop.permute.xlu1 %1361  ;;  %v5003_v9 = vpop.permute.xlu2 %1401 }
 0x2b3   :  { %7848 = vst [vmem:[#allocation198_spill] sm:$0xff] %v5001_v16  ;;  %1743 = vperm.xlu0 %3806, %v4246_v15   ;;  %v5006_v20 = vpop.permute.xlu0 %1429  ;;  %v3606_v15 = vld [vmem:[%s7610_s5] sm:$0xff] }
 0x2b4   :  { %7849 = vst [vmem:[#allocation199_spill] sm:$0xff] %v5003_v9  ;;  %78 = vmatpush.bf16.msra.mxu0 %v3606_v15  ;;  %v5047_v15 = vld [vmem:[%s7606_s1 + $0xa8] sm:$0xff]  ;;  %v5113_v9 = vld [vmem:[%s7606_s1 + $0x40] sm:$0xff] }
 0x2b5   :  { %7850 = vst [vmem:[#allocation200_spill] sm:$0xff] %v5006_v20  ;;  %v5065_v20 = vld [vmem:[%s7606_s1 + $0x18] sm:$0xff] }
 0x2b9   :  { %1602 = vperm.xlu1 %3804, %v4313_v26   ;;  %1606 = vperm.xlu2 %3802, %v4308_v25   ;;  %v50_v26 = vld [vmem:[%s7605_s0] sm:$0x1] }
 0x2ba   :  { %v5010_v19 = vpop.permute.xlu1 %1373  ;;  %v5015_v23 = vpop.permute.xlu2 %1413  ;;  %3605 = vmatmul.msk.bf16.vlgmr.msra.gmra.mxu0 %vm67_vm0, %v50_v26  ;;  %v5057_v26 = vld [vmem:[%s7606_s1 + $0x10] sm:$0xff]  ;;  %vm7657_vm0 = vcmask 1041409  }
 0x2bb   :  { %7851 = vst [vmem:[#allocation201_spill] sm:$0xff] %v5010_v19  ;;  %1755 = vperm.xlu0 %3806, %v4264_v18  }
 0x2bc   :  { %7852 = vst [vmem:[#allocation202_spill] sm:$0xff] %v5015_v23  ;;  %v5018_v22 = vpop.permute.xlu0 %1506 }
 0x2bd   :  { %7853 = vst [vmem:[#allocation203_spill] sm:$0xff] %v5018_v22 }
 0x2c1   :  { %1614 = vperm.xlu1 %3804, %v4331_v29   ;;  %1618 = vperm.xlu2 %3802, %v4326_v28   ;;  %v5041_v28 = vld [vmem:[%s7606_s1] sm:$0xff] }
 0x2c2   :  { %v5025_v25 = vpop.permute.xlu1 %1385  ;;  %v5030_v18 = vpop.permute.xlu2 %1425 }
 0x2c3   :  { %7854 = vst [vmem:[#allocation204_spill] sm:$0xff] %v5025_v25  ;;  %1767 = vperm.xlu0 %3806, %v4282_v21  }
 0x2c4   :  { %7855 = vst [vmem:[#allocation205_spill] sm:$0xff] %v5030_v18  ;;  %v5033_v12 = vpop.permute.xlu0 %1526  ;;  %v5089_v18 = vld [vmem:[%s7606_s1 + $0x28] sm:$0xff] }
 0x2c5   :  { %7856 = vst [vmem:[#allocation206_spill] sm:$0xff] %v5033_v12 }
 0x2c9   :  { %1626 = vperm.xlu1 %3804, %v4344_v31   ;;  %3805 = vset.pattern.permute.xlu2 %v4101_v7 }
 0x2ca   :  { %v5036_v29 = vpop.permute.xlu1 %1397  ;;  %1695 = vperm.xlu2 %3805, %v5041_v28  }
 0x2cb   :  { %7857 = vst [vmem:[#allocation207_spill] sm:$0xff] %v5036_v29  ;;  %1779 = vperm.xlu0 %3806, %v5047_v15   ;;  %v5050_v21 = vpop.permute.xlu2 %1502 }
 0x2cc   :  { %7858 = vst [vmem:[#allocation208_spill] sm:$0xff] %v5050_v21  ;;  %v5052_v31 = vpop.permute.xlu0 %1538 }
 0x2cd   :  { %7859 = vst [vmem:[#allocation209_spill] sm:$0xff] %v5052_v31 }
 0x2d1   :  { %3807 = vset.pattern.permute.xlu1 %v4101_v7  ;;  %v5071_v7 = vld [vmem:[%s7606_s1 + $0xc0] sm:$0xff] }
 0x2d2   :  { %1703 = vperm.xlu1 %3807, %v5057_v26   ;;  %v5060_v3 = vpop.permute.xlu1 %1409  ;;  %1707 = vperm.xlu2 %3805, %v5065_v20  }
 0x2d3   :  { %7860 = vst [vmem:[#allocation210_spill] sm:$0xff] %v5060_v3  ;;  %1791 = vperm.xlu0 %3806, %v5071_v7   ;;  %v5074_v29 = vpop.permute.xlu2 %1514  ;;  %v5081_v3 = vld [vmem:[%s7606_s1 + $0x20] sm:$0xff] }
 0x2d4   :  { %7861 = vst [vmem:[#allocation211_spill] sm:$0xff] %v5074_v29  ;;  %v5076_v31 = vpop.permute.xlu0 %1550  ;;  %v5256_v29 = vld [vmem:[%s7606_s1 + $0xe0] sm:$0xff] }
 0x2d5   :  { %7862 = vst [vmem:[#allocation212_spill] sm:$0xff] %v5076_v31  ;;  %v5095_v31 = vld [vmem:[%s7606_s1 + $0xd8] sm:$0xff] }
 0x2d6   :  { %7893 = vst [vmem:[#allocation243_spill] sm:$0xff] %v5256_v29 }
 0x2da   :  { %1711 = vperm.xlu1 %3807, %v5081_v3   ;;  %v5084_v12 = vpop.permute.xlu1 %1421  ;;  %1715 = vperm.xlu2 %3805, %v5089_v18  }
 0x2db   :  { %7863 = vst [vmem:[#allocation213_spill] sm:$0xff] %v5084_v12  ;;  %1803 = vperm.xlu0 %3806, %v5095_v31   ;;  %v5098_v25 = vpop.permute.xlu2 %1522  ;;  %v5105_v12 = vld [vmem:[%s7606_s1 + $0x38] sm:$0xff] }
 0x2dc   :  { %7864 = vst [vmem:[#allocation214_spill] sm:$0xff] %v5098_v25  ;;  %v5100_v23 = vpop.permute.xlu0 %1562  ;;  %v5151_v25 = vld [vmem:[%s7606_s1 + $0x68] sm:$0xff] }
 0x2dd   :  { %7865 = vst [vmem:[#allocation215_spill] sm:$0xff] %v5100_v23  ;;  %v5119_v23 = vld [vmem:[%s7606_s1 + $0xf0] sm:$0xff] }
 0x2e2   :  { %1723 = vperm.xlu1 %3807, %v5105_v12   ;;  %v5108_v19 = vpop.permute.xlu1 %1433  ;;  %1727 = vperm.xlu2 %3805, %v5113_v9  }
 0x2e3   :  { %7866 = vst [vmem:[#allocation216_spill] sm:$0xff] %v5108_v19  ;;  %1815 = vperm.xlu0 %3806, %v5119_v23   ;;  %v5122_v16 = vpop.permute.xlu2 %1534  ;;  %v5129_v19 = vld [vmem:[%s7606_s1 + $0x50] sm:$0xff] }
 0x2e4   :  { %7867 = vst [vmem:[#allocation217_spill] sm:$0xff] %v5122_v16  ;;  %v5124_v17 = vpop.permute.xlu0 %1574 }
 0x2e5   :  { %7868 = vst [vmem:[#allocation218_spill] sm:$0xff] %v5124_v17 }
 0x2ea   :  { %1735 = vperm.xlu1 %3807, %v5129_v19   ;;  %1739 = vperm.xlu2 %3805, %v5135_v6  }
 0x2eb   :  { %3809 = vset.pattern.permute.xlu0 %v7617_v14  ;;  %v5139_v16 = vpop.permute.xlu1 %1510  ;;  %v5141_v17 = vpop.permute.xlu2 %1546  ;;  %v5157_v14 = vld [vmem:[%s7606_s1 + $0x70] sm:$0xff] }
 0x2ec   :  { %7869 = vst [vmem:[#allocation219_spill] sm:$0xff] %v5139_v16  ;;  %1892 = vperm.xlu0 %3809, %v3992_v13   ;;  %v5146_v32 = vpop.permute.xlu0 %1586  ;;  %v3995_v13 = vld [vmem:[%s7606_s1 + $0x30] sm:$0xff] }
 0x2ed   :  { %7870 = vst [vmem:[#allocation220_spill] sm:$0xff] %v5141_v17 }
 0x2ee   :  { %7871 = vst [vmem:[#allocation221_spill] sm:$0xff] %v5146_v32 }
 0x2f2   :  { %1747 = vperm.xlu1 %3807, %v5151_v25   ;;  %1751 = vperm.xlu2 %3805, %v5157_v14  }
 0x2f3   :  { %v5160_v17 = vpop.permute.xlu1 %1518  ;;  %v5162_v16 = vpop.permute.xlu2 %1558 }
 0x2f4   :  { %7872 = vst [vmem:[#allocation222_spill] sm:$0xff] %v5160_v17  ;;  %1912 = vperm.xlu0 %3809, %v3995_v13   ;;  %v5167_v32 = vpop.permute.xlu0 %1598  ;;  %v5178_v17 = vld [vmem:[%s7606_s1 + $0x88] sm:$0xff] }
 0x2f5   :  { %7873 = vst [vmem:[#allocation223_spill] sm:$0xff] %v5162_v16  ;;  %v3998_v13 = vld [vmem:[%s7606_s1 + $0x48] sm:$0xff] }
 0x2f6   :  { %7874 = vst [vmem:[#allocation224_spill] sm:$0xff] %v5167_v32 }
 0x2fa   :  { %1759 = vperm.xlu1 %3807, %v5172_v11   ;;  %1763 = vperm.xlu2 %3805, %v5178_v17  }
 0x2fb   :  { %v5181_v16 = vpop.permute.xlu1 %1530  ;;  %v5183_v10 = vpop.permute.xlu2 %1570 }
 0x2fc   :  { %7875 = vst [vmem:[#allocation225_spill] sm:$0xff] %v5181_v16  ;;  %1924 = vperm.xlu0 %3809, %v3998_v13   ;;  %v5188_v32 = vpop.permute.xlu0 %1610  ;;  %v5199_v16 = vld [vmem:[%s7606_s1 + $0xa0] sm:$0xff] }
 0x2fd   :  { %7876 = vst [vmem:[#allocation226_spill] sm:$0xff] %v5183_v10  ;;  %v4001_v13 = vld [vmem:[%s7606_s1 + $0x60] sm:$0xff] }
 0x2fe   :  { %7877 = vst [vmem:[#allocation227_spill] sm:$0xff] %v5188_v32 }
 0x2ff   :  { %7879 = vst [vmem:[#allocation229_spill] sm:$0xff] %v5199_v16 }
 0x302   :  { %1771 = vperm.xlu1 %3807, %v5193_v5   ;;  %1775 = vperm.xlu2 %3805, %v5199_v16  }
 0x303   :  { %v5202_v10 = vpop.permute.xlu1 %1542  ;;  %v5204_v30 = vpop.permute.xlu2 %1582 }
 0x304   :  { %7880 = vst [vmem:[#allocation230_spill] sm:$0xff] %v5202_v10  ;;  %1936 = vperm.xlu0 %3809, %v4001_v13   ;;  %v5209_v32 = vpop.permute.xlu0 %1622  ;;  %v5220_v10 = vld [vmem:[%s7606_s1 + $0xb8] sm:$0xff] }
 0x305   :  { %7881 = vst [vmem:[#allocation231_spill] sm:$0xff] %v5204_v30  ;;  %v4004_v13 = vld [vmem:[%s7606_s1 + $0x78] sm:$0xff] }
 0x306   :  { %7882 = vst [vmem:[#allocation232_spill] sm:$0xff] %v5209_v32 }
 0x307   :  { %7884 = vst [vmem:[#allocation234_spill] sm:$0xff] %v5220_v10 }
 0x30a   :  { %1783 = vperm.xlu1 %3807, %v5214_v8   ;;  %1787 = vperm.xlu2 %3805, %v5220_v10   ;;  %v7918_v10 = vld [vmem:[#allocation27_spill] sm:$0xff]  ;;  %v7920_v8 = vld [vmem:[#allocation17_spill] sm:$0xff] }
 0x30b   :  { %v5223_v30 = vpop.permute.xlu1 %1554  ;;  %v5225_v27 = vpop.permute.xlu2 %1594 }
 0x30c   :  { %7885 = vst [vmem:[#allocation235_spill] sm:$0xff] %v5223_v30  ;;  %1948 = vperm.xlu0 %3809, %v4004_v13   ;;  %v5241_v30 = vld [vmem:[%s7606_s1 + $0xd0] sm:$0xff] }
 0x30d   :  { %7886 = vst [vmem:[#allocation236_spill] sm:$0xff] %v5225_v27  ;;  %v5230_v32 = vpop.permute.xlu0 %1699  ;;  %v4007_v13 = vld [vmem:[%s7606_s1 + $0x90] sm:$0xff] }
 0x30e   :  { %7887 = vst [vmem:[#allocation237_spill] sm:$0xff] %v5230_v32 }
 0x30f   :  { %7889 = vst [vmem:[#allocation239_spill] sm:$0xff] %v5241_v30 }
 0x312   :  { %1795 = vperm.xlu1 %3807, %v5235_v4   ;;  %1799 = vperm.xlu2 %3805, %v5241_v30   ;;  %v7915_v30 = vld [vmem:[#allocation24_spill] sm:$0xff]  ;;  %v7917_v4 = vld [vmem:[#allocation26_spill] sm:$0xff] }
 0x313   :  { %v5244_v27 = vpop.permute.xlu1 %1566  ;;  %v5246_v1 = vpop.permute.xlu2 %1606 }
 0x314   :  { %7890 = vst [vmem:[#allocation240_spill] sm:$0xff] %v5244_v27  ;;  %1960 = vperm.xlu0 %3809, %v4007_v13   ;;  %v5262_v27 = vld [vmem:[%s7606_s1 + $0xe8] sm:$0xff] }
 0x315   :  { %7891 = vst [vmem:[#allocation241_spill] sm:$0xff] %v5246_v1  ;;  %v5251_v24 = vpop.permute.xlu0 %1719 }
 0x316   :  { %7892 = vst [vmem:[#allocation242_spill] sm:$0xff] %v5251_v24  ;;  %v5272_v24 = vld [vmem:[#allocation2] sm:$0xff] }
 0x317   :  { %7894 = vst [vmem:[#allocation244_spill] sm:$0xff] %v5262_v27  ;;  %v5294_v59 = vperm.slane %v5272_v24, 1 }
 0x31a   :  { %1807 = vperm.xlu1 %3807, %v5256_v29   ;;  %1811 = vperm.xlu2 %3805, %v5262_v27  }
 0x31b   :  { %v5265_v1 = vpop.permute.xlu1 %1578  ;;  %v5267_v60 = vpop.permute.xlu2 %1618 }
 0x31c   :  { %7895 = vst [vmem:[#allocation245_spill] sm:$0xff] %v5265_v1  ;;  %1972 = vperm.xlu0 %3809, %v5047_v15   ;;  %v278_v1 = vperm.slane %v5272_v24, 0 }
 0x31d   :  { %7896 = vst [vmem:[#allocation246_spill] sm:$0xff] %v5267_v60  ;;  %v5270_v13 = vpop.permute.xlu0 %1731 }
 0x31e   :  { %7897 = vst [vmem:[#allocation247_spill] sm:$0xff] %v5270_v13  ;;  %v5291_v13 = vmul.f32 %v278_v1, %v4357_v34  ;;  %v284_v58 = vmul.f32 %v278_v1, %v4362_v35  ;;  %v290_v21 = vmul.f32 %v278_v1, %v4372_v37  ;;  %v280_v34 = vmul.f32 %v278_v1, %v4385_v42 }
 0x31f   :  { %v5305_v57 = vmul.f32 %v278_v1, %v4390_v43  ;;  %v285_v35 = vmul.f32 %v278_v1, %v4394_v45  ;;  %v5314_v37 = vmul.f32 %v278_v1, %v4401_v47  ;;  %v5326_v42 = vmul.f32 %v278_v1, %v4410_v50 }
 0x320   :  { %v5329_v43 = vmul.f32 %v278_v1, %v4412_v51  ;;  %v5336_v45 = vmul.f32 %v278_v1, %v4417_v52  ;;  %v5342_v47 = vmul.f32 %v278_v1, %v4421_v54  ;;  %v5352_v51 = vmul.f32 %v278_v1, %v4428_v56  ;;  %v7907_v52 = vld [vmem:[#allocation12_spill] sm:$0xff] }
 0x322   :  { %1819 = vperm.xlu1 %3807, %v5277_v2   ;;  %3808 = vset.pattern.permute.xlu2 %v7899_v63  ;;  %v286_v2 = vmul.f32 %v278_v1, %v4392_v44  ;;  %v475_v44 = vmul.f32 %v5294_v59, %v4448_v33 }
 0x323   :  { %v5281_v0 = vpop.permute.xlu1 %1590  ;;  %1888 = vperm.xlu2 %3808, %v5041_v28   ;;  %v281_v28 = vmul.f32 %v278_v1, %v4374_v38  ;;  %v288_v38 = vmul.f32 %v278_v1, %v4403_v48  ;;  %v5345_v48 = vmul.f32 %v278_v1, %v4426_v55 }
 0x324   :  { %7900 = vst [vmem:[#allocation249_spill] sm:$0xff] %v5281_v0  ;;  %1984 = vperm.xlu0 %3809, %v5071_v7   ;;  %v5286_v15 = vpop.permute.xlu2 %1695  ;;  %v287_v0 = vmul.f32 %v278_v1, %v4367_v36  ;;  %v279_v7 = vmul.f32 %v278_v1, %v4376_v39  ;;  %v5310_v36 = vmul.f32 %v278_v1, %v4399_v46 }
 0x325   :  { %7901 = vst [vmem:[#allocation250_spill] sm:$0xff] %v5286_v15  ;;  %v5288_v60 = vpop.permute.xlu0 %1743  ;;  %v293_v15 = vmul.f32 %v278_v1, %v4381_v40  ;;  %v5318_v39 = vmul.f32 %v278_v1, %v4408_v49  ;;  %v472_v40 = vmul.f32 %v5294_v59, %v4439_v61  ;;  %v5339_v46 = vmul.f32 %v278_v1, %v4419_v53  ;;  %v7906_v61 = vld [vmem:[#allocation11_spill] sm:$0xff]  ;;  %v7908_v53 = vld [vmem:[#allocation18_spill] sm:$0xff] }
 0x326   :  { %7902 = vst [vmem:[#allocation251_spill] sm:$0xff] %v5288_v60  ;;  %v282_v60 = vmul.f32 %v278_v1, %v4383_v41  ;;  %v5355_v33 = vmul.f32 %v278_v1, %v7906_v61  ;;  %v477_v54 = vmul.f32 %v5294_v59, %v7908_v53  ;;  %v7914_v53 = vld [vmem:[#allocation23_spill] sm:$0xff] }
 0x327   :  { %v5365_v55 = vadd.f32 %v472_v40, %v279_v7  ;;  %v473_v7 = vmul.f32 %v5294_v59, %v7915_v30  ;;  %v7916_v40 = vld [vmem:[#allocation25_spill] sm:$0xff]  ;;  %v7923_v30 = vld [vmem:[#allocation20_spill] sm:$0xff] }
 0x328   :  { %v5375_v27 = vadd.f32 %v475_v44, %v282_v60  ;;  %v7919_v60 = vld [vmem:[#allocation16_spill] sm:$0xff]  ;;  %v5395_v16 = vadd.f32 %v477_v54, %v284_v58  ;;  %v5401_v32 = vmul.f32 %v278_v1, %v7923_v30 }
 0x329   :  { %v5390_v44 = vmul.f32 %v278_v1, %v7919_v60 }
 0x32a   :  { %3810 = vset.pattern.permute.xlu1 %v7899_v63  ;;  %v5358_v63 = vmul.f32 %v278_v1, %v7907_v52  ;;  %v7913_v52 = vld [vmem:[#allocation22_spill] sm:$0xff] }
 0x32b   :  { %1896 = vperm.xlu1 %3810, %v5057_v26   ;;  %v5323_v41 = vpop.permute.xlu1 %1602  ;;  %1900 = vperm.xlu2 %3808, %v5065_v20   ;;  %v7909_v20 = vld [vmem:[#allocation13_spill] sm:$0xff]  ;;  %v7910_v26 = vld [vmem:[#allocation14_spill] sm:$0xff]  ;;  %v474_v29 = vmul.f32 %v5294_v59, %v7913_v52  ;;  %v5393_v52 = vmul.f32 %v278_v1, %v7920_v8 }
 0x32c   :  { %7903 = vst [vmem:[#allocation252_spill] sm:$0xff] %v5323_v41  ;;  %1996 = vperm.xlu0 %3809, %v5095_v31   ;;  %v5347_v49 = vpop.permute.xlu2 %1707  ;;  %v5363_v31 = vmul.f32 %v278_v1, %v7909_v20  ;;  %v5368_v41 = vmul.f32 %v278_v1, %v7910_v26  ;;  %v483_v20 = vmul.f32 %v5294_v59, %v7914_v53  ;;  %v7921_v53 = vld [vmem:[#allocation19_spill] sm:$0xff] }
 0x32d   :  { %7904 = vst [vmem:[#allocation253_spill] sm:$0xff] %v5347_v49  ;;  %v5349_v50 = vpop.permute.xlu0 %1755  ;;  %v7912_v49 = vld [vmem:[#allocation15_spill] sm:$0xff]  ;;  %v476_v26 = vmul.f32 %v5294_v59, %v7916_v40  ;;  %v5398_v5 = vmul.f32 %v278_v1, %v7921_v53  ;;  %v5412_v58 = vadd.f32 %v474_v29, %v281_v28  ;;  %v7927_v53 = vld [vmem:[#allocation30_spill] sm:$0xff] }
 0x32e   :  { %7905 = vst [vmem:[#allocation254_spill] sm:$0xff] %v5349_v50  ;;  %v7911_v50 = vld [vmem:[#allocation21_spill] sm:$0xff]  ;;  %v5373_v61 = vmul.f32 %v278_v1, %v7912_v49  ;;  %v478_v49 = vmul.f32 %v5294_v59, %v7918_v10  ;;  %v5414_v54 = vadd.f32 %v483_v20, %v290_v21  ;;  %v481_v1 = vmul.f32 %v5294_v59, %v7927_v53  ;;  %v7930_v28 = vld [vmem:[#allocation31_spill] sm:$0xff]  ;;  %v7936_v53 = vld [vmem:[#allocation36_spill] sm:$0xff] }
 0x32f   :  { %v480_v56 = vmul.f32 %v5294_v59, %v7911_v50  ;;  %v486_v50 = vmul.f32 %v5294_v59, %v7917_v4  ;;  %7922 = vst [vmem:[#allocation11_spill] sm:$0xff] %v5398_v5  ;;  %v7924_v4 = vld [vmem:[#allocation28_spill] sm:$0xff]  ;;  %v7925_v10 = vld [vmem:[#allocation29_spill] sm:$0xff]  ;;  %v482_v20 = vmul.f32 %v5294_v59, %v7930_v28  ;;  %v487_v28 = vmul.f32 %v5294_v59, %v7936_v53 }
 0x330   :  { %v479_v22 = vmul.f32 %v5294_v59, %v7924_v4  ;;  %v489_v60 = vmul.f32 %v5294_v59, %v7925_v10  ;;  %v7931_v4 = vld [vmem:[#allocation32_spill] sm:$0xff]  ;;  %v5451_v10 = vadd.f32 %v481_v1, %v288_v38  ;;  %v7942_v38 = vld [vmem:[#allocation42_spill] sm:$0xff] }
 0x331   :  { %v5403_v40 = vadd.f32 %v480_v56, %v287_v0  ;;  %v5420_v0 = vadd.f32 %v473_v7, %v280_v34  ;;  %v5423_v56 = vadd.f32 %v476_v26, %v5291_v13  ;;  %v5425_v30 = vadd.f32 %v486_v50, %v293_v15  ;;  %v7933_v7 = vld [vmem:[#allocation34_spill] sm:$0xff]  ;;  %v7934_v26 = vld [vmem:[#allocation35_spill] sm:$0xff] }
 0x332   :  { %v485_v13 = vmul.f32 %v5294_v59, %v7933_v7  ;;  %v5441_v15 = vadd.f32 %v479_v22, %v286_v2  ;;  %v495_v50 = vmul.f32 %v5294_v59, %v7934_v26  ;;  %v7938_v7 = vld [vmem:[#allocation38_spill] sm:$0xff]  ;;  %v7939_v22 = vld [vmem:[#allocation39_spill] sm:$0xff]  ;;  %v493_v1 = vmul.f32 %v5294_v59, %v7942_v38 }
 0x333   :  { %1904 = vperm.xlu1 %3810, %v5081_v3   ;;  %v5410_v8 = vpop.permute.xlu1 %1614  ;;  %1908 = vperm.xlu2 %3808, %v5089_v18   ;;  %v5427_v3 = vadd.f32 %v478_v49, %v285_v35  ;;  %v492_v18 = vmul.f32 %v5294_v59, %v7931_v4  ;;  %v5444_v35 = vadd.f32 %v489_v60, %v5305_v57  ;;  %v5449_v49 = vperm.slane %v5272_v24, 2  ;;  %v7937_v4 = vld [vmem:[#allocation37_spill] sm:$0xff]  ;;  %v7940_v60 = vld [vmem:[#allocation40_spill] sm:$0xff] }
 0x334   :  { %7926 = vst [vmem:[#allocation12_spill] sm:$0xff] %v5410_v8  ;;  %2008 = vperm.xlu0 %3809, %v5119_v23   ;;  %v5429_v29 = vpop.permute.xlu2 %1715  ;;  %v7932_v23 = vld [vmem:[#allocation33_spill] sm:$0xff]  ;;  %v498_v2 = vmul.f32 %v5294_v59, %v7938_v7  ;;  %v490_v57 = vmul.f32 %v5294_v59, %v7939_v22  ;;  %v491_v26 = vmul.f32 %v5294_v59, %v7940_v60 }
 0x335   :  { %7928 = vst [vmem:[#allocation18_spill] sm:$0xff] %v5429_v29  ;;  %v5431_v21 = vpop.permute.xlu0 %1767  ;;  %v484_v34 = vmul.f32 %v5294_v59, %v7932_v23  ;;  %v488_v23 = vmul.f32 %v5294_v59, %v7937_v4  ;;  %v7941_v8 = vld [vmem:[#allocation41_spill] sm:$0xff]  ;;  %v5468_v53 = vadd.f32 %v482_v20, %v5314_v37  ;;  %v5471_v4 = vadd.f32 %v492_v18, %v5310_v36  ;;  %v7944_v29 = vld [vmem:[#allocation44_spill] sm:$0xff] }
 0x336   :  { %7929 = vst [vmem:[#allocation13_spill] sm:$0xff] %v5431_v21  ;;  %v501_v5 = vmul.f32 %v5294_v59, %v7941_v8  ;;  %v5477_v22 = vadd.f32 %v485_v13, %v5326_v42  ;;  %v5480_v60 = vadd.f32 %v495_v50, %v5318_v39  ;;  %v7943_v21 = vld [vmem:[#allocation43_spill] sm:$0xff]  ;;  %v496_v38 = vmul.f32 %v5294_v59, %v7944_v29  ;;  %v7945_v37 = vld [vmem:[#allocation45_spill] sm:$0xff] }
 0x337   :  { %7935 = vst [vmem:[#allocation14_spill] sm:$0xff] %v5449_v49  ;;  %v5474_v7 = vadd.f32 %v484_v34, %v5329_v43  ;;  %v494_v8 = vmul.f32 %v5294_v59, %v7943_v21  ;;  %v665_v20 = vmul.f32 %v5449_v49, %v7945_v37  ;;  %v5492_v43 = vadd.f32 %v487_v28, %v5342_v47  ;;  %v7947_v21 = vld [vmem:[#allocation46_spill] sm:$0xff]  ;;  %v7949_v13 = vld [vmem:[#allocation47_spill] sm:$0xff]  ;;  %v7951_v28 = vld [vmem:[#allocation49_spill] sm:$0xff] }
 0x338   :  { %v5495_v42 = vadd.f32 %v488_v23, %v5339_v46  ;;  %v5498_v39 = vadd.f32 %v498_v2, %v5336_v45  ;;  %v497_v18 = vmul.f32 %v5294_v59, %v7947_v21  ;;  %v5504_v29 = vadd.f32 %v490_v57, %v5355_v33  ;;  %v7952_v23 = vld [vmem:[#allocation50_spill] sm:$0xff]  ;;  %v7953_v57 = vld [vmem:[#allocation51_spill] sm:$0xff]  ;;  %v7954_v37 = vld [vmem:[#allocation53_spill] sm:$0xff] }
 0x339   :  { %v5510_v47 = vadd.f32 %v501_v5, %v5345_v48  ;;  %v5513_v46 = vadd.f32 %v493_v1, %v5363_v31  ;;  %v499_v50 = vmul.f32 %v5294_v59, %v7949_v13  ;;  %v502_v5 = vmul.f32 %v5294_v59, %v7952_v23  ;;  %v7955_v13 = vld [vmem:[#allocation54_spill] sm:$0xff] }
 0x33a   :  { %v5528_v48 = vadd.f32 %v494_v8, %v5358_v63  ;;  %v5531_v31 = vadd.f32 %v496_v38, %v5373_v61  ;;  %v5534_v2 = vadd.f32 %v665_v20, %v5365_v55  ;;  %v5539_v1 = vadd.f32 %v497_v18, %v5368_v41  ;;  %v7956_v63 = vld [vmem:[#allocation55_spill] sm:$0xff]  ;;  %v5547_v61 = vpop.f32.mrf.mxu0  ;;  %v7958_v38 = vld [vmem:[#allocation56_spill] sm:$0xff]  ;;  %v7959_v20 = vld [vmem:[#allocation57_spill] sm:$0xff] }
 0x33b   :  { %1916 = vperm.xlu1 %3810, %v5105_v12   ;;  %v5489_v36 = vpop.permute.xlu1 %1626  ;;  %1920 = vperm.xlu2 %3808, %v5113_v9   ;;  %v5507_v12 = vadd.f32 %v491_v26, %v5352_v51  ;;  %v7950_v9 = vld [vmem:[#allocation48_spill] sm:$0xff]  ;;  %v500_v51 = vmul.f32 %v5294_v59, %v7951_v28  ;;  %v670_v26 = vmul.f32 %v5449_v49, %v7953_v57  ;;  %v7960_v23 = vld [vmem:[#allocation58_spill] sm:$0xff]  ;;  %v7961_v18 = vld [vmem:[#allocation59_spill] sm:$0xff] }
 0x33c   :  { %7946 = vst [vmem:[#allocation21_spill] sm:$0xff] %v5489_v36  ;;  %v5515_v34 = vpop.permute.xlu2 %1727  ;;  %v668_v33 = vmul.f32 %v5449_v49, %v7950_v9  ;;  %v673_v21 = vmul.f32 %v5449_v49, %v7954_v37  ;;  %v666_v9 = vmul.f32 %v5449_v49, %v7955_v13  ;;  %v667_v8 = vmul.f32 %v5449_v49, %v7956_v63  ;;  %v7962_v36 = vld [vmem:[#allocation52_spill] sm:$0xff] }
 0x33d   :  { %v5517_v45 = vpop.permute.xlu0 %1779  ;;  %7957 = vst [vmem:[#allocation22_spill] sm:$0xff] %v5547_v61  ;;  %v676_v55 = vmul.f32 %v5449_v49, %v7958_v38  ;;  %v671_v28 = vmul.f32 %v5449_v49, %v7959_v20  ;;  %v669_v41 = vmul.f32 %v5449_v49, %v7960_v23  ;;  %v679_v57 = vmul.f32 %v5449_v49, %v7961_v18  ;;  %v7964_v18 = vld [vmem:[#allocation60_spill] sm:$0xff] }
 0x33e   :  { %7948 = vst [vmem:[#allocation15_spill] sm:$0xff] %v5517_v45  ;;  %v5558_v37 = vadd.f32 %v499_v50, %v5393_v52  ;;  %v5561_v13 = vadd.f32 %v668_v33, %v5375_v27  ;;  %v5564_v63 = vadd.f32 %v500_v51, %v5390_v44  ;;  %v5567_v38 = vadd.f32 %v502_v5, %v5401_v32  ;;  %v7965_v50 = vld [vmem:[#allocation61_spill] sm:$0xff]  ;;  %v7966_v33 = vld [vmem:[#allocation62_spill] sm:$0xff] }
 0x33f   :  { %v5570_v20 = vadd.f32 %v670_v26, %v5395_v16  ;;  %v5574_v23 = vmul.f32 %v5294_v59, %v7962_v36  ;;  %v674_v52 = vmul.f32 %v5449_v49, %v7964_v18  ;;  %v672_v27 = vmul.f32 %v5449_v49, %v7965_v50  ;;  %v7969_v26 = vld [vmem:[#allocation63_spill] sm:$0xff]  ;;  %v8013_v45 = vld [vmem:[#allocation97_spill] sm:$0xff] }
 0x340   :  { %v5582_v44 = vadd.f32 %v673_v21, %v5403_v40  ;;  %v5585_v32 = vadd.f32 %v666_v9, %v5420_v0  ;;  %v5588_v16 = vadd.f32 %v667_v8, %v5412_v58  ;;  %v682_v59 = vmul.f32 %v5449_v49, %v7966_v33  ;;  %v7970_v21 = vld [vmem:[#allocation64_spill] sm:$0xff]  ;;  %v7971_v9 = vld [vmem:[#allocation65_spill] sm:$0xff]  ;;  %v7972_v8 = vld [vmem:[#allocation66_spill] sm:$0xff] }
 0x341   :  { %7963 = vst [vmem:[#allocation23_spill] sm:$0xff] %v5574_v23  ;;  %v5596_v51 = vadd.f32 %v676_v55, %v5414_v54  ;;  %v5602_v40 = vadd.f32 %v669_v41, %v5423_v56  ;;  %v5605_v0 = vadd.f32 %v679_v57, %v5425_v30  ;;  %v675_v54 = vmul.f32 %v5449_v49, %v7970_v21  ;;  %v7974_v57 = vld [vmem:[#allocation68_spill] sm:$0xff]  ;;  %v7975_v33 = vld [vmem:[#allocation69_spill] sm:$0xff]  ;;  %v7976_v21 = vld [vmem:[#allocation70_spill] sm:$0xff] }
 0x342   :  { %v680_v56 = vmul.f32 %v5449_v49, %v7972_v8  ;;  %v5620_v55 = vadd.f32 %v674_v52, %v5451_v10  ;;  %v5623_v30 = vadd.f32 %v672_v27, %v5441_v15  ;;  %v688_v18 = vmul.f32 %v5449_v49, %v7974_v57  ;;  %v7977_v10 = vld [vmem:[#allocation71_spill] sm:$0xff]  ;;  %v82_v15 = vpop.f32.mrf.mxu0  ;;  %v7978_v27 = vld [vmem:[#allocation72_spill] sm:$0xff]  ;;  %v7980_v57 = vld [vmem:[#allocation74_spill] sm:$0xff] }
 0x343   :  { %1928 = vperm.xlu1 %3810, %v5129_v19   ;;  %1932 = vperm.xlu2 %3808, %v5135_v6   ;;  %v5599_v19 = vadd.f32 %v671_v28, %v5427_v3  ;;  %v677_v6 = vmul.f32 %v5449_v49, %v7969_v26  ;;  %v685_v3 = vmul.f32 %v5449_v49, %v7971_v9  ;;  %v7973_v28 = vld [vmem:[#allocation67_spill] sm:$0xff] }
 0x344   :  { %v5593_v36 = vpop.permute.xlu1 %1703  ;;  %v5607_v58 = vpop.permute.xlu2 %1739  ;;  %v678_v41 = vmul.f32 %v5449_v49, %v7973_v28  ;;  %v5630_v50 = vadd.f32 %v682_v59, %v5444_v35  ;;  %v683_v26 = vmul.f32 %v5449_v49, %v7975_v33  ;;  %v681_v9 = vmul.f32 %v5449_v49, %v7976_v21  ;;  %v7979_v28 = vld [vmem:[#allocation73_spill] sm:$0xff] }
 0x345   :  { %7967 = vst [vmem:[#allocation24_spill] sm:$0xff] %v5607_v58  ;;  %v5609_v5 = vpop.permute.xlu0 %1791  ;;  %v691_v52 = vmul.f32 %v5449_v49, %v7977_v10  ;;  %v686_v8 = vmul.f32 %v5449_v49, %v7978_v27  ;;  %v684_v23 = vmul.f32 %v5449_v49, %v7979_v28  ;;  %v694_v35 = vmul.f32 %v5449_v49, %v7980_v57  ;;  %v7982_v57 = vld [vmem:[#allocation75_spill] sm:$0xff]  ;;  %v8034_v58 = vld [vmem:[#allocation112_spill] sm:$0xff] }
 0x346   :  { %7968 = vst [vmem:[#allocation25_spill] sm:$0xff] %v5609_v5  ;;  %v5645_v59 = vperm.slane %v5272_v24, 3  ;;  %v5648_v33 = vadd.f32 %v677_v6, %v5474_v7  ;;  %v5651_v21 = vadd.f32 %v675_v54, %v5468_v53  ;;  %v5654_v10 = vadd.f32 %v685_v3, %v5471_v4  ;;  %v7983_v7 = vld [vmem:[#allocation76_spill] sm:$0xff] }
 0x347   :  { %v5657_v15 = vadd.f32 %v680_v56, %v5492_v43  ;;  %v5660_v27 = vadd.f32 %v678_v41, %v5477_v22  ;;  %v5663_v28 = vadd.f32 %v688_v18, %v5480_v60  ;;  %v689_v5 = vmul.f32 %v5449_v49, %v7982_v57  ;;  %v7984_v43 = vld [vmem:[#allocation77_spill] sm:$0xff]  ;;  %v7989_v18 = vld [vmem:[#allocation79_spill] sm:$0xff] }
 0x348   :  { %7981 = vst [vmem:[#allocation26_spill] sm:$0xff] %v5645_v59  ;;  %v687_v6 = vmul.f32 %v5449_v49, %v7983_v7  ;;  %v5671_v53 = vadd.f32 %v683_v26, %v5504_v29  ;;  %v5674_v4 = vadd.f32 %v681_v9, %v5495_v42  ;;  %v5677_v22 = vadd.f32 %v691_v52, %v5498_v39  ;;  %v7986_v42 = vld [vmem:[#allocation78_spill] sm:$0xff]  ;;  %v7990_v26 = vld [vmem:[#allocation80_spill] sm:$0xff]  ;;  %v7991_v9 = vld [vmem:[#allocation81_spill] sm:$0xff] }
 0x349   :  { %v692_v60 = vmul.f32 %v5449_v49, %v7984_v43  ;;  %v5685_v3 = vadd.f32 %v686_v8, %v5513_v46  ;;  %v5691_v29 = vadd.f32 %v694_v35, %v5510_v47  ;;  %v858_v39 = vmul.f32 %v5645_v59, %v7986_v42  ;;  %v7993_v35 = vld [vmem:[#allocation83_spill] sm:$0xff]  ;;  %v7994_v7 = vld [vmem:[#allocation84_spill] sm:$0xff] }
 0x34a   :  { %v695_v46 = vmul.f32 %v5449_v49, %v7990_v26  ;;  %v5708_v52 = vadd.f32 %v689_v5, %v5531_v31  ;;  %v5711_v8 = vadd.f32 %v687_v6, %v5528_v48  ;;  %v863_v57 = vmul.f32 %v5645_v59, %v7993_v35  ;;  %v7997_v31 = vld [vmem:[#allocation88_spill] sm:$0xff]  ;;  %v7998_v6 = vld [vmem:[#allocation89_spill] sm:$0xff] }
 0x34b   :  { %1940 = vperm.xlu1 %3810, %v5151_v25   ;;  %1944 = vperm.xlu2 %3808, %v5157_v14   ;;  %v5688_v25 = vadd.f32 %v684_v23, %v5507_v12  ;;  %v690_v14 = vmul.f32 %v5449_v49, %v7989_v18  ;;  %v861_v12 = vmul.f32 %v5645_v59, %v7991_v9  ;;  %v7992_v23 = vld [vmem:[#allocation82_spill] sm:$0xff]  ;;  %v7996_v9 = vld [vmem:[#allocation87_spill] sm:$0xff] }
 0x34c   :  { %v5682_v54 = vpop.permute.xlu1 %1711  ;;  %v5695_v56 = vpop.permute.xlu2 %1751  ;;  %v693_v47 = vmul.f32 %v5449_v49, %v7992_v23  ;;  %v859_v43 = vmul.f32 %v5645_v59, %v7994_v7  ;;  %v5718_v42 = vadd.f32 %v692_v60, %v5558_v37  ;;  %v7995_v18 = vld [vmem:[#allocation86_spill] sm:$0xff]  ;;  %v864_v23 = vmul.f32 %v5645_v59, %v7996_v9 }
 0x34d   :  { %7985 = vst [vmem:[#allocation27_spill] sm:$0xff] %v5682_v54  ;;  %v5697_v41 = vpop.permute.xlu0 %1803  ;;  %v866_v26 = vmul.f32 %v5645_v59, %v7995_v18  ;;  %v860_v5 = vmul.f32 %v5645_v59, %v7997_v31  ;;  %v5727_v48 = vadd.f32 %v858_v39, %v5534_v2  ;;  %v869_v35 = vmul.f32 %v5645_v59, %v7998_v6  ;;  %v8001_v6 = vld [vmem:[#allocation114_spill] sm:$0xff] }
 0x34e   :  { %7987 = vst [vmem:[#allocation16_spill] sm:$0xff] %v5695_v56  ;;  %v5732_v7 = vperm.slane %v5272_v24, 4  ;;  %v5735_v37 = vperm.slane %v5272_v24, 5  ;;  %v5738_v60 = vadd.f32 %v690_v14, %v5539_v1  ;;  %v5741_v18 = vadd.f32 %v695_v46, %v5567_v38  ;;  %v117_v14 = vld [vmem:[#allocation2 + $0x8] sm:$0x3]  ;;  %v8017_v56 = vld [vmem:[#allocation203_spill] sm:$0xff] }
 0x34f   :  { %7988 = vst [vmem:[#allocation17_spill] sm:$0xff] %v5697_v41  ;;  %v5744_v9 = vadd.f32 %v861_v12, %v5561_v13  ;;  %v5747_v2 = vadd.f32 %v693_v47, %v5564_v63  ;;  %v5750_v39 = vadd.f32 %v863_v57, %v5570_v20  ;;  %v891_v31 = vadd.f32 %v859_v43, %v5585_v32  ;;  %v8002_v20 = vld [vmem:[#allocation90_spill] sm:$0xff]  ;;  %v8005_v47 = vld [vmem:[#allocation144_spill] sm:$0xff] }
 0x350   :  { %7999 = vst [vmem:[#allocation19_spill] sm:$0xff] %v5732_v7  ;;  %v1052_v49 = vmul.f32 %v5732_v7, %v8001_v6  ;;  %v5756_v1 = vperm.slane %v5272_v24, 6  ;;  %v5760_v38 = vadd.f32 %v866_v26, %v5582_v44  ;;  %v5763_v13 = vadd.f32 %v864_v23, %v5599_v19  ;;  %v8008_v26 = vld [vmem:[#allocation92_spill] sm:$0xff]  ;;  %v8009_v23 = vld [vmem:[#allocation93_spill] sm:$0xff]  ;;  %v8011_v6 = vld [vmem:[#allocation95_spill] sm:$0xff] }
 0x351   :  { %8000 = vst [vmem:[#allocation20_spill] sm:$0xff] %v5735_v37  ;;  %v5766_v63 = vadd.f32 %v860_v5, %v5588_v16  ;;  %v867_v32 = vmul.f32 %v5645_v59, %v8002_v20  ;;  %v5774_v12 = vadd.f32 %v869_v35, %v5596_v51  ;;  %v1245_v19 = vmul.f32 %v5735_v37, %v8005_v47  ;;  %v8010_v5 = vld [vmem:[#allocation94_spill] sm:$0xff] }
 0x352   :  { %v5781_v16 = vperm.slane %v5272_v24, 7  ;;  %v870_v51 = vmul.f32 %v5645_v59, %v8009_v23  ;;  %v865_v35 = vmul.f32 %v5645_v59, %v8010_v5  ;;  %v875_v20 = vmul.f32 %v5645_v59, %v8011_v6 }
 0x353   :  { %1952 = vperm.xlu1 %3810, %v5172_v11   ;;  %1956 = vperm.xlu2 %3808, %v5178_v17   ;;  %v8004_v11 = vld [vmem:[#allocation91_spill] sm:$0xff]  ;;  %v872_v17 = vmul.f32 %v5645_v59, %v8008_v26  ;;  %v1084_v47 = vadd.f32 %v1052_v49, %v891_v31  ;;  %v1438_v41 = vmul.f32 %v5756_v1, %v4925_v62  ;;  %v8016_v49 = vld [vmem:[#allocation100_spill] sm:$0xff] }
 0x354   :  { %v5771_v46 = vpop.permute.xlu1 %1723  ;;  %v862_v44 = vmul.f32 %v5645_v59, %v8004_v11  ;;  %v5783_v57 = vpop.permute.xlu2 %1763  ;;  %v8012_v11 = vld [vmem:[#allocation96_spill] sm:$0xff]  ;;  %v5802_v26 = vadd.f32 %v867_v32, %v5620_v55  ;;  %v868_v23 = vmul.f32 %v5645_v59, %v8013_v45  ;;  %v871_v62 = vmul.f32 %v5645_v59, %v8016_v49 }
 0x355   :  { %8003 = vst [vmem:[#allocation28_spill] sm:$0xff] %v5771_v46  ;;  %v5785_v43 = vpop.permute.xlu0 %1815  ;;  %v873_v24 = vmul.f32 %v5645_v59, %v8012_v11  ;;  %v8015_v46 = vld [vmem:[#allocation99_spill] sm:$0xff]  ;;  %v1277_v31 = vadd.f32 %v1245_v19, %v1084_v47  ;;  %v1631_v55 = vmul.f32 %v5781_v16, %v8017_v56  ;;  %v5818_v32 = vadd.f32 %v872_v17, %v5605_v0  ;;  %v8018_v19 = vld [vmem:[#allocation237_spill] sm:$0xff]  ;;  %v8019_v56 = vld [vmem:[#allocation228_spill] sm:$0xff] }
 0x356   :  { %8006 = vst [vmem:[#allocation29_spill] sm:$0xff] %v5783_v57  ;;  %v8014_v57 = vld [vmem:[#allocation98_spill] sm:$0xff]  ;;  %v876_v6 = vmul.f32 %v5645_v59, %v8015_v46  ;;  %v5811_v11 = vadd.f32 %v862_v44, %v5602_v40  ;;  %v5821_v45 = vadd.f32 %v870_v51, %v5648_v33  ;;  %v5827_v46 = vadd.f32 %v875_v20, %v5630_v50  ;;  %v8020_v17 = vld [vmem:[#allocation101_spill] sm:$0xff]  ;;  %v8024_v20 = vld [vmem:[#allocation103_spill] sm:$0xff] }
 0x357   :  { %8007 = vst [vmem:[#allocation30_spill] sm:$0xff] %v5785_v43  ;;  %v5799_v43 = vperm.slane %v117_v14, 0  ;;  %v878_v5 = vmul.f32 %v5645_v59, %v8014_v57  ;;  %v5824_v57 = vadd.f32 %v865_v35, %v5623_v30  ;;  %v5830_v40 = vadd.f32 %v873_v24, %v5657_v15 }
 0x358   :  { %v1470_v44 = vadd.f32 %v1438_v41, %v1277_v31  ;;  %v5835_v0 = vperm.slane %v117_v14, 1  ;;  %v5838_v33 = vadd.f32 %v868_v23, %v5651_v21  ;;  %v5844_v50 = vadd.f32 %v876_v6, %v5671_v53  ;;  %v8021_v41 = vld [vmem:[#allocation229_spill] sm:$0xff]  ;;  %v8023_v14 = vld [vmem:[#allocation102_spill] sm:$0xff]  ;;  %v8026_v53 = vld [vmem:[#allocation104_spill] sm:$0xff] }
 0x359   :  { %v1824_v47 = vmul.f32 %v5799_v43, %v8018_v19  ;;  %v5841_v30 = vadd.f32 %v878_v5, %v5654_v10  ;;  %v881_v15 = vmul.f32 %v5645_v59, %v8020_v17  ;;  %v5852_v35 = vadd.f32 %v871_v62, %v5660_v27  ;;  %v8027_v6 = vld [vmem:[#allocation105_spill] sm:$0xff]  ;;  %v8028_v31 = vld [vmem:[#allocation106_spill] sm:$0xff]  ;;  %v8029_v27 = vld [vmem:[#allocation107_spill] sm:$0xff] }
 0x35a   :  { %v879_v21 = vmul.f32 %v5645_v59, %v8023_v14  ;;  %v874_v10 = vmul.f32 %v5645_v59, %v8024_v20  ;;  %v1663_v24 = vadd.f32 %v1631_v55, %v1470_v44  ;;  %v884_v5 = vmul.f32 %v5645_v59, %v8026_v53  ;;  %v5871_v17 = vld [vmem:[%s7607_s2] sm:$0xff]  }
 0x35b   :  { %1964 = vperm.xlu1 %3810, %v8019_v56   ;;  %1968 = vperm.xlu2 %3808, %v8021_v41   ;;  %v882_v49 = vmul.f32 %v5645_v59, %v8027_v6  ;;  %v877_v19 = vmul.f32 %v5645_v59, %v8028_v31  ;;  %v887_v62 = vmul.f32 %v5645_v59, %v8029_v27  ;;  %v8030_v55 = vld [vmem:[#allocation108_spill] sm:$0xff]  ;;  %v5877_v20 = vperm.slane %v5547_v61, 0  ;;  %v8031_v6 = vld [vmem:[#allocation109_spill] sm:$0xff]  ;;  %v8032_v27 = vld [vmem:[#allocation110_spill] sm:$0xff] }
 0x35c   :  { %v5849_v51 = vpop.permute.xlu1 %1735  ;;  %v5858_v23 = vpop.permute.xlu2 %1775  ;;  %v885_v44 = vmul.f32 %v5645_v59, %v8030_v55  ;;  %v1856_v41 = vadd.f32 %v1824_v47, %v1663_v24  ;;  %v5880_v53 = vadd.f32 %v881_v15, %v5663_v28  ;;  %v880_v31 = vmul.f32 %v5645_v59, %v8031_v6  ;;  %v8035_v24 = vld [vmem:[#allocation113_spill] sm:$0xff] }
 0x35d   :  { %8022 = vst [vmem:[#allocation31_spill] sm:$0xff] %v5849_v51  ;;  %v8033_v51 = vld [vmem:[#allocation111_spill] sm:$0xff]  ;;  %v883_v47 = vmul.f32 %v5645_v59, %v8034_v58  ;;  %v3611_v61 = vunpack.c.h.bf16 %v5871_v17  ;;  %v5894_v28 = vadd.f32 %v879_v21, %v5685_v3  ;;  %v5897_v15 = vadd.f32 %v874_v10, %v5674_v4  ;;  %v8036_v3 = vld [vmem:[#allocation233_spill] sm:$0xff]  ;;  %v8038_v10 = vld [vmem:[#allocation234_spill] sm:$0xff] }
 0x35e   :  { %8025 = vst [vmem:[#allocation32_spill] sm:$0xff] %v5858_v23  ;;  %v1893_v56 = vpop.permute.xlu0 %1892  ;;  %v888_v23 = vmul.f32 %v5645_v59, %v8032_v27  ;;  %v1051_v54 = vmul.f32 %v5732_v7, %v8033_v51  ;;  %v5900_v6 = vadd.f32 %v884_v5, %v5677_v22  ;;  %v5903_v51 = vadd.f32 %v882_v49, %v5708_v52 }
 0x35f   :  { %v2017_v14 = vmul.f32 %v5835_v0, %v1893_v56  ;;  %v1054_v56 = vmul.f32 %v5732_v7, %v8035_v24  ;;  %v5906_v58 = vadd.f32 %v877_v19, %v5688_v25  ;;  %v5909_v27 = vadd.f32 %v887_v62, %v5691_v29  ;;  %v8037_v25 = vld [vmem:[#allocation115_spill] sm:$0xff] }
 0x360   :  { %v5917_v21 = vadd.f32 %v880_v31, %v5711_v8  ;;  %v5920_v22 = vadd.f32 %v888_v23, %v5741_v18  ;;  %v5923_v52 = vadd.f32 %v1051_v54, %v5727_v48  ;;  %v886_v29 = vmul.f32 %v5645_v59, %v8037_v25  ;;  %v8039_v8 = vld [vmem:[#allocation116_spill] sm:$0xff]  ;;  %v8040_v48 = vld [vmem:[#allocation117_spill] sm:$0xff]  ;;  %v8041_v62 = vld [vmem:[#allocation119_spill] sm:$0xff] }
 0x361   :  { %v2049_v55 = vadd.f32 %v2017_v14, %v1856_v41  ;;  %v5912_v41 = vadd.f32 %v885_v44, %v5718_v42  ;;  %v5931_v5 = vadd.f32 %v883_v47, %v5738_v60  ;;  %v5934_v49 = vadd.f32 %v1054_v56, %v5744_v9  ;;  %v8042_v14 = vld [vmem:[#allocation120_spill] sm:$0xff]  ;;  %v8043_v60 = vld [vmem:[#allocation121_spill] sm:$0xff]  ;;  %v8044_v9 = vld [vmem:[#allocation122_spill] sm:$0xff] }
 0x362   :  { %v1056_v18 = vmul.f32 %v5732_v7, %v8039_v8  ;;  %v1057_v19 = vmul.f32 %v5732_v7, %v8040_v48  ;;  %v1059_v44 = vmul.f32 %v5732_v7, %v8041_v62  ;;  %v1060_v31 = vmul.f32 %v5732_v7, %v8042_v14  ;;  %v8045_v56 = vld [vmem:[#allocation123_spill] sm:$0xff]  ;;  %v8048_v25 = vld [vmem:[#allocation125_spill] sm:$0xff]  ;;  %v8049_v8 = vld [vmem:[#allocation126_spill] sm:$0xff] }
 0x363   :  { %1976 = vperm.xlu1 %3810, %v8036_v3   ;;  %v2087_v4 = vadd.f32 %v5877_v20, %v2049_v55  ;;  %1980 = vperm.xlu2 %3808, %v8038_v10   ;;  %v1053_v47 = vmul.f32 %v5732_v7, %v8043_v60  ;;  %v1062_v24 = vmul.f32 %v5732_v7, %v8044_v9  ;;  %v8046_v3 = vld [vmem:[#allocation124_spill] sm:$0xff]  ;;  %v8050_v62 = vld [vmem:[#allocation127_spill] sm:$0xff] }
 0x364   :  { %v5928_v42 = vpop.permute.xlu1 %1747  ;;  %v5938_v23 = vpop.permute.xlu2 %1787  ;;  %v1063_v55 = vmul.f32 %v5732_v7, %v8045_v56  ;;  %v1065_v10 = vmul.f32 %v5732_v7, %v8048_v25  ;;  %v1066_v48 = vmul.f32 %v5732_v7, %v8049_v8  ;;  %v1058_v14 = vmul.f32 %v5732_v7, %v8050_v62  ;;  %v8051_v9 = vld [vmem:[#allocation128_spill] sm:$0xff] }
 0x365   :  { %v2183_v54 = vadd.f32 %v3611_v61, %v2087_v4  ;;  %v1055_v61 = vmul.f32 %v5732_v7, %v8046_v3  ;;  %v5955_v4 = vadd.f32 %v886_v29, %v5747_v2  ;;  %v5964_v60 = vadd.f32 %v1056_v18, %v5750_v39  ;;  %v8052_v3 = vld [vmem:[#allocation129_spill] sm:$0xff]  ;;  %v8053_v2 = vld [vmem:[#allocation130_spill] sm:$0xff]  ;;  %v5985_v18 = vld [vmem:[%s7612_s7] ss:$0 sm:$0xff] }
 0x366   :  { %v1068_v56 = vmul.f32 %v5732_v7, %v8051_v9  ;;  %v1061_v29 = vmul.f32 %v5732_v7, %v8053_v2  ;;  %v1089_v25 = vadd.f32 %v1057_v19, %v5763_v13  ;;  %v5974_v59 = vadd.f32 %v1059_v44, %v5760_v38  ;;  %v8054_v13 = vld [vmem:[#allocation131_spill] sm:$0xff]  ;;  %v8055_v19 = vld [vmem:[#allocation238_spill] sm:$0xff] }
 0x367   :  { %3847 = vtanh.f32 %v2183_v54  ;;  %8047 = vst [vmem:[#allocation33_spill] sm:$0xff] %v5955_v4  ;;  %v1069_v54 = vmul.f32 %v5732_v7, %v8052_v3  ;;  %v5977_v8 = vadd.f32 %v1060_v31, %v5802_v26  ;;  %v5980_v39 = vadd.f32 %v1053_v47, %v5766_v63  ;;  %v8056_v31 = vld [vmem:[#allocation132_spill] sm:$0xff]  ;;  %v8057_v47 = vld [vmem:[#allocation239_spill] sm:$0xff]  ;;  %v8068_v4 = vld [vmem:[#allocation142_spill] sm:$0xff] }
 0x368   :  { %v5988_v62 = vadd.f32 %v1062_v24, %v5774_v12  ;;  %v5991_v9 = vadd.f32 %v1063_v55, %v5821_v45  ;;  %v5994_v38 = vadd.f32 %v1055_v61, %v5811_v11  ;;  %v1071_v26 = vmul.f32 %v5732_v7, %v8054_v13  ;;  %v8058_v61 = vld [vmem:[#allocation133_spill] sm:$0xff]  ;;  %v8061_v3 = vld [vmem:[#allocation135_spill] sm:$0xff]  ;;  %v8062_v13 = vld [vmem:[#allocation136_spill] sm:$0xff] }
 0x369   :  { %v6000_v63 = vadd.f32 %v1065_v10, %v5818_v32  ;;  %v6003_v44 = vadd.f32 %v1066_v48, %v5830_v40  ;;  %v6006_v12 = vadd.f32 %v1058_v14, %v5824_v57  ;;  %v1072_v45 = vmul.f32 %v5732_v7, %v8056_v31  ;;  %v8060_v48 = vld [vmem:[#allocation134_spill] sm:$0xff]  ;;  %v8065_v31 = vld [vmem:[#allocation139_spill] sm:$0xff] }
 0x36a   :  { %v6014_v55 = vadd.f32 %v1068_v56, %v5827_v46  ;;  %v6017_v32 = vadd.f32 %v1069_v54, %v5844_v50  ;;  %v6020_v40 = vadd.f32 %v1061_v29, %v5838_v33  ;;  %v1064_v57 = vmul.f32 %v5732_v7, %v8058_v61  ;;  %v8063_v33 = vld [vmem:[#allocation137_spill] sm:$0xff]  ;;  %v8064_v29 = vld [vmem:[#allocation138_spill] sm:$0xff] }
 0x36b   :  { %1988 = vperm.xlu1 %3810, %v8055_v19   ;;  %1992 = vperm.xlu2 %3808, %v8057_v47   ;;  %v1074_v14 = vmul.f32 %v5732_v7, %v8060_v48  ;;  %v1075_v2 = vmul.f32 %v5732_v7, %v8061_v3  ;;  %v1067_v46 = vmul.f32 %v5732_v7, %v8062_v13  ;;  %v8066_v48 = vld [vmem:[#allocation140_spill] sm:$0xff]  ;;  %v8067_v13 = vld [vmem:[#allocation141_spill] sm:$0xff] }
 0x36c   :  { %v6011_v11 = vpop.permute.xlu1 %1759  ;;  %v6024_v10 = vpop.permute.xlu2 %1799  ;;  %v6034_v56 = vadd.f32 %v1071_v26, %v5841_v30  ;;  %v1077_v54 = vmul.f32 %v5732_v7, %v8063_v33  ;;  %v1078_v19 = vmul.f32 %v5732_v7, %v8064_v29  ;;  %v1070_v47 = vmul.f32 %v5732_v7, %v8065_v31  ;;  %v8069_v33 = vld [vmem:[#allocation143_spill] sm:$0xff] }
 0x36d   :  { %v3848_v24 = vpop.eup %3847  ;;  %8059 = vst [vmem:[#allocation34_spill] sm:$0xff] %v6024_v10  ;;  %v1104_v61 = vadd.f32 %v1072_v45, %v5894_v28  ;;  %v1080_v3 = vmul.f32 %v5732_v7, %v8066_v48  ;;  %v1073_v30 = vmul.f32 %v5732_v7, %v8068_v4  ;;  %v6050_v26 = vadd.f32 %v1064_v57, %v5852_v35  ;;  %v8070_v10 = vld [vmem:[#allocation145_spill] sm:$0xff]  ;;  %v8071_v28 = vld [vmem:[#allocation146_spill] sm:$0xff] }
 0x36e   :  { %v2251_v50 = vmul.f32 %v3848_v24, %v5985_v18  ;;  %v1081_v24 = vmul.f32 %v5732_v7, %v8067_v13  ;;  %v1244_v29 = vmul.f32 %v5735_v37, %v8069_v33  ;;  %v1076_v31 = vmul.f32 %v5732_v7, %v8070_v10 }
 0x36f   :  { %v1247_v45 = vmul.f32 %v5735_v37, %v8071_v28  ;;  %v6059_v48 = vadd.f32 %v1074_v14, %v5880_v53  ;;  %v1107_v13 = vadd.f32 %v1075_v2, %v5903_v51  ;;  %v6063_v4 = vadd.f32 %v1067_v46, %v5897_v15  ;;  %v8073_v28 = vld [vmem:[#allocation149_spill] sm:$0xff]  ;;  %v8074_v14 = vld [vmem:[#allocation243_spill] sm:$0xff]  ;;  %v8075_v2 = vld [vmem:[#allocation150_spill] sm:$0xff] }
 0x370   :  { %2284 = vadd.xlane.f32.xlu0 %v2251_v50  ;;  %v8072_v50 = vld [vmem:[#allocation147_spill] sm:$0xff]  ;;  %v6068_v57 = vadd.f32 %v1077_v54, %v5900_v6  ;;  %v6071_v33 = vadd.f32 %v1078_v19, %v5912_v41  ;;  %v6074_v10 = vadd.f32 %v1070_v47, %v5906_v58  ;;  %v1249_v53 = vmul.f32 %v5735_v37, %v8073_v28  ;;  %v8076_v46 = vld [vmem:[#allocation244_spill] sm:$0xff] }
 0x371   :  { %v1250_v35 = vmul.f32 %v5735_v37, %v8072_v50  ;;  %v6080_v15 = vadd.f32 %v1080_v3, %v5909_v27  ;;  %v6083_v51 = vadd.f32 %v1081_v24, %v5920_v22  ;;  %v6086_v6 = vadd.f32 %v1073_v30, %v5917_v21  ;;  %v8079_v22 = vld [vmem:[#allocation152_spill] sm:$0xff]  ;;  %v8083_v50 = vld [vmem:[#allocation153_spill] sm:$0xff] }
 0x372   :  { %v1253_v41 = vmul.f32 %v5735_v37, %v8075_v2  ;;  %v1276_v54 = vadd.f32 %v1244_v29, %v5923_v52  ;;  %v6095_v19 = vadd.f32 %v1076_v31, %v5931_v5  ;;  %v6098_v27 = vadd.f32 %v1247_v45, %v5934_v49  ;;  %v8081_v24 = vld [vmem:[#allocation148_spill] sm:$0xff]  ;;  %v8084_v29 = vld [vmem:[#allocation154_spill] sm:$0xff]  ;;  %v8085_v31 = vld [vmem:[#allocation155_spill] sm:$0xff] }
 0x373   :  { %2000 = vperm.xlu1 %3810, %v8074_v14   ;;  %2004 = vperm.xlu2 %3808, %v8076_v46   ;;  %v1252_v47 = vmul.f32 %v5735_v37, %v8079_v22  ;;  %v6104_v3 = vadd.f32 %v1250_v35, %v1089_v25  ;;  %v6108_v30 = vmul.f32 %v5732_v7, %v8081_v24  ;;  %v8086_v28 = vld [vmem:[#allocation156_spill] sm:$0xff]  ;;  %v8087_v35 = vld [vmem:[#allocation157_spill] sm:$0xff]  ;;  %v8088_v46 = vld [vmem:[#allocation158_spill] sm:$0xff] }
 0x374   :  { %v6091_v58 = vpop.permute.xlu1 %1771  ;;  %8078 = vst [vmem:[#allocation36_spill] sm:$0xff] %v6095_v19  ;;  %v6102_v21 = vpop.permute.xlu2 %1811  ;;  %v1256_v52 = vmul.f32 %v5735_v37, %v8083_v50  ;;  %v1246_v5 = vmul.f32 %v5735_v37, %v8084_v29  ;;  %v6115_v49 = vadd.f32 %v1249_v53, %v5964_v60  ;;  %v1255_v45 = vmul.f32 %v5735_v37, %v8085_v31  ;;  %v8089_v24 = vld [vmem:[#allocation159_spill] sm:$0xff]  ;;  %v8090_v29 = vld [vmem:[#allocation160_spill] sm:$0xff]  ;;  %v8091_v31 = vld [vmem:[#allocation161_spill] sm:$0xff] }
 0x375   :  { %8077 = vst [vmem:[#allocation35_spill] sm:$0xff] %v6091_v58  ;;  %v1259_v25 = vmul.f32 %v5735_v37, %v8086_v28  ;;  %v1248_v14 = vmul.f32 %v5735_v37, %v8087_v35  ;;  %v1285_v2 = vadd.f32 %v1253_v41, %v5977_v8  ;;  %v1258_v22 = vmul.f32 %v5735_v37, %v8088_v46  ;;  %v8092_v7 = vld [vmem:[#allocation162_spill] sm:$0xff]  ;;  %v8095_v19 = vld [vmem:[#allocation165_spill] sm:$0xff] }
 0x376   :  { %8080 = vst [vmem:[#allocation37_spill] sm:$0xff] %v6102_v21  ;;  %v1262_v50 = vmul.f32 %v5735_v37, %v8089_v24  ;;  %v1251_v60 = vmul.f32 %v5735_v37, %v8090_v29  ;;  %v6131_v53 = vadd.f32 %v1252_v47, %v5974_v59  ;;  %v1261_v28 = vmul.f32 %v5735_v37, %v8091_v31  ;;  %v8094_v24 = vld [vmem:[#allocation164_spill] sm:$0xff] }
 0x377   :  { %8082 = vst [vmem:[#allocation38_spill] sm:$0xff] %v6108_v30  ;;  %v1265_v35 = vmul.f32 %v5735_v37, %v8092_v7  ;;  %v8093_v30 = vld [vmem:[#allocation163_spill] sm:$0xff]  ;;  %v1288_v41 = vadd.f32 %v1256_v52, %v5991_v9  ;;  %v6141_v46 = vadd.f32 %v1246_v5, %v5980_v39  ;;  %v1264_v29 = vmul.f32 %v5735_v37, %v8094_v24  ;;  %v8097_v39 = vld [vmem:[#allocation248_spill] sm:$0xff] }
 0x378   :  { %v1254_v8 = vmul.f32 %v5735_v37, %v8093_v30  ;;  %v1268_v59 = vmul.f32 %v5735_v37, %v8095_v19  ;;  %v6148_v47 = vadd.f32 %v1255_v45, %v5988_v62  ;;  %v6151_v31 = vadd.f32 %v1259_v25, %v6003_v44  ;;  %v8096_v30 = vld [vmem:[#allocation166_spill] sm:$0xff]  ;;  %v8098_v19 = vld [vmem:[#allocation175_spill] sm:$0xff]  ;;  %v8102_v24 = vld [vmem:[#allocation208_spill] sm:$0xff] }
 0x379   :  { %v6154_v7 = vadd.f32 %v1248_v14, %v5994_v38  ;;  %v1257_v9 = vmul.f32 %v5735_v37, %v8096_v30  ;;  %v6160_v52 = vadd.f32 %v1258_v22, %v6000_v63  ;;  %v6163_v5 = vadd.f32 %v1262_v50, %v6017_v32  ;;  %v8100_v63 = vld [vmem:[#allocation167_spill] sm:$0xff]  ;;  %v8101_v50 = vld [vmem:[#allocation168_spill] sm:$0xff] }
 0x37a   :  { %v6166_v62 = vadd.f32 %v1251_v60, %v6006_v12  ;;  %v1437_v44 = vmul.f32 %v5756_v1, %v8098_v19  ;;  %v6173_v38 = vadd.f32 %v1261_v28, %v6014_v55  ;;  %v6175_v25 = vadd.f32 %v1265_v35, %v1104_v61 }
 0x37b   :  { %2012 = vperm.xlu1 %3810, %v8097_v39   ;;  %v6178_v14 = vadd.f32 %v1254_v8, %v6020_v40  ;;  %v1267_v32 = vmul.f32 %v5735_v37, %v8100_v63  ;;  %v6183_v22 = vadd.f32 %v1264_v29, %v6034_v56  ;;  %v6185_v12 = vadd.f32 %v1268_v59, %v1107_v13  ;;  %v8103_v40 = vld [vmem:[#allocation169_spill] sm:$0xff]  ;;  %v8104_v8 = vld [vmem:[#allocation170_spill] sm:$0xff]  ;;  %v8105_v56 = vld [vmem:[#allocation171_spill] sm:$0xff] }
 0x37c   :  { %v6170_v45 = vpop.permute.xlu1 %1783  ;;  %v1271_v60 = vmul.f32 %v5735_v37, %v8101_v50  ;;  %v1630_v55 = vmul.f32 %v5781_v16, %v8102_v24  ;;  %v6192_v61 = vadd.f32 %v1257_v9, %v6050_v26  ;;  %v1260_v35 = vmul.f32 %v5735_v37, %v8103_v40  ;;  %v8106_v29 = vld [vmem:[#allocation172_spill] sm:$0xff]  ;;  %v8107_v39 = vld [vmem:[#allocation173_spill] sm:$0xff]  ;;  %v8108_v50 = vld [vmem:[#allocation250_spill] sm:$0xff] }
 0x37d   :  { %8099 = vst [vmem:[#allocation39_spill] sm:$0xff] %v6170_v45  ;;  %v1889_v28 = vpop.permute.xlu2 %1888  ;;  %v1270_v30 = vmul.f32 %v5735_v37, %v8104_v8  ;;  %v1274_v13 = vmul.f32 %v5735_v37, %v8105_v56  ;;  %v1263_v59 = vmul.f32 %v5735_v37, %v8106_v29  ;;  %v1273_v19 = vmul.f32 %v5735_v37, %v8107_v39  ;;  %v8109_v24 = vld [vmem:[#allocation174_spill] sm:$0xff]  ;;  %v8110_v8 = vld [vmem:[#allocation176_spill] sm:$0xff]  ;;  %v8112_v29 = vld [vmem:[#allocation179_spill] sm:$0xff] }
 0x37e   :  { %v1469_v63 = vadd.f32 %v1437_v44, %v1276_v54  ;;  %v1823_v26 = vmul.f32 %v5799_v43, %v8108_v50  ;;  %v6207_v9 = vadd.f32 %v1267_v32, %v6059_v48  ;;  %v1266_v40 = vmul.f32 %v5735_v37, %v8109_v24  ;;  %v8111_v56 = vld [vmem:[#allocation178_spill] sm:$0xff]  ;;  %v8113_v39 = vld [vmem:[#allocation181_spill] sm:$0xff] }
 0x37f   :  { %v1443_v45 = vmul.f32 %v5756_v1, %v8110_v8  ;;  %v1440_v21 = vmul.f32 %v5756_v1, %v8111_v56  ;;  %v1446_v58 = vmul.f32 %v5756_v1, %v8112_v29  ;;  %v1442_v54 = vmul.f32 %v5756_v1, %v8113_v39  ;;  %v8114_v8 = vld [vmem:[#allocation182_spill] sm:$0xff] }
 0x380   :  { %v1662_v44 = vadd.f32 %v1630_v55, %v1469_v63  ;;  %v2016_v50 = vmul.f32 %v5835_v0, %v1889_v28  ;;  %v6221_v48 = vadd.f32 %v1271_v60, %v6071_v33  ;;  %v6224_v32 = vadd.f32 %v1260_v35, %v6063_v4  ;;  %v8117_v28 = vld [vmem:[#allocation177_spill] sm:$0xff]  ;;  %v8120_v63 = vld [vmem:[#allocation184_spill] sm:$0xff] }
 0x381   :  { %v6227_v24 = vadd.f32 %v1270_v30, %v6068_v57  ;;  %v1449_v56 = vmul.f32 %v5756_v1, %v8114_v8  ;;  %v6232_v29 = vadd.f32 %v1274_v13, %v6083_v51  ;;  %v6235_v39 = vadd.f32 %v1263_v59, %v6074_v10  ;;  %v8119_v30 = vld [vmem:[#allocation211_spill] sm:$0xff]  ;;  %v8127_v8 = vld [vmem:[#allocation190_spill] sm:$0xff] }
 0x382   :  { %v6238_v55 = vadd.f32 %v1273_v19, %v6080_v15  ;;  %v1855_v33 = vadd.f32 %v1823_v26, %v1662_v44  ;;  %v6243_v4 = vadd.f32 %v1266_v40, %v6086_v6  ;;  %v6246_v57 = vadd.f32 %v1443_v45, %v6104_v3  ;;  %v8121_v45 = vld [vmem:[#allocation185_spill] sm:$0xff]  ;;  %v8122_v40 = vld [vmem:[#allocation186_spill] sm:$0xff] }
 0x383   :  { %8115 = vst [vmem:[#allocation40_spill] sm:$0xff] %v6232_v29  ;;  %v6250_v35 = vmul.f32 %v5735_v37, %v8117_v28  ;;  %v1472_v51 = vadd.f32 %v1440_v21, %v6098_v27  ;;  %v6253_v10 = vadd.f32 %v1446_v58, %v1285_v2  ;;  %v1474_v15 = vadd.f32 %v1442_v54, %v6115_v49  ;;  %v8123_v58 = vld [vmem:[#allocation187_spill] sm:$0xff]  ;;  %v8124_v49 = vld [vmem:[#allocation188_spill] sm:$0xff]  ;;  %v8125_v54 = vld [vmem:[#allocation189_spill] sm:$0xff] }
 0x384   :  { %v6240_v60 = vpop.permute.xlu1 %1795  ;;  %v1633_v13 = vmul.f32 %v5781_v16, %v8119_v30  ;;  %v2048_v59 = vadd.f32 %v2016_v50, %v1855_v33  ;;  %v6258_v6 = vadd.f32 %v1449_v56, %v1288_v41  ;;  %v1445_v3 = vmul.f32 %v5756_v1, %v8120_v63  ;;  %v8126_v41 = vld [vmem:[#allocation253_spill] sm:$0xff]  ;;  %v8128_v33 = vld [vmem:[#allocation191_spill] sm:$0xff]  ;;  %v8129_v30 = vld [vmem:[#allocation192_spill] sm:$0xff] }
 0x385   :  { %8116 = vst [vmem:[#allocation41_spill] sm:$0xff] %v6240_v60  ;;  %v1901_v19 = vpop.permute.xlu2 %1900  ;;  %v1452_v26 = vmul.f32 %v5756_v1, %v8121_v45  ;;  %v1439_v27 = vmul.f32 %v5756_v1, %v8122_v40  ;;  %v1448_v21 = vmul.f32 %v5756_v1, %v8123_v58  ;;  %v1455_v2 = vmul.f32 %v5756_v1, %v8124_v49  ;;  %v8130_v45 = vld [vmem:[#allocation214_spill] sm:$0xff]  ;;  %v6282_v58 = vpop.permute.xlu0 %1912 }
 0x386   :  { %8118 = vst [vmem:[#allocation42_spill] sm:$0xff] %v6250_v35  ;;  %v1441_v44 = vmul.f32 %v5756_v1, %v8125_v54  ;;  %v1826_v50 = vmul.f32 %v5799_v43, %v8126_v41  ;;  %v1451_v56 = vmul.f32 %v5756_v1, %v8127_v8  ;;  %v1458_v28 = vmul.f32 %v5756_v1, %v8128_v33  ;;  %v8131_v33 = vld [vmem:[#allocation193_spill] sm:$0xff]  ;;  %v8132_v29 = vld [vmem:[#allocation18_spill] sm:$0xff] }
 0x387   :  { %v1444_v63 = vmul.f32 %v5756_v1, %v8129_v30  ;;  %v1635_v40 = vmul.f32 %v5781_v16, %v8130_v45  ;;  %v1665_v49 = vadd.f32 %v1633_v13, %v1472_v51  ;;  %v3610_v54 = vunpack.c.l.bf16 %v5871_v17 }
 0x388   :  { %v2086_v37 = vadd.f32 %v5877_v20, %v2048_v59  ;;  %v2019_v41 = vmul.f32 %v5835_v0, %v1901_v19  ;;  %v1477_v8 = vadd.f32 %v1445_v3, %v6131_v53  ;;  %v6289_v60 = vadd.f32 %v1452_v26, %v6151_v31 }
 0x389   :  { %v1454_v30 = vmul.f32 %v5756_v1, %v8131_v33  ;;  %v1828_v45 = vmul.f32 %v5799_v43, %v8132_v29  ;;  %v6296_v35 = vadd.f32 %v1439_v27, %v6141_v46  ;;  %v6299_v17 = vadd.f32 %v1448_v21, %v6148_v47  ;;  %v8133_v47 = vld [vmem:[#allocation194_spill] sm:$0xff] }
 0x38a   :  { %v6302_v51 = vadd.f32 %v1455_v2, %v6163_v5  ;;  %v1858_v13 = vadd.f32 %v1826_v50, %v1665_v49  ;;  %v6307_v31 = vadd.f32 %v1441_v44, %v6154_v7  ;;  %v6310_v59 = vadd.f32 %v1451_v56, %v6160_v52  ;;  %v6323_v7 = vld [vmem:[%s7607_s2 + $0x10] sm:$0xff]   ;;  %v8135_v2 = vld [vmem:[#allocation196_spill] sm:$0xff]  ;;  %v8136_v50 = vld [vmem:[#allocation197_spill] sm:$0xff] }
 0x38b   :  { %v6313_v29 = vadd.f32 %v1458_v28, %v6175_v25  ;;  %v1667_v46 = vadd.f32 %v1635_v40, %v1474_v15  ;;  %v6316_v19 = vadd.f32 %v1444_v63, %v6166_v62  ;;  %v1461_v5 = vmul.f32 %v5756_v1, %v8133_v47  ;;  %v8134_v25 = vld [vmem:[#allocation195_spill] sm:$0xff]  ;;  %v6333_v62 = vld [vmem:[%s7607_s2 + $0x8] sm:$0xff]  }
 0x38c   :  { %v6304_v53 = vpop.permute.xlu1 %1807  ;;  %v2182_v3 = vadd.f32 %v3610_v54, %v2086_v37  ;;  %v2051_v26 = vadd.f32 %v2019_v41, %v1858_v13  ;;  %v6326_v52 = vadd.f32 %v1454_v30, %v6173_v38  ;;  %v1447_v15 = vmul.f32 %v5756_v1, %v8134_v25  ;;  %v8137_v28 = vld [vmem:[#allocation198_spill] sm:$0xff]  ;;  %v8138_v63 = vld [vmem:[#allocation199_spill] sm:$0xff]  ;;  %v8139_v49 = vld [vmem:[#allocation201_spill] sm:$0xff] }
 0x38d   :  { %v1909_v27 = vpop.permute.xlu2 %1908  ;;  %v1860_v21 = vadd.f32 %v1828_v45, %v1667_v46  ;;  %v1457_v44 = vmul.f32 %v5756_v1, %v8135_v2  ;;  %v1464_v56 = vmul.f32 %v5756_v1, %v8136_v50  ;;  %v1450_v38 = vmul.f32 %v5756_v1, %v8137_v28  ;;  %v8140_v41 = vld [vmem:[#allocation217_spill] sm:$0xff]  ;;  %v8141_v13 = vld [vmem:[#allocation202_spill] sm:$0xff]  ;;  %v6361_v28 = vpop.permute.xlu0 %1924 }
 0x38e   :  { %v2021_v37 = vmul.f32 %v5835_v0, %v1909_v27  ;;  %v1460_v40 = vmul.f32 %v5756_v1, %v8138_v63  ;;  %v1453_v54 = vmul.f32 %v5756_v1, %v8139_v49  ;;  %v1638_v33 = vmul.f32 %v5781_v16, %v8140_v41  ;;  %v8144_v63 = vld [vmem:[#allocation206_spill] sm:$0xff] }
 0x38f   :  { %v3619_v30 = vunpack.c.h.bf16 %v6323_v7  ;;  %v1463_v46 = vmul.f32 %v5756_v1, %v8141_v13  ;;  %3849 = vtanh.f32 %v2182_v3  ;;  %v3615_v47 = vunpack.c.h.bf16 %v6333_v62 }
 0x390   :  { %v2053_v45 = vadd.f32 %v2021_v37, %v1860_v21  ;;  %v2089_v27 = vadd.f32 %v5877_v20, %v2051_v26  ;;  %v6354_v25 = vadd.f32 %v1461_v5, %v6185_v12  ;;  %v6357_v2 = vadd.f32 %v1447_v15, %v6178_v14  ;;  %v8142_v26 = vld [vmem:[#allocation204_spill] sm:$0xff]  ;;  %v8143_v5 = vld [vmem:[#allocation205_spill] sm:$0xff] }
 0x391   :  { %v1831_v50 = vmul.f32 %v5799_v43, %v5515_v34  ;;  %v6365_v37 = vadd.f32 %v1457_v44, %v6183_v22  ;;  %v6368_v3 = vadd.f32 %v1464_v56, %v6221_v48  ;;  %v1456_v12 = vmul.f32 %v5756_v1, %v8142_v26  ;;  %v8145_v26 = vld [vmem:[#allocation209_spill] sm:$0xff] }
 0x392   :  { %v2091_v21 = vadd.f32 %v5877_v20, %v2053_v45  ;;  %v1466_v14 = vmul.f32 %v5756_v1, %v8143_v5  ;;  %v6377_v34 = vadd.f32 %v1450_v38, %v6192_v61  ;;  %v1636_v49 = vmul.f32 %v5781_v16, %v8144_v63 }
 0x393   :  { %v1670_v41 = vadd.f32 %v1638_v33, %v1477_v8  ;;  %v6382_v44 = vadd.f32 %v1460_v40, %v6207_v9  ;;  %v6385_v48 = vadd.f32 %v1453_v54, %v6224_v32  ;;  %v6388_v56 = vadd.f32 %v1463_v46, %v6227_v24  ;;  %v8146_v32 = vld [vmem:[#allocation212_spill] sm:$0xff]  ;;  %v8147_v40 = vld [vmem:[#allocation219_spill] sm:$0xff] }
 0x394   :  { %v6374_v15 = vpop.permute.xlu1 %1819  ;;  %v2187_v22 = vadd.f32 %v3619_v30, %v2091_v21  ;;  %v2185_v45 = vadd.f32 %v3615_v47, %v2089_v27  ;;  %v1639_v61 = vmul.f32 %v5781_v16, %v8145_v26  ;;  %v6394_v33 = vadd.f32 %v1456_v12, %v6235_v39  ;;  %v6406_v30 = vld [vmem:[%s7607_s2 + $0x20] sm:$0xff]   ;;  %v8150_v12 = vld [vmem:[#allocation242_spill] sm:$0xff] }
 0x395   :  { %v1921_v13 = vpop.permute.xlu2 %1920  ;;  %v1863_v38 = vadd.f32 %v1831_v50, %v1670_v41  ;;  %v3850_v8 = vpop.eup %3849  ;;  %v6397_v9 = vadd.f32 %v1466_v14, %v6238_v55  ;;  %v1642_v24 = vmul.f32 %v5781_v16, %v8146_v32  ;;  %v1632_v54 = vmul.f32 %v5781_v16, %v8147_v40  ;;  %v8148_v47 = vld [vmem:[#allocation220_spill] sm:$0xff]  ;;  %v8149_v50 = vld [vmem:[#allocation207_spill] sm:$0xff] }
 0x396   :  { %3851 = vtanh.f32 %v2187_v22  ;;  %v2024_v5 = vmul.f32 %v5835_v0, %v1921_v13  ;;  %v1668_v46 = vadd.f32 %v1636_v49, %v6246_v57  ;;  %v1641_v39 = vmul.f32 %v5781_v16, %v8148_v47  ;;  %v8151_v57 = vld [vmem:[#allocation24_spill] sm:$0xff]  ;;  %v8154_v47 = vld [vmem:[#allocation222_spill] sm:$0xff] }
 0x397   :  { %v3626_v27 = vunpack.c.l.bf16 %v6406_v30  ;;  %v6414_v21 = vmul.f32 %v5756_v1, %v8149_v50  ;;  %v1829_v14 = vmul.f32 %v5799_v43, %v8150_v12  ;;  %v1825_v63 = vmul.f32 %v5799_v43, %v5593_v36 }
 0x398   :  { %v2056_v55 = vadd.f32 %v2024_v5, %v1863_v38  ;;  %3853 = vtanh.f32 %v2185_v45  ;;  %v1671_v41 = vadd.f32 %v1639_v61, %v6253_v10  ;;  %v1834_v49 = vmul.f32 %v5799_v43, %v8151_v57  ;;  %v8152_v38 = vld [vmem:[#allocation215_spill] sm:$0xff]  ;;  %v8153_v10 = vld [vmem:[#allocation218_spill] sm:$0xff] }
 0x399   :  { %v2250_v13 = vmul.f32 %v3850_v8, %v5985_v18  ;;  %v6426_v26 = vadd.f32 %v1642_v24, %v6258_v6  ;;  %v1645_v5 = vmul.f32 %v5781_v16, %v8152_v38  ;;  %v1664_v32 = vadd.f32 %v1632_v54, %v6296_v35 }
 0x39a   :  { %v2094_v22 = vadd.f32 %v5877_v20, %v2056_v55  ;;  %v2022_v36 = vmul.f32 %v5835_v0, %v6282_v58  ;;  %v1648_v61 = vmul.f32 %v5781_v16, %v8153_v10  ;;  %v1673_v40 = vadd.f32 %v1641_v39, %v6299_v17  ;;  %v6438_v55 = vpop.permute.xlu0 %1936  ;;  %v6444_v58 = vld [vmem:[%s7607_s2 + $0x28] sm:$0xff]   ;;  %v8155_v39 = vld [vmem:[#allocation223_spill] sm:$0xff] }
 0x39b   :  { %v1634_v8 = vmul.f32 %v5781_v16, %v8154_v47  ;;  %v1861_v50 = vadd.f32 %v1829_v14, %v1668_v46  ;;  %v1857_v12 = vadd.f32 %v1825_v63, %v1664_v32  ;;  %v1644_v57 = vmul.f32 %v5781_v16, %v8155_v39  ;;  %v8158_v47 = vld [vmem:[#allocation27_spill] sm:$0xff] }
 0x39c   :  { %v3852_v45 = vpop.eup %3851  ;;  %v2190_v6 = vadd.f32 %v3626_v27, %v2094_v22  ;;  %2282 = vadd.xlane.f32.xlu2 %v2250_v13  ;;  %v1866_v38 = vadd.f32 %v1834_v49, %v1673_v40  ;;  %v6451_v46 = vadd.f32 %v1645_v5, %v6289_v60  ;;  %v3614_v63 = vunpack.c.l.bf16 %v6333_v62  ;;  %v6462_v49 = vld [vmem:[%s7607_s2 + $0x18] sm:$0xff]   ;;  %v8157_v5 = vld [vmem:[#allocation221_spill] sm:$0xff] }
 0x39d   :  { %v1897_v24 = vpop.permute.xlu1 %1896  ;;  %v1933_v54 = vpop.permute.xlu2 %1932  ;;  %v2255_v17 = vmul.f32 %v3852_v45, %v5985_v18  ;;  %v2054_v14 = vadd.f32 %v2022_v36, %v1861_v50  ;;  %v6455_v32 = vadd.f32 %v1648_v61, %v6302_v51  ;;  %v8156_v45 = vld [vmem:[#allocation247_spill] sm:$0xff]  ;;  %v3631_v40 = vunpack.c.h.bf16 %v6444_v58 }
 0x39e   :  { %v2018_v35 = vmul.f32 %v5835_v0, %v1897_v24  ;;  %3855 = vtanh.f32 %v2190_v6  ;;  %v2027_v27 = vmul.f32 %v5835_v0, %v1933_v54  ;;  %v3854_v22 = vpop.eup %3853  ;;  %v1832_v10 = vmul.f32 %v5799_v43, %v8156_v45  ;;  %v8159_v24 = vld [vmem:[#allocation16_spill] sm:$0xff] }
 0x39f   :  { %2292 = vadd.xlane.f32.xlu0 %v2255_v17  ;;  %v1651_v36 = vmul.f32 %v5781_v16, %v8157_v5  ;;  %v1666_v62 = vadd.f32 %v1634_v8, %v6307_v31  ;;  %v1827_v51 = vmul.f32 %v5799_v43, %v8158_v47  ;;  %v1676_v6 = vadd.f32 %v1644_v57, %v6310_v59  ;;  %v8161_v59 = vld [vmem:[#allocation226_spill] sm:$0xff] }
 0x3a0   :  { %v2050_v13 = vadd.f32 %v2018_v35, %v1857_v12  ;;  %v2059_v60 = vadd.f32 %v2027_v27, %v1866_v38  ;;  %v1837_v50 = vmul.f32 %v5799_v43, %v8159_v24  ;;  %v2253_v35 = vmul.f32 %v3854_v22, %v5985_v18  ;;  %v8160_v38 = vld [vmem:[#allocation225_spill] sm:$0xff] }
 0x3a1   :  { %v3622_v54 = vunpack.c.l.bf16 %v6462_v49  ;;  %v2092_v17 = vadd.f32 %v5877_v20, %v2054_v14  ;;  %v2025_v31 = vmul.f32 %v5835_v0, %v6361_v28  ;;  %v1637_v27 = vmul.f32 %v5781_v16, %v8160_v38 }
 0x3a2   :  { %v2088_v61 = vadd.f32 %v5877_v20, %v2050_v13  ;;  %v2097_v12 = vadd.f32 %v5877_v20, %v2059_v60  ;;  %v1647_v57 = vmul.f32 %v5781_v16, %v8161_v59  ;;  %v1864_v13 = vadd.f32 %v1832_v10, %v1671_v41 }
 0x3a3   :  { %v1859_v22 = vadd.f32 %v1827_v51, %v1666_v62  ;;  %v6487_v28 = vadd.f32 %v1651_v36, %v6313_v29  ;;  %v2188_v41 = vadd.f32 %v3622_v54, %v2092_v17  ;;  %v3618_v62 = vunpack.c.l.bf16 %v6323_v7  ;;  %v8162_v36 = vld [vmem:[#allocation251_spill] sm:$0xff]  ;;  %v8163_v54 = vld [vmem:[#allocation230_spill] sm:$0xff] }
 0x3a4   :  { %v2184_v8 = vadd.f32 %v3614_v63, %v2088_v61  ;;  %v3856_v39 = vpop.eup %3855  ;;  %v2193_v45 = vadd.f32 %v3631_v40, %v2097_v12  ;;  %2288 = vadd.xlane.f32.xlu2 %v2253_v35  ;;  %v1869_v63 = vadd.f32 %v1837_v50, %v1676_v6  ;;  %v6489_v61 = vpop.permute.xlu0 %1948  ;;  %v2057_v10 = vadd.f32 %v2025_v31, %v1864_v13  ;;  %v6495_v40 = vld [vmem:[%s7607_s2 + $0x38] sm:$0xff]  }
 0x3a5   :  { %v1905_v60 = vpop.permute.xlu1 %1904  ;;  %v1945_v14 = vpop.permute.xlu2 %1944  ;;  %v2258_v47 = vmul.f32 %v3856_v39, %v5985_v18  ;;  %v1669_v29 = vadd.f32 %v1637_v27, %v6316_v19  ;;  %v1835_v6 = vmul.f32 %v5799_v43, %v8162_v36  ;;  %v3638_v50 = vunpack.c.l.bf16 %v6495_v40  ;;  %v8164_v31 = vld [vmem:[#allocation28_spill] sm:$0xff]  ;;  %v8165_v39 = vld [vmem:[#allocation231_spill] sm:$0xff]  ;;  %v8166_v19 = vld [vmem:[#allocation29_spill] sm:$0xff] }
 0x3a6   :  { %3857 = vtanh.f32 %v2184_v8  ;;  %v2020_v5 = vmul.f32 %v5835_v0, %v1905_v60  ;;  %v2030_v24 = vmul.f32 %v5835_v0, %v1945_v14  ;;  %v1679_v35 = vadd.f32 %v1647_v57, %v6326_v52  ;;  %v8167_v14 = vld [vmem:[#allocation22_spill] sm:$0xff] }
 0x3a7   :  { %3859 = vtanh.f32 %v2193_v45  ;;  %2298 = vadd.xlane.f32.xlu0 %v2258_v47  ;;  %v1640_v17 = vmul.f32 %v5781_v16, %v8163_v54  ;;  %v1830_v8 = vmul.f32 %v5799_v43, %v8164_v31  ;;  %v1650_v38 = vmul.f32 %v5781_v16, %v8165_v39 }
 0x3a8   :  { %v2052_v51 = vadd.f32 %v2020_v5, %v1859_v22  ;;  %v2062_v12 = vadd.f32 %v2030_v24, %v1869_v63  ;;  %v1840_v27 = vmul.f32 %v5799_v43, %v8166_v19  ;;  %v3627_v59 = vunpack.c.h.bf16 %v6406_v30 }
 0x3a9   :  { %3861 = vtanh.f32 %v2188_v41  ;;  %v2095_v52 = vadd.f32 %v5877_v20, %v2057_v10  ;;  %v2028_v57 = vmul.f32 %v5835_v0, %v6438_v55  ;;  %v1867_v5 = vadd.f32 %v1835_v6, %v6426_v26  ;;  %v6524_v41 = vld [vmem:[%s7607_s2 + $0x40] sm:$0xff]  }
 0x3aa   :  { %v2090_v7 = vadd.f32 %v5877_v20, %v2052_v51  ;;  %v2100_v13 = vadd.f32 %v5877_v20, %v2062_v12  ;;  %v2081_v47 = vrot.slane %v8167_v14, 1  ;;  %v1862_v30 = vadd.f32 %v1830_v8, %v1669_v29  ;;  %v6532_v29 = vld [vmem:[%s7607_s2 + $0x30] sm:$0xff]  }
 0x3ab   :  { %v1672_v26 = vadd.f32 %v1640_v17, %v6357_v2  ;;  %v2060_v12 = vadd.f32 %v2028_v57, %v1867_v5  ;;  %v3623_v54 = vunpack.c.h.bf16 %v6462_v49  ;;  %v8168_v8 = vld [vmem:[#allocation254_spill] sm:$0xff]  ;;  %v3643_v17 = vunpack.c.h.bf16 %v6524_v41  ;;  %v8171_v57 = vld [vmem:[#allocation236_spill] sm:$0xff] }
 0x3ac   :  { %v3858_v45 = vpop.eup %3857  ;;  %v2186_v60 = vadd.f32 %v3618_v62, %v2090_v7  ;;  %v2196_v63 = vadd.f32 %v3638_v50, %v2100_v13  ;;  %v1872_v62 = vadd.f32 %v1840_v27, %v1679_v35  ;;  %v2191_v50 = vadd.f32 %v3627_v59, %v2095_v52  ;;  %v1961_v35 = vpop.permute.xlu0 %1960  ;;  %v8169_v59 = vld [vmem:[#allocation235_spill] sm:$0xff] }
 0x3ad   :  { %v3860_v22 = vpop.eup %3859  ;;  %v1917_v24 = vpop.permute.xlu1 %1916  ;;  %v2252_v51 = vmul.f32 %v3858_v45, %v5985_v18  ;;  %v1838_v7 = vmul.f32 %v5799_v43, %v8168_v8  ;;  %v6537_v2 = vperm.slane %v2081_v47, 0  ;;  %v1682_v27 = vadd.f32 %v1650_v38, %v6365_v37  ;;  %v8170_v45 = vld [vmem:[#allocation31_spill] sm:$0xff]  ;;  %v8173_v8 = vld [vmem:[#allocation224_spill] sm:$0xff] }
 0x3ae   :  { %3863 = vtanh.f32 %v2186_v60  ;;  %v2023_v36 = vmul.f32 %v5835_v0, %v1917_v24  ;;  %v1957_v55 = vpop.permute.xlu2 %1956  ;;  %v2261_v10 = vmul.f32 %v3860_v22, %v5985_v18  ;;  %v1643_v13 = vmul.f32 %v5781_v16, %v8169_v59  ;;  %v8172_v22 = vld [vmem:[#allocation32_spill] sm:$0xff] }
 0x3af   :  { %3865 = vtanh.f32 %v2196_v63  ;;  %v2033_v6 = vmul.f32 %v5835_v0, %v1957_v55  ;;  %2286 = vadd.xlane.f32.xlu1 %v2252_v51  ;;  %v3862_v19 = vpop.eup %3861  ;;  %v1833_v49 = vmul.f32 %v5799_v43, %v8170_v45  ;;  %v1653_v60 = vmul.f32 %v5781_v16, %v8171_v57  ;;  %v8174_v45 = vld [vmem:[#allocation13_spill] sm:$0xff] }
 0x3b0   :  { %v2055_v31 = vadd.f32 %v2023_v36, %v1862_v30  ;;  %2304 = vadd.xlane.f32.xlu0 %v2261_v10  ;;  %v1843_v5 = vmul.f32 %v5799_v43, %v8172_v22  ;;  %v3634_v14 = vunpack.c.l.bf16 %v6532_v29  ;;  %3867 = vtanh.f32 %v2191_v50 }
 0x3b1   :  { %v2065_v39 = vadd.f32 %v2033_v6, %v1872_v62  ;;  %v2098_v37 = vadd.f32 %v5877_v20, %v2060_v12  ;;  %v2031_v38 = vmul.f32 %v5835_v0, %v6489_v61  ;;  %v1870_v30 = vadd.f32 %v1838_v7, %v6451_v46 }
 0x3b2   :  { %v2093_v52 = vadd.f32 %v5877_v20, %v2055_v31  ;;  %v2256_v10 = vmul.f32 %v3862_v19, %v5985_v18  ;;  %v1865_v6 = vadd.f32 %v1833_v49, %v1672_v26  ;;  %v1654_v61 = vmul.f32 %v5781_v16, %v8173_v8  ;;  %v6566_v26 = vld [vmem:[%s7607_s2 + $0x50] sm:$0xff]  }
 0x3b3   :  { %v2103_v47 = vadd.f32 %v6537_v2, %v2065_v39  ;;  %v2194_v7 = vadd.f32 %v3634_v14, %v2098_v37  ;;  %v3630_v39 = vunpack.c.l.bf16 %v6444_v58  ;;  %v1675_v59 = vadd.f32 %v1643_v13, %v6377_v34 }
 0x3b4   :  { %v3864_v63 = vpop.eup %3863  ;;  %v2189_v24 = vadd.f32 %v3623_v54, %v2093_v52  ;;  %v1875_v54 = vadd.f32 %v1843_v5, %v1682_v27  ;;  %v1841_v27 = vmul.f32 %v5799_v43, %v8174_v45  ;;  %v3650_v49 = vunpack.c.l.bf16 %v6566_v26  ;;  %v8175_v5 = vld [vmem:[#allocation240_spill] sm:$0xff] }
 0x3b5   :  { %v3866_v51 = vpop.eup %3865  ;;  %v2199_v36 = vadd.f32 %v3643_v17, %v2103_v47  ;;  %v1929_v55 = vpop.permute.xlu1 %1928  ;;  %v2254_v62 = vmul.f32 %v3864_v63, %v5985_v18  ;;  %v2063_v17 = vadd.f32 %v2031_v38, %v1870_v30  ;;  %v1685_v22 = vadd.f32 %v1653_v60, %v6382_v44  ;;  %v8176_v63 = vld [vmem:[#allocation241_spill] sm:$0xff] }
 0x3b6   :  { %3869 = vtanh.f32 %v2189_v24  ;;  %v2026_v31 = vmul.f32 %v5835_v0, %v1929_v55  ;;  %v1969_v50 = vpop.permute.xlu2 %1968  ;;  %v2264_v12 = vmul.f32 %v3866_v51, %v5985_v18  ;;  %v3868_v57 = vpop.eup %3867  ;;  %v1646_v14 = vmul.f32 %v5781_v16, %v8175_v5  ;;  %v8179_v5 = vld [vmem:[#allocation34_spill] sm:$0xff] }
 0x3b7   :  { %3871 = vtanh.f32 %v2199_v36  ;;  %v2036_v46 = vmul.f32 %v5835_v0, %v1969_v50  ;;  %2294 = vadd.xlane.f32.xlu1 %v2256_v10  ;;  %2290 = vadd.xlane.f32.xlu2 %v2254_v62  ;;  %v1836_v47 = vmul.f32 %v5799_v43, %v5928_v42  ;;  %v1656_v34 = vmul.f32 %v5781_v16, %v8176_v63  ;;  %v1973_v38 = vpop.permute.xlu0 %1972 }
 0x3b8   :  { %v2058_v19 = vadd.f32 %v2026_v31, %v1865_v6  ;;  %2310 = vadd.xlane.f32.xlu0 %v2264_v12  ;;  %v1846_v13 = vmul.f32 %v5799_v43, %v5938_v23  ;;  %v2034_v37 = vmul.f32 %v5835_v0, %v1961_v35  ;;  %3873 = vtanh.f32 %v2194_v7  ;;  %v6604_v7 = vld [vmem:[%s7607_s2 + $0x48] sm:$0xff]  }
 0x3b9   :  { %v2068_v52 = vadd.f32 %v2036_v46, %v1875_v54  ;;  %v3639_v60 = vunpack.c.h.bf16 %v6495_v40  ;;  %v2101_v51 = vadd.f32 %v5877_v20, %v2063_v17  ;;  %v1873_v36 = vadd.f32 %v1841_v27, %v6455_v32  ;;  %v6594_v40 = vld [vmem:[%s7607_s2 + $0x58] sm:$0xff]  }
 0x3ba   :  { %v2096_v58 = vadd.f32 %v5877_v20, %v2058_v19  ;;  %v2259_v62 = vmul.f32 %v3868_v57, %v5985_v18  ;;  %v1868_v35 = vadd.f32 %v1836_v47, %v1675_v59  ;;  %v1878_v12 = vadd.f32 %v1846_v13, %v1685_v22  ;;  %v8177_v59 = vld [vmem:[#allocation15_spill] sm:$0xff]  ;;  %v8180_v13 = vld [vmem:[#allocation246_spill] sm:$0xff] }
 0x3bb   :  { %v2106_v24 = vadd.f32 %v6537_v2, %v2068_v52  ;;  %v2066_v32 = vadd.f32 %v2034_v37, %v1873_v36  ;;  %v6599_v54 = vadd.f32 %v1654_v61, %v6354_v25  ;;  %v2197_v46 = vadd.f32 %v3639_v60, %v2101_v51  ;;  %v8178_v52 = vld [vmem:[#allocation245_spill] sm:$0xff] }
 0x3bc   :  { %v3870_v44 = vpop.eup %3869  ;;  %v2192_v42 = vadd.f32 %v3630_v39, %v2096_v58  ;;  %v3635_v17 = vunpack.c.h.bf16 %v6532_v29  ;;  %v1678_v19 = vadd.f32 %v1646_v14, %v6385_v48  ;;  %v1844_v45 = vmul.f32 %v5799_v43, %v8177_v59 }
 0x3bd   :  { %v3872_v30 = vpop.eup %3871  ;;  %v2202_v55 = vadd.f32 %v3650_v49, %v2106_v24  ;;  %v1941_v10 = vpop.permute.xlu1 %1940  ;;  %v2257_v23 = vmul.f32 %v3870_v44, %v5985_v18  ;;  %v3655_v27 = vunpack.c.h.bf16 %v6594_v40  ;;  %v1688_v61 = vadd.f32 %v1656_v34, %v6388_v56 }
 0x3be   :  { %3875 = vtanh.f32 %v2192_v42  ;;  %v2029_v6 = vmul.f32 %v5835_v0, %v1941_v10  ;;  %v1981_v31 = vpop.permute.xlu2 %1980  ;;  %v2267_v50 = vmul.f32 %v3872_v30, %v5985_v18  ;;  %v3874_v25 = vpop.eup %3873  ;;  %v1649_v57 = vmul.f32 %v5781_v16, %v8178_v52 }
 0x3bf   :  { %3877 = vtanh.f32 %v2202_v55  ;;  %v2039_v8 = vmul.f32 %v5835_v0, %v1981_v31  ;;  %2300 = vadd.xlane.f32.xlu1 %v2259_v62  ;;  %2296 = vadd.xlane.f32.xlu2 %v2257_v23  ;;  %v1839_v22 = vmul.f32 %v5799_v43, %v6011_v11  ;;  %v1849_v48 = vmul.f32 %v5799_v43, %v8179_v5  ;;  %v1985_v24 = vpop.permute.xlu0 %1984  ;;  %v6636_v31 = vld [vmem:[%s7607_s2 + $0x68] sm:$0xff]  }
 0x3c0   :  { %v2061_v39 = vadd.f32 %v2029_v6, %v1868_v35  ;;  %2316 = vadd.xlane.f32.xlu0 %v2267_v50  ;;  %v3646_v14 = vunpack.c.l.bf16 %v6604_v7  ;;  %v2104_v47 = vadd.f32 %v6537_v2, %v2066_v32  ;;  %v1659_v56 = vmul.f32 %v5781_v16, %v8180_v13 }
 0x3c1   :  { %v2071_v49 = vadd.f32 %v2039_v8, %v1878_v12  ;;  %3879 = vtanh.f32 %v2197_v46  ;;  %v2037_v34 = vmul.f32 %v5835_v0, %v1973_v38  ;;  %v2262_v51 = vmul.f32 %v3874_v25, %v5985_v18  ;;  %v8182_v8 = vld [vmem:[#allocation25_spill] sm:$0xff] }
 0x3c2   :  { %v2099_v29 = vadd.f32 %v5877_v20, %v2061_v39  ;;  %v1876_v20 = vadd.f32 %v1844_v45, %v6487_v28  ;;  %v1871_v30 = vadd.f32 %v1839_v22, %v1678_v19  ;;  %v1881_v62 = vadd.f32 %v1849_v48, %v1688_v61  ;;  %v8181_v28 = vld [vmem:[#allocation227_spill] sm:$0xff] }
 0x3c3   :  { %v2109_v58 = vadd.f32 %v6537_v2, %v2071_v49  ;;  %v2200_v38 = vadd.f32 %v3646_v14, %v2104_v47  ;;  %v1657_v35 = vmul.f32 %v5781_v16, %v8181_v28  ;;  %v3642_v50 = vunpack.c.l.bf16 %v6524_v41  ;;  %v8183_v45 = vld [vmem:[#allocation35_spill] sm:$0xff]  ;;  %v8184_v41 = vld [vmem:[#allocation37_spill] sm:$0xff] }
 0x3c4   :  { %v3876_v63 = vpop.eup %3875  ;;  %v2195_v37 = vadd.f32 %v3635_v17, %v2099_v29  ;;  %v2069_v6 = vadd.f32 %v2037_v34, %v1876_v20  ;;  %v1681_v32 = vadd.f32 %v1649_v57, %v6394_v33  ;;  %v1847_v46 = vmul.f32 %v5799_v43, %v8182_v8  ;;  %v6663_v34 = vld [vmem:[%s7607_s2 + $0x70] sm:$0xff]  }
 0x3c5   :  { %v3878_v11 = vpop.eup %3877  ;;  %v2205_v44 = vadd.f32 %v3655_v27, %v2109_v58  ;;  %v1953_v60 = vpop.permute.xlu1 %1952  ;;  %v2260_v42 = vmul.f32 %v3876_v63, %v5985_v18  ;;  %v3662_v17 = vunpack.c.l.bf16 %v6636_v31  ;;  %v1691_v59 = vadd.f32 %v1659_v56, %v6397_v9  ;;  %v8189_v8 = vld [vmem:[#allocation39_spill] sm:$0xff] }
 0x3c6   :  { %3881 = vtanh.f32 %v2195_v37  ;;  %v2032_v36 = vmul.f32 %v5835_v0, %v1953_v60  ;;  %v1993_v55 = vpop.permute.xlu2 %1992  ;;  %v2270_v10 = vmul.f32 %v3878_v11, %v5985_v18  ;;  %v1842_v27 = vmul.f32 %v5799_v43, %v8183_v45 }
 0x3c7   :  { %3883 = vtanh.f32 %v2205_v44  ;;  %v2042_v23 = vmul.f32 %v5835_v0, %v1993_v55  ;;  %2306 = vadd.xlane.f32.xlu1 %v2262_v51  ;;  %2302 = vadd.xlane.f32.xlu2 %v2260_v42  ;;  %v3880_v19 = vpop.eup %3879  ;;  %v2349_v25 = vlaneseq  ;;  %v1852_v61 = vmul.f32 %v5799_v43, %v8184_v41  ;;  %v1997_v44 = vpop.permute.xlu0 %1996  ;;  %v6673_v42 = vld [vmem:[%s7607_s2 + $0x60] sm:$0xff]  }
 0x3c8   :  { %v2064_v12 = vadd.f32 %v2032_v36, %v1871_v30  ;;  %2322 = vadd.xlane.f32.xlu0 %v2270_v10  ;;  %3885 = vtanh.f32 %v2200_v38  ;;  %v3651_v33 = vunpack.c.h.bf16 %v6566_v26  ;;  %v2107_v22 = vadd.f32 %v6537_v2, %v2069_v6  ;;  %v8187_v6 = vld [vmem:[#allocation200_spill] sm:$0xff] }
 0x3c9   :  { %v2074_v39 = vadd.f32 %v2042_v23, %v1881_v62  ;;  %v2040_v29 = vmul.f32 %v5835_v0, %v1985_v24  ;;  %v6654_v5 = vshrl.u32 %v2349_v25, 7  ;;  %v1879_v14 = vadd.f32 %v1847_v46, %v6599_v54  ;;  %v8185_v54 = vld [vmem:[#allocation249_spill] sm:$0xff] }
 0x3ca   :  { %v2102_v49 = vadd.f32 %v6537_v2, %v2064_v12  ;;  %v2265_v63 = vmul.f32 %v3880_v19, %v5985_v18  ;;  %v1874_v13 = vadd.f32 %v1842_v27, %v1681_v32  ;;  %v1652_v20 = vmul.f32 %v5781_v16, %v8185_v54  ;;  %v8186_v62 = vld [vmem:[#allocation17_spill] sm:$0xff]  ;;  %v8188_v12 = vld [vmem:[#allocation210_spill] sm:$0xff]  ;;  %v8194_v54 = vld [vmem:[#allocation11_spill] sm:$0xff] }
 0x3cb   :  { %v2112_v52 = vadd.f32 %v6537_v2, %v2074_v39  ;;  %3811 = vset.pattern.permute.xlu0 %v6654_v5  ;;  %v1884_v24 = vadd.f32 %v1852_v61, %v1691_v59  ;;  %v2203_v51 = vadd.f32 %v3651_v33, %v2107_v22  ;;  %v2072_v30 = vadd.f32 %v2040_v29, %v1879_v14 }
 0x3cc   :  { %v3882_v57 = vpop.eup %3881  ;;  %v2198_v9 = vadd.f32 %v3642_v50, %v2102_v49  ;;  %v1491_v10 = vadd.f32 %v6414_v21, %v6243_v4  ;;  %v1850_v38 = vmul.f32 %v5799_v43, %v8186_v62  ;;  %v3667_v23 = vunpack.c.h.bf16 %v6663_v34  ;;  %v8199_v62 = vld [vmem:[#allocation14_spill] sm:$0xff] }
 0x3cd   :  { %v3884_v48 = vpop.eup %3883  ;;  %v2208_v47 = vadd.f32 %v3662_v17, %v2112_v52  ;;  %v1965_v58 = vpop.permute.xlu1 %1964  ;;  %v2263_v26 = vmul.f32 %v3882_v57, %v5985_v18  ;;  %v1467_v50 = vmul.f32 %v5756_v1, %v8187_v6  ;;  %v1462_v32 = vmul.f32 %v5756_v1, %v8188_v12 }
 0x3ce   :  { %3887 = vtanh.f32 %v2198_v9  ;;  %v2035_v56 = vmul.f32 %v5835_v0, %v1965_v58  ;;  %v2005_v37 = vpop.permute.xlu2 %2004  ;;  %v2273_v11 = vmul.f32 %v3884_v48, %v5985_v18  ;;  %v3647_v18 = vunpack.c.h.bf16 %v6604_v7  ;;  %v3886_v55 = vpop.eup %3885  ;;  %v8190_v9 = vld [vmem:[#allocation36_spill] sm:$0xff]  ;;  %v8191_v48 = vld [vmem:[#allocation42_spill] sm:$0xff] }
 0x3cf   :  { %3889 = vtanh.f32 %v2208_v47  ;;  %v2045_v60 = vmul.f32 %v5835_v0, %v2005_v37  ;;  %2312 = vadd.xlane.f32.xlu1 %v2265_v63  ;;  %2308 = vadd.xlane.f32.xlu2 %v2263_v26  ;;  %v1845_v7 = vmul.f32 %v5799_v43, %v8189_v8  ;;  %v1689_v17 = vadd.f32 %v1657_v35, %v6368_v3  ;;  %v6696_v3 = vld [vmem:[%s7612_s7] ss:$0 sm:$0xff] }
 0x3d0   :  { %v2067_v36 = vadd.f32 %v2035_v56, %v1874_v13  ;;  %2328 = vadd.xlane.f32.xlu0 %v2273_v11  ;;  %v1684_v4 = vadd.f32 %v1652_v20, %v1491_v10  ;;  %v3658_v21 = vunpack.c.l.bf16 %v6673_v42  ;;  %3891 = vtanh.f32 %v2203_v51  ;;  %v8192_v47 = vld [vmem:[#allocation232_spill] sm:$0xff]  ;;  %v8195_v20 = vld [vmem:[#allocation23_spill] sm:$0xff]  ;;  %v8198_v10 = vld [vmem:[#allocation85_spill] sm:$0xff] }
 0x3d1   :  { %v2077_v28 = vadd.f32 %v2045_v60, %v1884_v24  ;;  %v2110_v59 = vadd.f32 %v6537_v2, %v2072_v30  ;;  %v2043_v45 = vmul.f32 %v5835_v0, %v1997_v44  ;;  %v1882_v41 = vadd.f32 %v1850_v38, %v1689_v17  ;;  %v8193_v63 = vld [vmem:[#allocation252_spill] sm:$0xff]  ;;  %v8197_v30 = vld [vmem:[#allocation30_spill] sm:$0xff] }
 0x3d2   :  { %v2105_v46 = vadd.f32 %v6537_v2, %v2067_v36  ;;  %v2268_v35 = vmul.f32 %v6696_v3, %v3886_v55  ;;  %v1877_v57 = vadd.f32 %v1845_v7, %v1684_v4  ;;  %v1301_v14 = vadd.f32 %v8191_v48, %v8190_v9  ;;  %v8196_v44 = vld [vmem:[#allocation40_spill] sm:$0xff]  ;;  %v2009_v36 = vpop.permute.xlu0 %2008 }
 0x3d3   :  { %v2115_v39 = vadd.f32 %v6537_v2, %v2077_v28  ;;  %v1660_v58 = vmul.f32 %v5781_v16, %v8192_v47  ;;  %v1655_v26 = vmul.f32 %v5781_v16, %v8193_v63  ;;  %v2206_v13 = vadd.f32 %v3658_v21, %v2110_v59  ;;  %v8201_v28 = vld [vmem:[#allocation38_spill] sm:$0xff]  ;;  %v8203_v7 = vld [vmem:[#allocation180_spill] sm:$0xff] }
 0x3d4   :  { %v3888_v19 = vpop.eup %3887  ;;  %v2201_v27 = vadd.f32 %v3647_v18, %v2105_v46  ;;  %v2075_v56 = vadd.f32 %v2043_v45, %v1882_v41  ;;  %v3654_v37 = vunpack.c.l.bf16 %v6594_v40  ;;  %v535_v24 = vadd.f32 %v8195_v20, %v8194_v54  ;;  %v8202_v40 = vld [vmem:[#allocation41_spill] sm:$0xff]  ;;  %v8204_v46 = vld [vmem:[#allocation20_spill] sm:$0xff]  ;;  %v8210_v54 = vld [vmem:[#allocation19_spill] sm:$0xff] }
 0x3d5   :  { %v3890_v49 = vpop.eup %3889  ;;  %v2211_v61 = vadd.f32 %v3667_v23, %v2115_v39  ;;  %v1977_v33 = vpop.permute.xlu1 %1976  ;;  %v2266_v52 = vmul.f32 %v6696_v3, %v3888_v19  ;;  %v1499_v60 = vadd.f32 %v1467_v50, %v8196_v44  ;;  %v1494_v51 = vadd.f32 %v1462_v32, %v1301_v14  ;;  %v8200_v23 = vld [vmem:[#allocation33_spill] sm:$0xff]  ;;  %v8208_v14 = vld [vmem:[#allocation12_spill] sm:$0xff] }
 0x3d6   :  { %3893 = vtanh.f32 %v2201_v27  ;;  %v2038_v22 = vmul.f32 %v5835_v0, %v1977_v33  ;;  %v2276_v29 = vmul.f32 %v6696_v3, %v3890_v49  ;;  %v1853_v18 = vmul.f32 %v5799_v43, %v8197_v30  ;;  %v3892_v55 = vpop.eup %3891  ;;  %v8205_v27 = vld [vmem:[#allocation213_spill] sm:$0xff]  ;;  %v3750_v63 = vld [vmem:[%s7607_s2 + $0x78] sm:$0xff]  }
 0x3d7   :  { %3895 = vtanh.f32 %v2211_v61  ;;  %2318 = vadd.xlane.f32.xlu1 %v2268_v35  ;;  %2314 = vadd.xlane.f32.xlu2 %v2266_v52  ;;  %v696_v38 = vmul.f32 %v8199_v62, %v8198_v10  ;;  %v1111_v6 = vadd.f32 %v8201_v28, %v8200_v23  ;;  %v1848_v12 = vmul.f32 %v5799_v43, %v8202_v40 }
 0x3d8   :  { %v2070_v11 = vadd.f32 %v2038_v22, %v1877_v57  ;;  %2334 = vadd.xlane.f32.xlu0 %v2276_v29  ;;  %v1272_v50 = vmul.f32 %v8204_v46, %v8203_v7  ;;  %v1692_v32 = vadd.f32 %v1660_v58, %v1499_v60  ;;  %v1687_v17 = vadd.f32 %v1655_v26, %v1494_v51  ;;  %v8206_v22 = vld [vmem:[#allocation118_spill] sm:$0xff] }
 0x3d9   :  { %v3663_v4 = vunpack.c.h.bf16 %v6636_v31  ;;  %3897 = vtanh.f32 %v2206_v13  ;;  %v2113_v39 = vadd.f32 %v6537_v2, %v2075_v56  ;;  %v2046_v19 = vmul.f32 %v5835_v0, %v2009_v36  ;;  %v8207_v29 = vld [vmem:[#allocation26_spill] sm:$0xff]  ;;  %v8211_v36 = vld [vmem:[#allocation183_spill] sm:$0xff] }
 0x3da   :  { %v2108_v8 = vadd.f32 %v6537_v2, %v2070_v11  ;;  %v1465_v49 = vmul.f32 %v5756_v1, %v8205_v27  ;;  %v1885_v41 = vadd.f32 %v1853_v18, %v1692_v32  ;;  %v2271_v33 = vmul.f32 %v6696_v3, %v3892_v55  ;;  %v8209_v11 = vld [vmem:[#allocation151_spill] sm:$0xff]  ;;  %v8213_v32 = vld [vmem:[#allocation21_spill] sm:$0xff] }
 0x3db   :  { %v1880_v52 = vadd.f32 %v1848_v12, %v1687_v17  ;;  %v889_v9 = vmul.f32 %v8207_v29, %v8206_v22  ;;  %v1304_v48 = vadd.f32 %v1272_v50, %v1111_v6  ;;  %v1658_v47 = vmul.f32 %v5781_v16, %v8208_v14  ;;  %v8212_v12 = vld [vmem:[#allocation216_spill] sm:$0xff] }
 0x3dc   :  { %v3894_v21 = vpop.eup %3893  ;;  %v2204_v59 = vadd.f32 %v3654_v37, %v2108_v8  ;;  %v2209_v58 = vadd.f32 %v3663_v4, %v2113_v39  ;;  %v2078_v26 = vadd.f32 %v2046_v19, %v1885_v41  ;;  %v3659_v13 = vunpack.c.h.bf16 %v6673_v42 }
 0x3dd   :  { %v3896_v45 = vpop.eup %3895  ;;  %v1989_v61 = vpop.permute.xlu1 %1988  ;;  %v2269_v35 = vmul.f32 %v6696_v3, %v3894_v21  ;;  %v728_v37 = vadd.f32 %v696_v38, %v535_v24  ;;  %v1082_v20 = vmul.f32 %v8210_v54, %v8209_v11  ;;  %v1497_v44 = vadd.f32 %v1465_v49, %v1304_v48 }
 0x3de   :  { %3899 = vtanh.f32 %v2204_v59  ;;  %v2041_v31 = vmul.f32 %v5835_v0, %v1989_v61  ;;  %v2279_v57 = vmul.f32 %v6696_v3, %v3896_v45  ;;  %v1851_v51 = vmul.f32 %v5799_v43, %v6304_v53 }
 0x3df   :  { %2324 = vadd.xlane.f32.xlu1 %v2271_v33  ;;  %2320 = vadd.xlane.f32.xlu2 %v2269_v35  ;;  %v3898_v60 = vpop.eup %3897  ;;  %v921_v18 = vadd.f32 %v889_v9, %v728_v37  ;;  %v1275_v55 = vmul.f32 %v8204_v46, %v8211_v36  ;;  %v1690_v10 = vadd.f32 %v1658_v47, %v1497_v44  ;;  %v3670_v62 = vunpack.c.l.bf16 %v3750_v63  ;;  %v2346_v35 = vld [vmem:[%s7609_s4] sm:$0x3] }
 0x3e0   :  { %v2073_v56 = vadd.f32 %v2041_v31, %v1880_v52  ;;  %2340 = vadd.xlane.f32.xlu0 %v2279_v57  ;;  %3901 = vtanh.f32 %v2209_v58  ;;  %v2116_v24 = vadd.f32 %v6537_v2, %v2078_v26  ;;  %v6749_v23 = vadd.s32 8, %v6654_v5 }
 0x3e1   :  { %v1114_v28 = vadd.f32 %v1082_v20, %v921_v18  ;;  %v2274_v53 = vmul.f32 %v6696_v3, %v3898_v60  ;;  %v1468_v8 = vmul.f32 %v5756_v1, %v8212_v12  ;;  %v1883_v7 = vadd.f32 %v1851_v51, %v1690_v10 }
 0x3e2   :  { %v2111_v30 = vadd.f32 %v6537_v2, %v2073_v56  ;;  %3812 = vset.pattern.permute.xlu1 %v6749_v23  ;;  %v1661_v17 = vmul.f32 %v5781_v16, %v8213_v32  ;;  %v2212_v4 = vadd.f32 %v3670_v62, %v2116_v24  ;;  %v3666_v21 = vunpack.c.l.bf16 %v6663_v34 }
 0x3e3   :  { %v1307_v50 = vadd.f32 %v1275_v55, %v1114_v28  ;;  %v1854_v1 = vmul.f32 %v5799_v43, %v6374_v15  ;;  %v6764_v61 = vadd.s32 16, %v6654_v5  ;;  %v3671_v15 = vunpack.c.h.bf16 %v3750_v63  ;;  %v6788_v26 = vpop.xlane.xlu0 %2284 }
 0x3e4   :  { %v3900_v42 = vpop.eup %3899  ;;  %v2207_v38 = vadd.f32 %v3659_v13, %v2111_v30  ;;  %v6773_v57 = vperm.slane %v2346_v35, 0  ;;  %v6796_v56 = vadd.s32 24, %v6654_v5  ;;  %v6803_v37 = vadd.s32 32, %v6654_v5 }
 0x3e5   :  { %v2001_v6 = vpop.permute.xlu1 %2000  ;;  %v2272_v40 = vmul.f32 %v6696_v3, %v3900_v42  ;;  %v1500_v59 = vadd.f32 %v1468_v8, %v1307_v50  ;;  %3813 = vset.pattern.permute.xlu2 %v6764_v61  ;;  %v6808_v54 = vperm.slane %v2346_v35, 1  ;;  %v6814_v44 = vadd.s32 40, %v6654_v5 }
 0x3e6   :  { %3903 = vtanh.f32 %v2207_v38  ;;  %v2044_v46 = vmul.f32 %v5835_v0, %v2001_v6  ;;  %v3902_v19 = vpop.eup %3901  ;;  %v2387_v60 = vadd.s32 48, %v6654_v5  ;;  %v6830_v55 = vadd.s32 64, %v6654_v5 }
 0x3e7   :  { %2330 = vadd.xlane.f32.xlu1 %v2274_v53  ;;  %2326 = vadd.xlane.f32.xlu2 %v2272_v40  ;;  %v1693_v49 = vadd.f32 %v1661_v17, %v1500_v59  ;;  %3905 = vtanh.f32 %v2212_v4  ;;  %v2277_v16 = vmul.f32 %v6696_v3, %v3902_v19  ;;  %v2417_v62 = vadd.s32 88, %v6654_v5 }
 0x3e8   :  { %v2076_v39 = vadd.f32 %v2044_v46, %v1883_v7  ;;  %v6840_v24 = vadd.s32 72, %v6654_v5  ;;  %v2411_v6 = vadd.s32 80, %v6654_v5  ;;  %v8214_v12 = vmov 0  }
 0x3e9   :  { %v1886_v52 = vadd.f32 %v1854_v1, %v1693_v49  ;;  %v2429_v50 = vadd.s32 104, %v6654_v5  ;;  %v6872_v4 = vadd.s32 112, %v6654_v5  ;;  %v2441_v59 = vadd.s32 120, %v6654_v5 }
 0x3ea   :  { %v2114_v45 = vadd.f32 %v6537_v2, %v2076_v39 }
 0x3ec   :  { %v3904_v27 = vpop.eup %3903  ;;  %v2210_v41 = vadd.f32 %v3666_v21, %v2114_v45 }
 0x3ed   :  { %v2013_v33 = vpop.permute.xlu1 %2012  ;;  %v2275_v34 = vmul.f32 %v6696_v3, %v3904_v27  ;;  %v3906_v22 = vpop.eup %3905 }
 0x3ee   :  { %3907 = vtanh.f32 %v2210_v41  ;;  %v2047_v43 = vmul.f32 %v5835_v0, %v2013_v33  ;;  %v2280_v14 = vmul.f32 %v6696_v3, %v3906_v22  ;;  %v6780_v0 = vadd.s32 56, %v6654_v5 }
 0x3ef   :  { %2336 = vadd.xlane.f32.xlu1 %v2277_v16  ;;  %2332 = vadd.xlane.f32.xlu2 %v2275_v34 }
 0x3f0   :  { %v2079_v31 = vadd.f32 %v2047_v43, %v1886_v52 }
 0x3f2   :  { %v2117_v29 = vadd.f32 %v6537_v2, %v2079_v31  ;;  %v6786_v2 = vadd.s32 96, %v6654_v5 }
 0x3f4   :  { %v3908_v9 = vpop.eup %3907  ;;  %v2213_v48 = vadd.f32 %v3671_v15, %v2117_v29  ;;  %2353 = vperm.xlu0 %3811, %v6773_v57  }
 0x3f5   :  { %v2278_v47 = vmul.f32 %v6696_v3, %v3908_v9 }
 0x3f6   :  { %3909 = vtanh.f32 %v2213_v48 }
 0x3f7   :  { %2342 = vadd.xlane.f32.xlu1 %v2280_v14  ;;  %2338 = vadd.xlane.f32.xlu2 %v2278_v47 }
 0x3fc   :  { %v3910_v58 = vpop.eup %3909  ;;  %3818 = vset.pattern.permute.xlu0 %v6780_v0 }
 0x3fd   :  { %v2281_v63 = vmul.f32 %v6696_v3, %v3910_v58 }
 0x3ff   :  { %2344 = vadd.xlane.f32.xlu2 %v2281_v63 }
 0x404   :  { %2395 = vperm.xlu0 %3818, %v6773_v57  }
 0x40c   :  { %3823 = vset.pattern.permute.xlu0 %v6786_v2 }
 0x40f   :  { %v2283_v11 = vpop.xlane.xlu2 %2282 }
 0x410   :  { %2359 = vperm.xlu1 %3812, %v6773_v57  }
 0x412   :  { %v6792_v13 = vpop.xlane.xlu0 %2292 }
 0x414   :  { %2425 = vperm.xlu0 %3823, %v6773_v57  }
 0x417   :  { %2365 = vperm.xlu2 %3813, %v6773_v57   ;;  %v6819_v51 = vpop.xlane.xlu2 %2288 }
 0x418   :  { %3814 = vset.pattern.permute.xlu1 %v6796_v56 }
 0x41a   :  { %v6800_v3 = vpop.xlane.xlu0 %2298 }
 0x41c   :  { %3828 = vset.pattern.permute.xlu0 %v6749_v23 }
 0x41f   :  { %3815 = vset.pattern.permute.xlu2 %v6803_v37 }
 0x420   :  { %2371 = vperm.xlu1 %3814, %v6773_v57  }
 0x422   :  { %v6823_v18 = vpop.xlane.xlu1 %2286 }
 0x423   :  { %v6810_v20 = vpop.xlane.xlu0 %2304 }
 0x424   :  { %2456 = vperm.xlu0 %3828, %v6808_v54  }
 0x427   :  { %2377 = vperm.xlu2 %3815, %v6773_v57  }
 0x428   :  { %3816 = vset.pattern.permute.xlu1 %v6814_v44 }
 0x42a   :  { %v6826_v36 = vpop.xlane.xlu2 %2290  ;;  %v6837_v42 = vpop.xlane.xlu1 %2294 }
 0x42b   :  { %v6821_v30 = vpop.xlane.xlu0 %2310 }
 0x42c   :  { %3833 = vset.pattern.permute.xlu0 %v2387_v60 }
 0x42f   :  { %3817 = vset.pattern.permute.xlu2 %v2387_v60 }
 0x430   :  { %2383 = vperm.xlu1 %3816, %v6773_v57  }
 0x432   :  { %v6842_v38 = vpop.xlane.xlu2 %2296  ;;  %v6848_v28 = vpop.xlane.xlu1 %2300 }
 0x433   :  { %v6832_v10 = vpop.xlane.xlu0 %2316 }
 0x434   :  { %2486 = vperm.xlu0 %3833, %v6808_v54  }
 0x437   :  { %2389 = vperm.xlu2 %3817, %v6773_v57  }
 0x438   :  { %3819 = vset.pattern.permute.xlu1 %v6830_v55 }
 0x43a   :  { %v6852_v53 = vpop.xlane.xlu2 %2302  ;;  %v6858_v8 = vpop.xlane.xlu1 %2306 }
 0x43b   :  { %v6845_v23 = vpop.xlane.xlu0 %2322 }
 0x43c   :  { %3838 = vset.pattern.permute.xlu0 %v2417_v62 }
 0x43f   :  { %3820 = vset.pattern.permute.xlu2 %v6840_v24 }
 0x440   :  { %2401 = vperm.xlu1 %3819, %v6773_v57  }
 0x442   :  { %v6860_v7 = vpop.xlane.xlu2 %2308  ;;  %v6867_v32 = vpop.xlane.xlu1 %2312 }
 0x443   :  { %v6855_v40 = vpop.xlane.xlu0 %2328 }
 0x444   :  { %2516 = vperm.xlu0 %3838, %v6808_v54  }
 0x447   :  { %2407 = vperm.xlu2 %3820, %v6773_v57  }
 0x448   :  { %3821 = vset.pattern.permute.xlu1 %v2411_v6 }
 0x44a   :  { %v6869_v17 = vpop.xlane.xlu2 %2314  ;;  %v6878_v39 = vpop.xlane.xlu1 %2318 }
 0x44b   :  { %v6863_v46 = vpop.xlane.xlu0 %2334 }
 0x44c   :  { %3843 = vset.pattern.permute.xlu0 %v8214_v12 }
 0x44f   :  { %3822 = vset.pattern.permute.xlu2 %v2417_v62 }
 0x450   :  { %2413 = vperm.xlu1 %3821, %v6773_v57  }
 0x452   :  { %v6880_v19 = vpop.xlane.xlu2 %2320  ;;  %v6887_v27 = vpop.xlane.xlu1 %2324 }
 0x453   :  { %v6874_v21 = vpop.xlane.xlu0 %2340 }
 0x457   :  { %2419 = vperm.xlu2 %3822, %v6773_v57  }
 0x458   :  { %3824 = vset.pattern.permute.xlu1 %v2429_v50 }
 0x45a   :  { %v6889_v49 = vpop.xlane.xlu2 %2326  ;;  %v6893_v41 = vpop.xlane.xlu1 %2330 }
 0x45f   :  { %3825 = vset.pattern.permute.xlu2 %v6872_v4 }
 0x460   :  { %2431 = vperm.xlu1 %3824, %v6773_v57  }
 0x462   :  { %v6896_v33 = vpop.xlane.xlu2 %2332  ;;  %v6900_v16 = vpop.xlane.xlu1 %2336 }
 0x466   :  { %v2354_v1 = vpop.permute.xlu0 %2353 }
 0x467   :  { %v6883_v45 = vadd.f32 %v2354_v1, %v2283_v11  ;;  %2437 = vperm.xlu2 %3825, %v6773_v57  }
 0x468   :  { %3826 = vset.pattern.permute.xlu1 %v2441_v59 }
 0x469   :  { %2639 = vperm.xlu0 %3843, %v6883_v45  }
 0x46a   :  { %v6903_v34 = vpop.xlane.xlu2 %2338 }
 0x46f   :  { %3827 = vset.pattern.permute.xlu2 %v6654_v5  ;;  %v6907_v5 = vpop.xlane.xlu1 %2342 }
 0x470   :  { %2443 = vperm.xlu1 %3826, %v6773_v57  }
 0x472   :  { %v6909_v35 = vpop.xlane.xlu2 %2344 }
 0x476   :  { %v2396_v14 = vpop.permute.xlu0 %2395 }
 0x477   :  { %2450 = vperm.xlu2 %3827, %v6808_v54   ;;  %v6970_v60 = vadd.f32 %v2396_v14, %v6842_v38 }
 0x478   :  { %3829 = vset.pattern.permute.xlu1 %v6764_v61 }
 0x47a   :  { %v2366_v52 = vpop.permute.xlu2 %2365 }
 0x47f   :  { %3830 = vset.pattern.permute.xlu2 %v6796_v56 }
 0x480   :  { %2462 = vperm.xlu1 %3829, %v6808_v54  }
 0x482   :  { %v2360_v61 = vpop.permute.xlu1 %2359  ;;  %v2378_v15 = vpop.permute.xlu2 %2377 }
 0x486   :  { %v2426_v58 = vpop.permute.xlu0 %2425 }
 0x487   :  { %2468 = vperm.xlu2 %3830, %v6808_v54  }
 0x488   :  { %3831 = vset.pattern.permute.xlu1 %v6803_v37  ;;  %v6953_v37 = vadd.f32 %v2366_v52, %v6823_v18 }
 0x48f   :  { %3832 = vset.pattern.permute.xlu2 %v6814_v44 }
 0x490   :  { %2474 = vperm.xlu1 %3831, %v6808_v54  }
 0x491   :  { %v2390_v22 = vpop.permute.xlu2 %2389 }
 0x492   :  { %v2372_v43 = vpop.permute.xlu1 %2371 }
 0x493   :  { %v6956_v11 = vadd.f32 %v2372_v43, %v6819_v51 }
 0x496   :  { %v2457_v56 = vpop.permute.xlu0 %2456 }
 0x497   :  { %2480 = vperm.xlu2 %3832, %v6808_v54  }
 0x498   :  { %3834 = vset.pattern.permute.xlu1 %v6780_v0 }
 0x49f   :  { %3835 = vset.pattern.permute.xlu2 %v6830_v55 }
 0x4a0   :  { %2492 = vperm.xlu1 %3834, %v6808_v54  }
 0x4a1   :  { %v2408_v29 = vpop.permute.xlu2 %2407 }
 0x4a2   :  { %v2384_v31 = vpop.permute.xlu1 %2383  ;;  %v6973_v51 = vadd.f32 %v2408_v29, %v6848_v28 }
 0x4a3   :  { %v6918_v57 = vadd.f32 %v2384_v31, %v6792_v13 }
 0x4a5   :  { %2654 = vperm.xlu0 %3843, %v6918_v57  }
 0x4a7   :  { %2498 = vperm.xlu2 %3835, %v6808_v54  }
 0x4a8   :  { %3836 = vset.pattern.permute.xlu1 %v6840_v24 }
 0x4af   :  { %3837 = vset.pattern.permute.xlu2 %v2411_v6 }
 0x4b0   :  { %2504 = vperm.xlu1 %3836, %v6808_v54  }
 0x4b1   :  { %v2420_v47 = vpop.permute.xlu2 %2419 }
 0x4b2   :  { %v2402_v9 = vpop.permute.xlu1 %2401  ;;  %v6931_v0 = vadd.f32 %v2420_v47, %v6810_v20  ;;  %v6962_v20 = vadd.f32 %v2378_v15, %v6826_v36  ;;  %v6981_v36 = vadd.f32 %v2426_v58, %v6858_v8  ;;  %v7054_v15 = vand.u32 127, %v2349_v25 }
 0x4b3   :  { %v6925_v48 = vadd.f32 %v2402_v9, %v6800_v3  ;;  %v6947_v3 = vadd.f32 %v2360_v61, %v6788_v26 }
 0x4b4   :  { %v7060_v29 = vadd.s32 4294967288, %v7054_v15 }
 0x4b5   :  { %2663 = vperm.xlu0 %3843, %v6925_v48  }
 0x4b7   :  { %2510 = vperm.xlu2 %3837, %v6808_v54  }
 0x4b8   :  { %3839 = vset.pattern.permute.xlu1 %v6786_v2  ;;  %v6942_v2 = vadd.f32 %v2457_v56, %v6832_v10 }
 0x4bd   :  { %2672 = vperm.xlu0 %3843, %v6931_v0  }
 0x4bf   :  { %3840 = vset.pattern.permute.xlu2 %v2429_v50 }
 0x4c0   :  { %2522 = vperm.xlu1 %3839, %v6808_v54  }
 0x4c1   :  { %v2438_v63 = vpop.permute.xlu2 %2437 }
 0x4c2   :  { %v6936_v13 = vadd.f32 %v2438_v63, %v6821_v30  ;;  %v2414_v26 = vpop.permute.xlu1 %2413 }
 0x4c3   :  { %v6978_v18 = vadd.f32 %v2414_v26, %v6852_v53 }
 0x4c5   :  { %2681 = vperm.xlu0 %3843, %v6936_v13  }
 0x4c7   :  { %2528 = vperm.xlu2 %3840, %v6808_v54  }
 0x4c8   :  { %3841 = vset.pattern.permute.xlu1 %v6872_v4 }
 0x4cd   :  { %2690 = vperm.xlu0 %3843, %v6942_v2  }
 0x4cf   :  { %3842 = vset.pattern.permute.xlu2 %v2441_v59 }
 0x4d0   :  { %2534 = vperm.xlu1 %3841, %v6808_v54  }
 0x4d1   :  { %v2451_v55 = vpop.permute.xlu2 %2450 }
 0x4d2   :  { %v2432_v44 = vpop.permute.xlu1 %2431  ;;  %v6998_v6 = vadd.f32 %v2451_v55, %v6869_v17 }
 0x4d3   :  { %v6986_v62 = vadd.f32 %v2432_v44, %v6860_v7 }
 0x4d7   :  { %2540 = vperm.xlu2 %3842, %v6808_v54   ;;  %v6965_v54 = vadd.f32 %v2390_v22, %v6837_v42 }
 0x4d8   :  { %3844 = vset.pattern.permute.xlu1 %v8214_v12 }
 0x4d9   :  { %2642 = vperm.xlu1 %3844, %v6947_v3  }
 0x4df   :  { %3845 = vset.pattern.permute.xlu2 %v8214_v12 }
 0x4e0   :  { %2645 = vperm.xlu2 %3845, %v6953_v37  }
 0x4e1   :  { %2648 = vperm.xlu1 %3844, %v6956_v11   ;;  %v2469_v24 = vpop.permute.xlu2 %2468 }
 0x4e2   :  { %v2444_v30 = vpop.permute.xlu1 %2443  ;;  %v7006_v8 = vadd.f32 %v2469_v24, %v6880_v19 }
 0x4e3   :  { %v6989_v42 = vadd.f32 %v2444_v30, %v6867_v32  ;;  %v2487_v32 = vpop.permute.xlu0 %2486 }
 0x4e4   :  { %v7018_v4 = vadd.f32 %v2487_v32, %v6889_v49 }
 0x4e8   :  { %2651 = vperm.xlu2 %3845, %v6962_v20  }
 0x4e9   :  { %2657 = vperm.xlu1 %3844, %v6965_v54  }
 0x4eb   :  { %v2517_v1 = vpop.permute.xlu0 %2516 }
 0x4f0   :  { %2660 = vperm.xlu2 %3845, %v6970_v60  }
 0x4f1   :  { %2666 = vperm.xlu1 %3844, %v6973_v51   ;;  %v2481_v12 = vpop.permute.xlu2 %2480 }
 0x4f2   :  { %v2463_v10 = vpop.permute.xlu1 %2462  ;;  %v7009_v7 = vadd.f32 %v2481_v12, %v6887_v27 }
 0x4f3   :  { %v7001_v53 = vadd.f32 %v2463_v10, %v6878_v39  ;;  %v2640_v31 = vpop.permute.xlu0 %2639 }
 0x4f4   :  { %8215 = vst [vmem:[#allocation43_spill] sm:$0xff] %v7009_v7  ;;  %v2736_v9 = vperm.slane %v2640_v31, %v7054_v15  ;;  %v7086_v31 = vadd.s32 4294967264, %v7054_v15 }
 0x4f8   :  { %2669 = vperm.xlu2 %3845, %v6978_v18  }
 0x4f9   :  { %2675 = vperm.xlu1 %3844, %v6981_v36  }
 0x500   :  { %2678 = vperm.xlu2 %3845, %v6986_v62  }
 0x501   :  { %2684 = vperm.xlu1 %3844, %v6989_v42  }
 0x502   :  { %v2475_v38 = vpop.permute.xlu1 %2474 }
 0x503   :  { %v6994_v28 = vadd.f32 %v2475_v38, %v6845_v23  ;;  %v2499_v23 = vpop.permute.xlu2 %2498 }
 0x504   :  { %v7021_v39 = vadd.f32 %v2499_v23, %v6893_v41 }
 0x505   :  { %2699 = vperm.xlu0 %3843, %v6994_v28  }
 0x506   :  { %8216 = vst [vmem:[#allocation44_spill] sm:$0xff] %v7021_v39 }
 0x508   :  { %2687 = vperm.xlu2 %3845, %v6998_v6  }
 0x509   :  { %2693 = vperm.xlu1 %3844, %v7001_v53  }
 0x510   :  { %2696 = vperm.xlu2 %3845, %v7006_v8  }
 0x511   :  { %2702 = vperm.xlu1 %3844, %v7009_v7   ;;  %v2511_v19 = vpop.permute.xlu2 %2510  ;;  %v7103_v7 = vadd.s32 4294967240, %v7054_v15 }
 0x512   :  { %v2493_v50 = vpop.permute.xlu1 %2492  ;;  %v7026_v59 = vadd.f32 %v2511_v19, %v6863_v46 }
 0x513   :  { %v7014_v17 = vadd.f32 %v2493_v50, %v6855_v40  ;;  %v7030_v40 = vadd.f32 %v2517_v1, %v6900_v16 }
 0x514   :  { %8217 = vst [vmem:[#allocation45_spill] sm:$0xff] %v7026_v59 }
 0x515   :  { %2708 = vperm.xlu0 %3843, %v7014_v17   ;;  %8218 = vst [vmem:[#allocation46_spill] sm:$0xff] %v7030_v40 }
 0x517   :  { %v2655_v56 = vpop.permute.xlu0 %2654 }
 0x518   :  { %2705 = vperm.xlu2 %3845, %v7018_v4  }
 0x519   :  { %2711 = vperm.xlu1 %3844, %v7021_v39  }
 0x51d   :  { %2717 = vperm.xlu0 %3843, %v7026_v59  }
 0x521   :  { %2720 = vperm.xlu1 %3844, %v7030_v40   ;;  %v2529_v27 = vpop.permute.xlu2 %2528 }
 0x522   :  { %v7034_v49 = vadd.f32 %v2529_v27, %v6874_v21  ;;  %v2505_v41 = vpop.permute.xlu1 %2504 }
 0x523   :  { %v7037_v61 = vadd.f32 %v2505_v41, %v6896_v33 }
 0x524   :  { %8219 = vst [vmem:[#allocation47_spill] sm:$0xff] %v7034_v49 }
 0x525   :  { %2714 = vperm.xlu2 %3845, %v7037_v61   ;;  %2726 = vperm.xlu0 %3843, %v7034_v49  }
 0x527   :  { %v2664_v30 = vpop.permute.xlu0 %2663 }
 0x52f   :  { %v7071_v24 = vpop.permute.xlu0 %2672 }
 0x531   :  { %v2541_v16 = vpop.permute.xlu2 %2540 }
 0x532   :  { %v2523_v46 = vpop.permute.xlu1 %2522  ;;  %v7046_v43 = vadd.f32 %v2541_v16, %v6909_v35 }
 0x533   :  { %v7042_v52 = vadd.f32 %v2523_v46, %v6903_v34  ;;  %v7057_v34 = vadd.s32 4294967280, %v7054_v15  ;;  %v7082_v46 = vadd.s32 4294967272, %v7054_v15 }
 0x535   :  { %2723 = vperm.xlu2 %3845, %v7042_v52   ;;  %8221 = vst [vmem:[#allocation49_spill] sm:$0xff] %v7082_v46 }
 0x537   :  { %v7077_v23 = vpop.permute.xlu0 %2681 }
 0x53a   :  { %v2646_v22 = vpop.permute.xlu2 %2645 }
 0x53b   :  { %v2742_v14 = vperm.slane %v2646_v22, %v7057_v34 }
 0x53d   :  { %2732 = vperm.xlu2 %3845, %v7046_v43  }
 0x53f   :  { %v2691_v19 = vpop.permute.xlu0 %2690 }
 0x540   :  { %v2798_v40 = vperm.slane %v2691_v19, %v7060_v29  ;;  %v7109_v19 = vadd.s32 4294967224, %v7054_v15 }
 0x542   :  { %v2535_v21 = vpop.permute.xlu1 %2534  ;;  %v2652_v63 = vpop.permute.xlu2 %2651 }
 0x543   :  { %v7050_v33 = vadd.f32 %v2535_v21, %v6907_v5 }
 0x545   :  { %8220 = vst [vmem:[#allocation48_spill] sm:$0xff] %v7050_v33  ;;  %2729 = vperm.xlu1 %3844, %v7050_v33   ;;  %v2750_v33 = vperm.slane %v2652_v63, %v7086_v31 }
 0x54a   :  { %v2661_v44 = vpop.permute.xlu2 %2660 }
 0x54b   :  { %v2643_v35 = vpop.permute.xlu1 %2642 }
 0x54c   :  { %v2738_v5 = vperm.slane %v2643_v35, %v7060_v29  ;;  %v7089_v35 = vadd.s32 4294967248, %v7054_v15 }
 0x54e   :  { %v2740_v25 = vsel %vm2739_vm1, %v2738_v5, %v2736_v9  ;;  %v7092_v5 = vadd.s32 4294967256, %v7054_v15 }
 0x54f   :  { %v2744_v47 = vsel %vm2743_vm2, %v2742_v14, %v2740_v25 }
 0x550   :  { %v2754_v59 = vperm.slane %v2655_v56, %v7092_v5 }
 0x552   :  { %v7069_v10 = vpop.permute.xlu2 %2669 }
 0x553   :  { %v2649_v58 = vpop.permute.xlu1 %2648 }
 0x554   :  { %v2746_v21 = vperm.slane %v2649_v58, %v7082_v46 }
 0x556   :  { %v2748_v14 = vsel %vm2747_vm3, %v2746_v21, %v2744_v47 }
 0x557   :  { %v2752_v49 = vsel %vm2751_vm4, %v2750_v33, %v2748_v14  ;;  %v2762_v14 = vperm.slane %v2661_v44, %v7103_v7  ;;  %v7129_v44 = vadd.s32 4294967208, %v7054_v15 }
 0x55a   :  { %v7075_v12 = vpop.permute.xlu2 %2678 }
 0x55b   :  { %v2658_v26 = vpop.permute.xlu1 %2657 }
 0x55c   :  { %v2758_v39 = vperm.slane %v2658_v26, %v7089_v35  ;;  %v7113_v26 = vadd.s32 4294967232, %v7054_v15 }
 0x562   :  { %v2688_v32 = vpop.permute.xlu2 %2687 }
 0x563   :  { %v7067_v55 = vpop.permute.xlu1 %2666  ;;  %v2797_v25 = vperm.slane %v2688_v32, %v7054_v15 }
 0x565   :  { %v2799_v47 = vsel %vm2739_vm1, %v2798_v40, %v2797_v25 }
 0x56a   :  { %v2697_v27 = vpop.permute.xlu2 %2696 }
 0x56b   :  { %v7073_v38 = vpop.permute.xlu1 %2675  ;;  %v2802_v33 = vperm.slane %v2697_v27, %v7082_v46  ;;  %v2770_v27 = vperm.slane %v7067_v55, %v7109_v19  ;;  %v7125_v46 = vadd.s32 4294967216, %v7054_v15 }
 0x572   :  { %v2706_v22 = vpop.permute.xlu2 %2705 }
 0x573   :  { %v7079_v50 = vpop.permute.xlu1 %2684 }
 0x577   :  { %v2700_v41 = vpop.permute.xlu0 %2699 }
 0x57b   :  { %v2694_v1 = vpop.permute.xlu1 %2693 }
 0x57c   :  { %v2800_v58 = vperm.slane %v2694_v1, %v7057_v34  ;;  %v2756_v1 = vsel %vm2755_vm5, %v2754_v59, %v2752_v49 }
 0x57d   :  { %v2760_v56 = vsel %vm2759_vm6, %v2758_v39, %v2756_v1  ;;  %v7135_v1 = vadd.s32 4294967200, %v7054_v15 }
 0x57e   :  { %v2801_v32 = vsel %vm2743_vm2, %v2800_v58, %v2799_v47  ;;  %v2804_v58 = vperm.slane %v2700_v41, %v7086_v31  ;;  %v2764_v49 = vsel %vm7656_vm7, %v2762_v14, %v2760_v56  ;;  %v2766_v47 = vperm.slane %v2664_v30, %v7113_v26 }
 0x57f   :  { %v2715_v63 = vpop.permute.xlu2 %2714  ;;  %v2803_v40 = vsel %vm2747_vm3, %v2802_v33, %v2801_v32  ;;  %v2808_v30 = vperm.slane %v2706_v22, %v7089_v35  ;;  %v2774_v14 = vperm.slane %v7069_v10, %v7125_v46  ;;  %v7152_v10 = vadd.s32 4294967192, %v7054_v15 }
 0x580   :  { %v2805_v39 = vsel %vm2751_vm4, %v2804_v58, %v2803_v40  ;;  %v2768_v32 = vsel %vm7655_vm8, %v2766_v47, %v2764_v49  ;;  %v2814_v47 = vperm.slane %v2715_v63, %v7109_v19 }
 0x581   :  { %v2772_v56 = vsel %vm2771_vm9, %v2770_v27, %v2768_v32  ;;  %v7162_v32 = vadd.s32 4294967184, %v7054_v15  ;;  %v2786_v63 = vperm.slane %v7075_v12, %v7152_v10 }
 0x582   :  { %v2776_v22 = vsel %vm2775_vm10, %v2774_v14, %v2772_v56 }
 0x583   :  { %v2703_v16 = vpop.permute.xlu1 %2702 }
 0x584   :  { %v2806_v25 = vperm.slane %v2703_v16, %v7092_v5 }
 0x586   :  { %v2807_v41 = vsel %vm2755_vm5, %v2806_v25, %v2805_v39 }
 0x587   :  { %v2709_v9 = vpop.permute.xlu0 %2708  ;;  %v2809_v40 = vsel %vm2759_vm6, %v2808_v30, %v2807_v41 }
 0x588   :  { %v2810_v16 = vperm.slane %v2709_v9, %v7103_v7  ;;  %v2778_v9 = vperm.slane %v7071_v24, %v7129_v44 }
 0x58a   :  { %v2811_v58 = vsel %vm7656_vm7, %v2810_v16, %v2809_v40  ;;  %v2780_v41 = vsel %vm7642_vm11, %v2778_v9, %v2776_v22  ;;  %v7158_v16 = vadd.s32 4294967176, %v7054_v15  ;;  %v2790_v22 = vperm.slane %v7077_v23, %v7162_v32 }
 0x58b   :  { %v2712_v21 = vpop.permute.xlu1 %2711 }
 0x58c   :  { %v2812_v55 = vperm.slane %v2712_v21, %v7113_v26  ;;  %v2782_v21 = vperm.slane %v7073_v38, %v7135_v1  ;;  %v2794_v9 = vperm.slane %v7079_v50, %v7158_v16 }
 0x58e   :  { %v2813_v49 = vsel %vm7655_vm8, %v2812_v55, %v2811_v58 }
 0x58f   :  { %v2718_v59 = vpop.permute.xlu0 %2717  ;;  %v2724_v33 = vpop.permute.xlu2 %2723  ;;  %v2815_v38 = vsel %vm2771_vm9, %v2814_v47, %v2813_v49 }
 0x590   :  { %v2816_v27 = vperm.slane %v2718_v59, %v7125_v46  ;;  %v2784_v59 = vsel %vm2783_vm12, %v2782_v21, %v2780_v41  ;;  %v2820_v14 = vperm.slane %v2724_v33, %v7135_v1 }
 0x592   :  { %v2817_v30 = vsel %vm2775_vm10, %v2816_v27, %v2815_v38 }
 0x593   :  { %v2721_v25 = vpop.permute.xlu1 %2720 }
 0x594   :  { %v2818_v24 = vperm.slane %v2721_v25, %v7129_v44  ;;  %v2788_v25 = vsel %vm7660_vm13, %v2786_v63, %v2784_v59 }
 0x595   :  { %v2792_v47 = vsel %vm7659_vm14, %v2790_v22, %v2788_v25 }
 0x596   :  { %v2819_v55 = vsel %vm7642_vm11, %v2818_v24, %v2817_v30  ;;  %vm2831_vm11 = vcmask 1041408   ;;  %v2796_v50 = vsel %vm7658_vm15, %v2794_v9, %v2792_v47 }
 0x597   :  { %v2727_v39 = vpop.permute.xlu0 %2726  ;;  %v2733_v40 = vpop.permute.xlu2 %2732  ;;  %v2821_v21 = vsel %vm2783_vm12, %v2820_v14, %v2819_v55 }
 0x598   :  { %v2822_v56 = vperm.slane %v2727_v39, %v7152_v10  ;;  %v2826_v33 = vperm.slane %v2733_v40, %v7158_v16 }
 0x59a   :  { %v2823_v49 = vsel %vm7660_vm13, %v2822_v56, %v2821_v21 }
 0x5b7   :  { %v2730_v58 = vpop.permute.xlu1 %2729 }
 0x5b8   :  { %v2824_v12 = vperm.slane %v2730_v58, %v7162_v32 }
 0x5ba   :  { %v2825_v27 = vsel %vm7659_vm14, %v2824_v12, %v2823_v49 }
 0x5bb   :  { %v2827_v24 = vsel %vm7658_vm15, %v2826_v33, %v2825_v27 }
 0x5bc   :  { %v2829_v23 = vsel %vm7657_vm0, %v2827_v24, %v2796_v50 }
 0x5bd   :  { %v2832_v39 = vsel %vm2831_vm11, %v2829_v23, -inf }
 0x5be   :  { %2833 = vmax.xlane.f32.xlu0 %v2832_v39 }
 0x631   :  { %v2834_v41 = vpop.xlane.xlu0 %2833 }
 0x632   :  { %v7186_v38 = vperm.slane %v2834_v41, 0  ;;  %v7188_v59 = vperm.slane %v2834_v41, 1 }
 0x634   :  { %v2851_v30 = vsub.f32 %v6931_v0, %v7186_v38  ;;  %v2841_v63 = vsub.f32 %v6947_v3, %v7186_v38  ;;  %v2840_v55 = vsub.f32 %v6883_v45, %v7186_v38  ;;  %v2856_v25 = vsub.f32 %v6998_v6, %v7188_v59 }
 0x635   :  { %v2843_v9 = vsub.f32 %v6956_v11, %v7186_v38  ;;  %v2842_v0 = vsub.f32 %v6953_v37, %v7186_v38  ;;  %v2859_v11 = vsub.f32 %v7006_v8, %v7188_v59  ;;  %v2845_v37 = vsub.f32 %v6918_v57, %v7186_v38 }
 0x636   :  { %v2894_v56 = vmul.f32 1.442695, %v2851_v30  ;;  %v2874_v14 = vmul.f32 1.442695, %v2841_v63  ;;  %v2872_v40 = vmul.f32 1.442695, %v2840_v55  ;;  %v2844_v6 = vsub.f32 %v6962_v20, %v7186_v38 }
 0x637   :  { %v2904_v58 = vmul.f32 1.442695, %v2856_v25  ;;  %v2878_v3 = vmul.f32 1.442695, %v2843_v9  ;;  %v2876_v45 = vmul.f32 1.442695, %v2842_v0  ;;  %v2862_v57 = vsub.f32 %v7018_v4, %v7188_v59 }
 0x638   :  { %3911 = vpow2.f32 %v2894_v56  ;;  %v2910_v49 = vmul.f32 1.442695, %v2859_v11  ;;  %v2882_v33 = vmul.f32 1.442695, %v2845_v37  ;;  %v2880_v47 = vmul.f32 1.442695, %v2844_v6 }
 0x639   :  { %3913 = vpow2.f32 %v2874_v14  ;;  %v2847_v20 = vsub.f32 %v6970_v60, %v7186_v38  ;;  %v2846_v24 = vsub.f32 %v6965_v54, %v7186_v38  ;;  %v2916_v23 = vmul.f32 1.442695, %v2862_v57 }
 0x63a   :  { %3915 = vpow2.f32 %v2872_v40  ;;  %v2865_v60 = vsub.f32 %v7037_v61, %v7188_v59  ;;  %v2849_v54 = vsub.f32 %v6973_v51, %v7186_v38  ;;  %v2848_v55 = vsub.f32 %v6925_v48, %v7186_v38 }
 0x63b   :  { %3917 = vpow2.f32 %v2904_v58  ;;  %v2886_v39 = vmul.f32 1.442695, %v2847_v20  ;;  %v2884_v30 = vmul.f32 1.442695, %v2846_v24  ;;  %v2868_v51 = vsub.f32 %v7042_v52, %v7188_v59 }
 0x63c   :  { %3919 = vpow2.f32 %v2878_v3  ;;  %v2922_v56 = vmul.f32 1.442695, %v2865_v60  ;;  %v2890_v14 = vmul.f32 1.442695, %v2849_v54  ;;  %v2888_v25 = vmul.f32 1.442695, %v2848_v55 }
 0x63d   :  { %3921 = vpow2.f32 %v2876_v45  ;;  %v2852_v48 = vsub.f32 %v6981_v36, %v7186_v38  ;;  %v2850_v0 = vsub.f32 %v6978_v18, %v7186_v38  ;;  %v2928_v58 = vmul.f32 1.442695, %v2868_v51 }
 0x63e   :  { %v7202_v22 = vpop.eup %3911  ;;  %3923 = vpow2.f32 %v2910_v49  ;;  %v2871_v36 = vsub.f32 %v7046_v43, %v7188_v59  ;;  %v2854_v18 = vsub.f32 %v6936_v13, %v7186_v38  ;;  %v2853_v6 = vsub.f32 %v6986_v62, %v7186_v38 }
 0x63f   :  { %v7204_v21 = vpop.eup %3913  ;;  %3002 = vperm.xlu0 %3843, %v7202_v22   ;;  %3925 = vpow2.f32 %v2882_v33  ;;  %v2896_v3 = vmul.f32 1.442695, %v2852_v48  ;;  %v2892_v11 = vmul.f32 1.442695, %v2850_v0  ;;  %v2857_v13 = vsub.f32 %v6942_v2, %v7188_v59 }
 0x640   :  { %v7207_v12 = vpop.eup %3915  ;;  %2972 = vperm.xlu2 %3845, %v7204_v21   ;;  %3927 = vpow2.f32 %v2880_v47  ;;  %v2934_v49 = vmul.f32 1.442695, %v2871_v36  ;;  %v2900_v33 = vmul.f32 1.442695, %v2854_v18  ;;  %v2898_v57 = vmul.f32 1.442695, %v2853_v6 }
 0x641   :  { %2969 = vperm.xlu1 %3844, %v7207_v12   ;;  %v7217_v27 = vpop.eup %3917  ;;  %3929 = vpow2.f32 %v2916_v23  ;;  %v2855_v62 = vsub.f32 %v6989_v42, %v7186_v38  ;;  %v2906_v24 = vmul.f32 1.442695, %v2857_v13  ;;  %v2860_v2 = vsub.f32 %v6994_v28, %v7188_v59  ;;  %v8229_v28 = vld [vmem:[#allocation43_spill] sm:$0xff]  ;;  %v8235_v13 = vld [vmem:[#allocation46_spill] sm:$0xff] }
 0x642   :  { %8222 = vst [vmem:[#allocation50_spill] sm:$0xff] %v7217_v27  ;;  %v7219_v50 = vpop.eup %3919  ;;  %3931 = vpow2.f32 %v2886_v39  ;;  %v2858_v42 = vsub.f32 %v7001_v53, %v7188_v59 }
 0x643   :  { %v7222_v8 = vpop.eup %3921  ;;  %3933 = vpow2.f32 %v2884_v30  ;;  %v2902_v39 = vmul.f32 1.442695, %v2855_v62  ;;  %v2912_v38 = vmul.f32 1.442695, %v2860_v2  ;;  %v2867_v62 = vsub.f32 %v8235_v13, %v7188_v59 }
 0x644   :  { %v7232_v41 = vpop.eup %3923  ;;  %3935 = vpow2.f32 %v2922_v56  ;;  %v2908_v54 = vmul.f32 1.442695, %v2858_v42 }
 0x645   :  { %8223 = vst [vmem:[#allocation51_spill] sm:$0xff] %v7232_v41  ;;  %v7234_v63 = vpop.eup %3925  ;;  %3937 = vpow2.f32 %v2890_v14  ;;  %v2863_v14 = vsub.f32 %v7014_v17, %v7188_v59  ;;  %v8232_v17 = vld [vmem:[#allocation44_spill] sm:$0xff] }
 0x646   :  { %v7237_v4 = vpop.eup %3927  ;;  %3939 = vpow2.f32 %v2888_v25  ;;  %v2861_v25 = vsub.f32 %v8229_v28, %v7188_v59 }
 0x647   :  { %3017 = vperm.xlu0 %3843, %v7217_v27   ;;  %v7247_v40 = vpop.eup %3929  ;;  %3941 = vpow2.f32 %v2928_v58  ;;  %v2918_v51 = vmul.f32 1.442695, %v2863_v14  ;;  %v8231_v58 = vld [vmem:[#allocation45_spill] sm:$0xff] }
 0x648   :  { %2978 = vperm.xlu2 %3845, %v7219_v50   ;;  %8224 = vst [vmem:[#allocation53_spill] sm:$0xff] %v7247_v40  ;;  %v7249_v9 = vpop.eup %3931  ;;  %3943 = vpow2.f32 %v2896_v3  ;;  %v2914_v53 = vmul.f32 1.442695, %v2861_v25  ;;  %v2866_v3 = vsub.f32 %v8231_v58, %v7188_v59 }
 0x649   :  { %2975 = vperm.xlu1 %3844, %v7222_v8   ;;  %v7252_v61 = vpop.eup %3933  ;;  %3945 = vpow2.f32 %v2892_v11  ;;  %v2864_v11 = vsub.f32 %v8232_v17, %v7188_v59 }
 0x64a   :  { %v7262_v45 = vpop.eup %3935  ;;  %3947 = vpow2.f32 %v2934_v49  ;;  %v2924_v36 = vmul.f32 1.442695, %v2866_v3 }
 0x64b   :  { %8225 = vst [vmem:[#allocation54_spill] sm:$0xff] %v7262_v45  ;;  %v7264_v37 = vpop.eup %3937  ;;  %3949 = vpow2.f32 %v2900_v33  ;;  %v2920_v18 = vmul.f32 1.442695, %v2864_v11  ;;  %v8234_v33 = vld [vmem:[#allocation47_spill] sm:$0xff] }
 0x64c   :  { %v7267_v52 = vpop.eup %3939  ;;  %3951 = vpow2.f32 %v2898_v57  ;;  %v2869_v57 = vsub.f32 %v8234_v33, %v7188_v59 }
 0x64d   :  { %v7277_v47 = vpop.eup %3941  ;;  %3953 = vpow2.f32 %v2906_v24 }
 0x64e   :  { %8226 = vst [vmem:[#allocation55_spill] sm:$0xff] %v7277_v47  ;;  %v7279_v20 = vpop.eup %3943  ;;  %3955 = vpow2.f32 %v2902_v39  ;;  %v2930_v24 = vmul.f32 1.442695, %v2869_v57  ;;  %v2926_v39 = vmul.f32 1.442695, %v2867_v62  ;;  %v8240_v57 = vld [vmem:[#allocation49_spill] sm:$0xff] }
 0x64f   :  { %3026 = vperm.xlu0 %3843, %v7232_v41   ;;  %v7282_v43 = vpop.eup %3945  ;;  %3957 = vpow2.f32 %v2912_v38  ;;  %v8237_v38 = vld [vmem:[#allocation48_spill] sm:$0xff] }
 0x650   :  { %2984 = vperm.xlu2 %3845, %v7234_v63   ;;  %v7290_v23 = vpop.eup %3947  ;;  %3959 = vpow2.f32 %v2908_v54  ;;  %v2870_v54 = vsub.f32 %v8237_v38, %v7188_v59 }
 0x651   :  { %2981 = vperm.xlu1 %3844, %v7237_v4   ;;  %8227 = vst [vmem:[#allocation56_spill] sm:$0xff] %v7290_v23  ;;  %v7292_v30 = vpop.eup %3949  ;;  %3961 = vpow2.f32 %v2918_v51 }
 0x652   :  { %v7295_v60 = vpop.eup %3951  ;;  %3963 = vpow2.f32 %v2914_v53  ;;  %v2932_v14 = vmul.f32 1.442695, %v2870_v54 }
 0x653   :  { %v7303_v55 = vpop.eup %3953  ;;  %3965 = vpow2.f32 %v2924_v36 }
 0x654   :  { %v7305_v56 = vpop.eup %3955  ;;  %3967 = vpow2.f32 %v2920_v18 }
 0x655   :  { %8228 = vst [vmem:[#allocation57_spill] sm:$0xff] %v7305_v56  ;;  %v7313_v48 = vpop.eup %3957  ;;  %3969 = vpow2.f32 %v2930_v24 }
 0x656   :  { %v7315_v0 = vpop.eup %3959  ;;  %3971 = vpow2.f32 %v2926_v39 }
 0x657   :  { %3035 = vperm.xlu0 %3843, %v7247_v40   ;;  %8230 = vst [vmem:[#allocation58_spill] sm:$0xff] %v7315_v0  ;;  %v7323_v6 = vpop.eup %3961  ;;  %3973 = vpow2.f32 %v2932_v14 }
 0x658   :  { %2990 = vperm.xlu2 %3845, %v7249_v9   ;;  %v7325_v49 = vpop.eup %3963 }
 0x659   :  { %2987 = vperm.xlu1 %3844, %v7252_v61   ;;  %8233 = vst [vmem:[#allocation59_spill] sm:$0xff] %v7325_v49  ;;  %v7333_v2 = vpop.eup %3965 }
 0x65a   :  { %v7335_v42 = vpop.eup %3967 }
 0x65b   :  { %8236 = vst [vmem:[#allocation52_spill] sm:$0xff] %v7335_v42  ;;  %v7341_v28 = vpop.eup %3969 }
 0x65c   :  { %v7343_v25 = vpop.eup %3971 }
 0x65d   :  { %8238 = vst [vmem:[#allocation60_spill] sm:$0xff] %v7343_v25  ;;  %v7347_v51 = vpop.eup %3973 }
 0x65e   :  { %8239 = vst [vmem:[#allocation61_spill] sm:$0xff] %v7347_v51 }
 0x65f   :  { %3044 = vperm.xlu0 %3843, %v7262_v45  }
 0x660   :  { %2996 = vperm.xlu2 %3845, %v7264_v37  }
 0x661   :  { %2993 = vperm.xlu1 %3844, %v7267_v52  }
 0x667   :  { %3053 = vperm.xlu0 %3843, %v7277_v47  }
 0x668   :  { %3005 = vperm.xlu2 %3845, %v7279_v20  }
 0x669   :  { %2999 = vperm.xlu1 %3844, %v7282_v43  }
 0x66f   :  { %3062 = vperm.xlu0 %3843, %v7290_v23  }
 0x670   :  { %3011 = vperm.xlu2 %3845, %v7292_v30  }
 0x671   :  { %3008 = vperm.xlu1 %3844, %v7295_v60  }
 0x678   :  { %3020 = vperm.xlu2 %3845, %v7303_v55  }
 0x679   :  { %3014 = vperm.xlu1 %3844, %v7305_v56  }
 0x680   :  { %3029 = vperm.xlu2 %3845, %v7313_v48  }
 0x681   :  { %3023 = vperm.xlu1 %3844, %v7315_v0  }
 0x688   :  { %3038 = vperm.xlu2 %3845, %v7323_v6  }
 0x689   :  { %3032 = vperm.xlu1 %3844, %v7325_v49  }
 0x690   :  { %3047 = vperm.xlu2 %3845, %v7333_v2  }
 0x691   :  { %3041 = vperm.xlu1 %3844, %v7335_v42  }
 0x698   :  { %3056 = vperm.xlu2 %3845, %v7341_v28  }
 0x699   :  { %3050 = vperm.xlu1 %3844, %v7343_v25  }
 0x69a   :  { %v2973_v53 = vpop.permute.xlu2 %2972 }
 0x69b   :  { %v3065_v17 = vperm.slane %v2973_v53, %v7060_v29 }
 0x6a1   :  { %3059 = vperm.xlu1 %3844, %v7347_v51  }
 0x6a2   :  { %v2979_v58 = vpop.permute.xlu2 %2978 }
 0x6a3   :  { %v3069_v13 = vperm.slane %v2979_v58, %v8240_v57 }
 0x6aa   :  { %v2985_v11 = vpop.permute.xlu2 %2984 }
 0x6ab   :  { %v3073_v14 = vperm.slane %v2985_v11, %v7092_v5 }
 0x6b2   :  { %v2991_v39 = vpop.permute.xlu2 %2990 }
 0x6b3   :  { %v2970_v3 = vpop.permute.xlu1 %2969 }
 0x6b4   :  { %v3064_v59 = vperm.slane %v2970_v3, %v7054_v15 }
 0x6b6   :  { %v3066_v36 = vsel %vm2739_vm1, %v3065_v17, %v3064_v59 }
 0x6ba   :  { %v2997_v17 = vpop.permute.xlu2 %2996 }
 0x6bb   :  { %v2976_v18 = vpop.permute.xlu1 %2975 }
 0x6bc   :  { %v3067_v33 = vperm.slane %v2976_v18, %v7057_v34 }
 0x6be   :  { %v3068_v62 = vsel %vm2743_vm2, %v3067_v33, %v3066_v36  ;;  %v3003_v33 = vpop.permute.xlu0 %3002 }
 0x6bf   :  { %v3070_v24 = vsel %vm2747_vm3, %v3069_v13, %v3068_v62 }
 0x6c2   :  { %v3006_v36 = vpop.permute.xlu2 %3005 }
 0x6c3   :  { %v2982_v38 = vpop.permute.xlu1 %2981 }
 0x6c4   :  { %v3071_v54 = vperm.slane %v2982_v38, %v7086_v31 }
 0x6c6   :  { %v3072_v53 = vsel %vm2751_vm4, %v3071_v54, %v3070_v24  ;;  %v3018_v23 = vpop.permute.xlu0 %3017 }
 0x6c7   :  { %v3074_v3 = vsel %vm2755_vm5, %v3073_v14, %v3072_v53 }
 0x6ca   :  { %v7363_v62 = vpop.permute.xlu2 %3011 }
 0x6cb   :  { %v2988_v59 = vpop.permute.xlu1 %2987 }
 0x6cc   :  { %v3075_v18 = vperm.slane %v2988_v59, %v7089_v35 }
 0x6ce   :  { %v3076_v58 = vsel %vm2759_vm6, %v3075_v18, %v3074_v3  ;;  %v3027_v11 = vpop.permute.xlu0 %3026  ;;  %v3095_v3 = vperm.slane %v3018_v23, %v7054_v15 }
 0x6cf   :  { %v3100_v45 = vperm.slane %v3027_v11, %v8240_v57 }
 0x6d2   :  { %v3021_v25 = vpop.permute.xlu2 %3020 }
 0x6d3   :  { %v2994_v51 = vpop.permute.xlu1 %2993  ;;  %v3096_v53 = vperm.slane %v3021_v25, %v7060_v29 }
 0x6d5   :  { %v3097_v18 = vsel %vm2739_vm1, %v3096_v53, %v3095_v3 }
 0x6d6   :  { %v3036_v14 = vpop.permute.xlu0 %3035 }
 0x6d7   :  { %v3106_v23 = vperm.slane %v3036_v14, %v7089_v35 }
 0x6da   :  { %v3030_v24 = vpop.permute.xlu2 %3029 }
 0x6db   :  { %v3000_v13 = vpop.permute.xlu1 %2999  ;;  %v3102_v27 = vperm.slane %v3030_v24, %v7086_v31 }
 0x6dc   :  { %v3083_v14 = vperm.slane %v3000_v13, %v7125_v46 }
 0x6de   :  { %v3045_v56 = vpop.permute.xlu0 %3044 }
 0x6e2   :  { %v3039_v40 = vpop.permute.xlu2 %3038 }
 0x6e3   :  { %v3009_v38 = vpop.permute.xlu1 %3008 }
 0x6eb   :  { %v7365_v47 = vpop.permute.xlu1 %3014 }
 0x6f3   :  { %v3024_v54 = vpop.permute.xlu1 %3023 }
 0x6f4   :  { %v3098_v59 = vperm.slane %v3024_v54, %v7057_v34 }
 0x6f6   :  { %v3099_v42 = vsel %vm2743_vm2, %v3098_v59, %v3097_v18  ;;  %v3079_v59 = vperm.slane %v2994_v51, %v7113_v26  ;;  %v3081_v18 = vperm.slane %v2997_v17, %v7109_v19  ;;  %v3089_v17 = vperm.slane %v3009_v38, %v7152_v10 }
 0x6f7   :  { %v3101_v0 = vsel %vm2747_vm3, %v3100_v45, %v3099_v42  ;;  %v3077_v45 = vperm.slane %v2991_v39, %v7103_v7  ;;  %v3048_v42 = vpop.permute.xlu2 %3047 }
 0x6f8   :  { %v3103_v25 = vsel %vm2751_vm4, %v3102_v27, %v3101_v0  ;;  %v3054_v0 = vpop.permute.xlu0 %3053 }
 0x6f9   :  { %v3078_v24 = vsel %vm7656_vm7, %v3077_v45, %v3076_v58  ;;  %v3118_v45 = vperm.slane %v3054_v0, %v7135_v1 }
 0x6fb   :  { %v3033_v49 = vpop.permute.xlu1 %3032 }
 0x6fc   :  { %v3104_v41 = vperm.slane %v3033_v49, %v7092_v5  ;;  %v3108_v49 = vperm.slane %v3039_v40, %v7103_v7 }
 0x6fe   :  { %v3105_v54 = vsel %vm2755_vm5, %v3104_v41, %v3103_v25  ;;  %v3080_v41 = vsel %vm7655_vm8, %v3079_v59, %v3078_v24  ;;  %v3112_v25 = vperm.slane %v3045_v56, %v7109_v19  ;;  %v3085_v59 = vperm.slane %v3003_v33, %v7129_v44 }
 0x6ff   :  { %v3107_v11 = vsel %vm2759_vm6, %v3106_v23, %v3105_v54  ;;  %v3082_v39 = vsel %vm2771_vm9, %v3081_v18, %v3080_v41  ;;  %v3114_v23 = vperm.slane %v3048_v42, %v7125_v46  ;;  %v3093_v41 = vperm.slane %v7365_v47, %v7158_v16 }
 0x700   :  { %v3109_v27 = vsel %vm7656_vm7, %v3108_v49, %v3107_v11  ;;  %v3084_v58 = vsel %vm2775_vm10, %v3083_v14, %v3082_v39  ;;  %v3057_v49 = vpop.permute.xlu2 %3056  ;;  %v3063_v24 = vpop.permute.xlu0 %3062 }
 0x701   :  { %v3120_v14 = vperm.slane %v3057_v49, %v7152_v10  ;;  %v3124_v0 = vperm.slane %v3063_v24, %v7158_v16 }
 0x703   :  { %v3042_v53 = vpop.permute.xlu1 %3041 }
 0x704   :  { %v3110_v3 = vperm.slane %v3042_v53, %v7113_v26 }
 0x706   :  { %v3111_v51 = vsel %vm7655_vm8, %v3110_v3, %v3109_v27  ;;  %vm8241_vm8 = vcmask 786112   ;;  %v3087_v3 = vperm.slane %v3006_v36, %v7135_v1 }
 0x707   :  { %v3113_v40 = vsel %vm2771_vm9, %v3112_v25, %v3111_v51  ;;  %v3086_v11 = vsel %vm8241_vm8, %v3085_v59, %v3084_v58  ;;  %vm8242_vm7 = vmmov %vm8241_vm8  ;;  %v3091_v51 = vperm.slane %v7363_v62, %v7162_v32 }
 0x708   :  { %v3115_v13 = vsel %vm2775_vm10, %v3114_v23, %v3113_v40  ;;  %v3088_v42 = vsel %vm2783_vm12, %v3087_v3, %v3086_v11 }
 0x709   :  { %v3090_v33 = vsel %vm7660_vm13, %v3089_v17, %v3088_v42 }
 0x70a   :  { %v3092_v39 = vsel %vm7659_vm14, %v3091_v51, %v3090_v33 }
 0x70b   :  { %v3051_v54 = vpop.permute.xlu1 %3050  ;;  %v3094_v40 = vsel %vm7658_vm15, %v3093_v41, %v3092_v39 }
 0x70c   :  { %v3116_v53 = vperm.slane %v3051_v54, %v7129_v44 }
 0x70e   :  { %v3117_v56 = vsel %vm8242_vm7, %v3116_v53, %v3115_v13 }
 0x70f   :  { %v3119_v27 = vsel %vm2783_vm12, %v3118_v45, %v3117_v56 }
 0x710   :  { %v3121_v18 = vsel %vm7660_vm13, %v3120_v14, %v3119_v27 }
 0x713   :  { %v3060_v38 = vpop.permute.xlu1 %3059 }
 0x714   :  { %v3122_v36 = vperm.slane %v3060_v38, %v7162_v32 }
 0x716   :  { %v3123_v25 = vsel %vm7659_vm14, %v3122_v36, %v3121_v18 }
 0x717   :  { %v3125_v47 = vsel %vm7658_vm15, %v3124_v0, %v3123_v25 }
 0x718   :  { %v3126_v54 = vsel %vm7657_vm0, %v3125_v47, %v3094_v40 }
 0x719   :  { %v3128_v58 = vsel %vm2831_vm11, %v3126_v54, 0.0 }
 0x71a   :  { %3129 = vadd.xlane.f32.xlu2 %v3128_v58 }
 0x78d   :  { %v3130_v62 = vpop.xlane.xlu2 %3129 }
 0x78e   :  { %v3132_v23 = vperm.slane %v3130_v62, 0  ;;  %v3133_v53 = vperm.slane %v3130_v62, 1 }
 0x790   :  { %3975 = vrcp.f32 %v3132_v23  ;;  %v3147_v3 = vand.u32 2147483648, %v3132_v23  ;;  %v3145_v24 = vand.u32 2147483647, %v3132_v23  ;;  %vm3141_vm8 = vweird.f32 %v3132_v23 }
 0x791   :  { %3977 = vrcp.f32 %v3133_v53  ;;  %vm3171_vm14 = vweird.f32 %v3133_v53  ;;  %v3177_v51 = vand.u32 2147483648, %v3133_v53  ;;  %v3175_v36 = vand.u32 2147483647, %v3133_v53 }
 0x792   :  { %v3148_v33 = vor.u32 1.1754944e-38, %v3147_v3  ;;  %vm3146_vm0 = vcmp.eq.f32.partialorder %v3145_v24, 8.507059e+37  ;;  %v8251_v24 = vld [vmem:[#allocation55_spill] sm:$0xff] }
 0x793   :  { %v3178_v40 = vor.u32 1.1754944e-38, %v3177_v51 }
 0x796   :  { %v3976_v59 = vpop.eup %3975 }
 0x797   :  { %v3978_v13 = vpop.eup %3977  ;;  %v3137_v11 = vmul.f32 %v3976_v59, %v3132_v23  ;;  %vm3142_vm7 = vweird.f32 %v3976_v59 }
 0x798   :  { %v3167_v17 = vmul.f32 %v3978_v13, %v3133_v53  ;;  %vm3143_vm11 = vmor %vm3141_vm8, %vm3142_vm7  ;;  %vm3172_vm15 = vweird.f32 %v3978_v13  ;;  %vm3176_vm7 = vcmp.eq.f32.partialorder %v3175_v36, 8.507059e+37  ;;  %v8244_v53 = vld [vmem:[#allocation57_spill] sm:$0xff] }
 0x799   :  { %v3138_v56 = vsub.f32 1.0, %v3137_v11  ;;  %vm3173_vm13 = vmor %vm3171_vm14, %vm3172_vm15  ;;  %v3673_v36 = vld [vmem:[%s7608_s3] sm:$0xff]   ;;  %vm8265_vm14 = vcmask 1048512  }
 0x79a   :  { %v3168_v45 = vsub.f32 1.0, %v3167_v17  ;;  %vm8266_vm15 = vmmov %vm8265_vm14 }
 0x79b   :  { %v3139_v49 = vmul.f32 %v3976_v59, %v3138_v56  ;;  %v8248_v56 = vld [vmem:[#allocation59_spill] sm:$0xff] }
 0x79c   :  { %v3169_v42 = vmul.f32 %v3978_v13, %v3168_v45  ;;  %v8250_v45 = vld [vmem:[#allocation52_spill] sm:$0xff] }
 0x79d   :  { %v3140_v27 = vadd.f32 %v3976_v59, %v3139_v49 }
 0x79e   :  { %v3170_v14 = vadd.f32 %v3978_v13, %v3169_v42 }
 0x79f   :  { %v3144_v41 = vsel %vm3143_vm11, %v3976_v59, %v3140_v27  ;;  %v8252_v27 = vld [vmem:[#allocation60_spill] sm:$0xff] }
 0x7a0   :  { %v3149_v38 = vsel %vm3146_vm0, %v3148_v33, %v3144_v41  ;;  %v3174_v39 = vsel %vm3173_vm13, %v3978_v13, %v3170_v14  ;;  %v8253_v41 = vld [vmem:[#allocation56_spill] sm:$0xff]  ;;  %vm8255_vm13 = vcmask 523712   ;;  %vm8267_vm0 = vcmask 1041409  }
 0x7a1   :  { %v3160_v0 = vmul.f32 %v7282_v43, %v3149_v38  ;;  %v3151_v18 = vmul.f32 %v7204_v21, %v3149_v38  ;;  %v3150_v25 = vmul.f32 %v7207_v12, %v3149_v38  ;;  %v3179_v47 = vsel %vm3176_vm7, %v3178_v40, %v3174_v39  ;;  %vm8268_vm8 = vmmov %vm8267_vm0 }
 0x7a2   :  { %v3181_v54 = vmul.f32 %v7303_v55, %v3179_v47  ;;  %v3153_v58 = vmul.f32 %v7219_v50, %v3149_v38  ;;  %v3152_v62 = vmul.f32 %v7222_v8, %v3149_v38  ;;  %v3184_v21 = vmul.f32 %v7313_v48, %v3179_v47 }
 0x7a3   :  { %3259 = vperm.xlu2 %3845, %v3160_v0   ;;  %3232 = vperm.xlu0 %3843, %v3151_v18   ;;  %v3155_v12 = vmul.f32 %v7234_v63, %v3149_v38  ;;  %v3154_v43 = vmul.f32 %v7237_v4, %v3149_v38  ;;  %v3187_v23 = vmul.f32 %v7323_v6, %v3179_v47  ;;  %v3675_v0 = vunpack.c.h.bf16 %v3673_v36 }
 0x7a4   :  { %3229 = vperm.xlu1 %3844, %v3150_v25   ;;  %v3157_v55 = vmul.f32 %v7249_v9, %v3149_v38  ;;  %v3156_v50 = vmul.f32 %v7252_v61, %v3149_v38  ;;  %v3190_v8 = vmul.f32 %v7333_v2, %v3179_v47  ;;  %v3159_v48 = vmul.f32 %v7264_v37, %v3149_v38  ;;  %v8243_v37 = vld [vmem:[#allocation50_spill] sm:$0xff] }
 0x7a5   :  { %v3158_v63 = vmul.f32 %v7267_v52, %v3149_v38  ;;  %v3193_v4 = vmul.f32 %v7341_v28, %v3179_v47  ;;  %v3162_v6 = vmul.f32 %v7279_v20, %v3149_v38  ;;  %v3161_v9 = vmul.f32 %v7202_v22, %v3149_v38  ;;  %v8245_v28 = vld [vmem:[#allocation51_spill] sm:$0xff]  ;;  %v8246_v20 = vld [vmem:[#allocation58_spill] sm:$0xff]  ;;  %v8247_v22 = vld [vmem:[#allocation53_spill] sm:$0xff] }
 0x7a6   :  { %v3164_v61 = vmul.f32 %v7292_v30, %v3149_v38  ;;  %v3163_v2 = vmul.f32 %v7295_v60, %v3149_v38  ;;  %v3180_v52 = vmul.f32 %v8243_v37, %v3179_v47  ;;  %v3165_v59 = vmul.f32 %v8244_v53, %v3149_v38  ;;  %v8249_v60 = vld [vmem:[#allocation54_spill] sm:$0xff]  ;;  %v8254_v38 = vld [vmem:[#allocation61_spill] sm:$0xff] }
 0x7a7   :  { %v3183_v13 = vmul.f32 %v8245_v28, %v3179_v47  ;;  %v3182_v11 = vmul.f32 %v8246_v20, %v3179_v47  ;;  %v3186_v17 = vmul.f32 %v8247_v22, %v3179_v47  ;;  %v3185_v30 = vmul.f32 %v8248_v56, %v3179_v47 }
 0x7a8   :  { %v3189_v3 = vmul.f32 %v8249_v60, %v3179_v47  ;;  %v3188_v49 = vmul.f32 %v8250_v45, %v3179_v47  ;;  %v3192_v42 = vmul.f32 %v8251_v24, %v3179_v47  ;;  %v3191_v33 = vmul.f32 %v8252_v27, %v3179_v47 }
 0x7a9   :  { %v3195_v14 = vmul.f32 %v8253_v41, %v3179_v47  ;;  %v3194_v51 = vmul.f32 %v8254_v38, %v3179_v47  ;;  %v3674_v18 = vunpack.c.l.bf16 %v3673_v36  ;;  %v3751_v47 = vld [vmem:[%s7608_s3 + $0x8] sm:$0xff]  }
 0x7ab   :  { %3280 = vperm.xlu2 %3845, %v3181_v54   ;;  %3238 = vperm.xlu0 %3843, %v3153_v58  }
 0x7ac   :  { %3235 = vperm.xlu1 %3844, %v3152_v62  }
 0x7b3   :  { %3289 = vperm.xlu2 %3845, %v3184_v21   ;;  %3244 = vperm.xlu0 %3843, %v3155_v12  }
 0x7b4   :  { %3241 = vperm.xlu1 %3844, %v3154_v43   ;;  %v3678_v43 = vunpack.c.l.bf16 %v3751_v47 }
 0x7bb   :  { %3298 = vperm.xlu2 %3845, %v3187_v23   ;;  %3250 = vperm.xlu0 %3843, %v3157_v55   ;;  %v3679_v23 = vunpack.c.h.bf16 %v3751_v47 }
 0x7bc   :  { %3247 = vperm.xlu1 %3844, %v3156_v50  }
 0x7c3   :  { %3307 = vperm.xlu2 %3845, %v3190_v8   ;;  %3256 = vperm.xlu0 %3843, %v3159_v48  }
 0x7c4   :  { %3253 = vperm.xlu1 %3844, %v3158_v63  }
 0x7cb   :  { %3316 = vperm.xlu2 %3845, %v3193_v4   ;;  %3265 = vperm.xlu0 %3843, %v3162_v6  }
 0x7cc   :  { %3262 = vperm.xlu1 %3844, %v3161_v9  }
 0x7d3   :  { %3271 = vperm.xlu0 %3843, %v3164_v61  }
 0x7d4   :  { %3268 = vperm.xlu1 %3844, %v3163_v2  }
 0x7db   :  { %3277 = vperm.xlu0 %3843, %v3180_v52  }
 0x7dc   :  { %3274 = vperm.xlu1 %3844, %v3165_v59  }
 0x7e3   :  { %3286 = vperm.xlu0 %3843, %v3183_v13  }
 0x7e4   :  { %3283 = vperm.xlu1 %3844, %v3182_v11  }
 0x7eb   :  { %3295 = vperm.xlu0 %3843, %v3186_v17  }
 0x7ec   :  { %3292 = vperm.xlu1 %3844, %v3185_v30  }
 0x7f3   :  { %3304 = vperm.xlu0 %3843, %v3189_v3  }
 0x7f4   :  { %3301 = vperm.xlu1 %3844, %v3188_v49  }
 0x7fb   :  { %3313 = vperm.xlu0 %3843, %v3192_v42   ;;  %v3752_v42 = vld [vmem:[%s7608_s3 + $0x10] sm:$0xff]  }
 0x7fc   :  { %3310 = vperm.xlu1 %3844, %v3191_v33   ;;  %v3682_v27 = vunpack.c.l.bf16 %v3752_v42  ;;  %v3683_v36 = vunpack.c.h.bf16 %v3752_v42 }
 0x7fd   :  { %v7483_v24 = vpop.permute.xlu2 %3259 }
 0x803   :  { %3322 = vperm.xlu0 %3843, %v3195_v14   ;;  %v3753_v14 = vld [vmem:[%s7608_s3 + $0x18] sm:$0xff]  }
 0x804   :  { %3319 = vperm.xlu1 %3844, %v3194_v51  }
 0x805   :  { %v3281_v51 = vpop.permute.xlu2 %3280 }
 0x815   :  { %v3233_v25 = vpop.permute.xlu0 %3232 }
 0x816   :  { %v3325_v39 = vperm.slane %v3233_v25, %v7060_v29  ;;  %v3486_v40 = vmul.f32 %v3675_v0, %v3233_v25  ;;  %v3230_v54 = vpop.permute.xlu1 %3229  ;;  %v3686_v0 = vunpack.c.l.bf16 %v3753_v14  ;;  %v3754_v25 = vld [vmem:[%s7608_s3 + $0x20] sm:$0xff]  }
 0x817   :  { %v3324_v58 = vperm.slane %v3230_v54, %v7054_v15  ;;  %v3485_v62 = vmul.f32 %v3674_v18, %v3230_v54 }
 0x819   :  { %v3326_v21 = vsel %vm2739_vm1, %v3325_v39, %v3324_v58  ;;  %v3517_v12 = vadd.f32 %v3486_v40, %v3485_v62  ;;  %v3758_v40 = vld [vmem:[%s7608_s3 + $0x40] sm:$0xff]  }
 0x81a   :  { %v3706_v47 = vunpack.c.l.bf16 %v3758_v40 }
 0x81d   :  { %v3239_v55 = vpop.permute.xlu0 %3238 }
 0x81e   :  { %v3329_v50 = vperm.slane %v3239_v55, %v8240_v57  ;;  %v3236_v8 = vpop.permute.xlu1 %3235  ;;  %v3488_v4 = vmul.f32 %v3679_v23, %v3239_v55  ;;  %v3759_v23 = vld [vmem:[%s7608_s3 + $0x48] sm:$0xff]   ;;  %v3707_v55 = vunpack.c.h.bf16 %v3758_v40  ;;  %v3761_v40 = vld [vmem:[%s7608_s3 + $0x58] sm:$0xff]  }
 0x81f   :  { %v3327_v48 = vperm.slane %v3236_v8, %v7057_v34  ;;  %v3487_v63 = vmul.f32 %v3678_v43, %v3236_v8  ;;  %v3690_v43 = vunpack.c.l.bf16 %v3754_v25  ;;  %v3290_v8 = vpop.permute.xlu2 %3289 }
 0x821   :  { %v3328_v6 = vsel %vm2743_vm2, %v3327_v48, %v3326_v21  ;;  %v3518_v9 = vadd.f32 %v3517_v12, %v3487_v63  ;;  %v3687_v21 = vunpack.c.h.bf16 %v3753_v14  ;;  %v3710_v63 = vunpack.c.l.bf16 %v3759_v23 }
 0x822   :  { %v3330_v61 = vsel %vm2747_vm3, %v3329_v50, %v3328_v6 }
 0x823   :  { %v3519_v2 = vadd.f32 %v3518_v9, %v3488_v4  ;;  %v3502_v9 = vmul.f32 %v3707_v55, %v3281_v51  ;;  %v3719_v55 = vunpack.c.h.bf16 %v3761_v40 }
 0x825   :  { %v3245_v37 = vpop.permute.xlu0 %3244 }
 0x826   :  { %v3333_v52 = vperm.slane %v3245_v37, %v7092_v5  ;;  %v3242_v53 = vpop.permute.xlu1 %3241  ;;  %v3490_v54 = vmul.f32 %v3683_v36, %v3245_v37  ;;  %v3760_v37 = vld [vmem:[%s7608_s3 + $0x50] sm:$0xff]  }
 0x827   :  { %v3331_v59 = vperm.slane %v3242_v53, %v7086_v31  ;;  %v3489_v38 = vmul.f32 %v3682_v27, %v3242_v53 }
 0x829   :  { %v3332_v28 = vsel %vm2751_vm4, %v3331_v59, %v3330_v61  ;;  %v3520_v18 = vadd.f32 %v3519_v2, %v3489_v38  ;;  %v3711_v61 = vunpack.c.h.bf16 %v3759_v23  ;;  %v3356_v38 = vperm.slane %v3281_v51, %v7060_v29  ;;  %v3756_v29 = vld [vmem:[%s7608_s3 + $0x30] sm:$0xff]  }
 0x82a   :  { %v3334_v13 = vsel %vm2755_vm5, %v3333_v52, %v3332_v28  ;;  %v3691_v52 = vunpack.c.h.bf16 %v3754_v25  ;;  %v3755_v28 = vld [vmem:[%s7608_s3 + $0x28] sm:$0xff]   ;;  %v3715_v25 = vunpack.c.h.bf16 %v3760_v37 }
 0x82b   :  { %v3521_v12 = vadd.f32 %v3520_v18, %v3490_v54  ;;  %v3694_v14 = vunpack.c.l.bf16 %v3755_v28 }
 0x82d   :  { %v3251_v20 = vpop.permute.xlu0 %3250 }
 0x82e   :  { %v3337_v11 = vperm.slane %v3251_v20, %v7103_v7  ;;  %v3248_v22 = vpop.permute.xlu1 %3247  ;;  %v3492_v4 = vmul.f32 %v3687_v21, %v3251_v20 }
 0x82f   :  { %v3335_v17 = vperm.slane %v3248_v22, %v7089_v35  ;;  %v3491_v58 = vmul.f32 %v3686_v0, %v3248_v22  ;;  %v3695_v0 = vunpack.c.h.bf16 %v3755_v28 }
 0x831   :  { %v3336_v56 = vsel %vm2759_vm6, %v3335_v17, %v3334_v13  ;;  %v3522_v50 = vadd.f32 %v3521_v12, %v3491_v58  ;;  %v3714_v17 = vunpack.c.l.bf16 %v3760_v37  ;;  %v3495_v12 = vmul.f32 %v3694_v14, %v7483_v24 }
 0x832   :  { %v7473_v30 = vsel %vm8255_vm13, %v3337_v11, %v3336_v56 }
 0x833   :  { %v3523_v53 = vadd.f32 %v3522_v50, %v3492_v4  ;;  %v3505_v58 = vmul.f32 %v3714_v17, %v3290_v8 }
 0x835   :  { %v7475_v60 = vpop.permute.xlu0 %3256 }
 0x836   :  { %v7477_v3 = vpop.permute.xlu1 %3253  ;;  %v3494_v36 = vmul.f32 %v3691_v52, %v7475_v60 }
 0x837   :  { %v3493_v6 = vmul.f32 %v3690_v43, %v7477_v3 }
 0x839   :  { %v3524_v22 = vadd.f32 %v3523_v53, %v3493_v6 }
 0x83b   :  { %v3525_v54 = vadd.f32 %v3524_v22, %v3494_v36 }
 0x83d   :  { %v7479_v45 = vpop.permute.xlu0 %3265 }
 0x83e   :  { %v7481_v49 = vpop.permute.xlu1 %3262 }
 0x83f   :  { %v3496_v43 = vmul.f32 %v3695_v0, %v7481_v49 }
 0x845   :  { %v7488_v33 = vpop.permute.xlu0 %3271 }
 0x846   :  { %v7490_v41 = vpop.permute.xlu1 %3268 }
 0x84d   :  { %v3278_v39 = vpop.permute.xlu0 %3277 }
 0x84e   :  { %v7501_v62 = vpop.permute.xlu1 %3274  ;;  %v3501_v48 = vmul.f32 %v3706_v47, %v3278_v39  ;;  %v3355_v20 = vperm.slane %v3278_v39, %v7054_v15  ;;  %v3718_v47 = vunpack.c.l.bf16 %v3761_v40 }
 0x850   :  { %v3538_v13 = vadd.f32 %v3502_v9, %v3501_v48  ;;  %v3357_v15 = vsel %vm2739_vm1, %v3356_v38, %v3355_v20  ;;  %v3762_v9 = vld [vmem:[%s7608_s3 + $0x60] sm:$0xff]   ;;  %vm8256_vm1 = vcmask 589312  }
 0x855   :  { %v3287_v2 = vpop.permute.xlu0 %3286 }
 0x856   :  { %v3284_v59 = vpop.permute.xlu1 %3283  ;;  %v3504_v56 = vmul.f32 %v3711_v61, %v3287_v2  ;;  %v3360_v39 = vperm.slane %v3287_v2, %v8240_v57  ;;  %v3526_v57 = vadd.f32 %v3525_v54, %v3495_v12  ;;  %v3362_v61 = vperm.slane %v3290_v8, %v7086_v31  ;;  %v3763_v31 = vld [vmem:[%s7608_s3 + $0x68] sm:$0xff]  }
 0x857   :  { %v3503_v11 = vmul.f32 %v3710_v63, %v3284_v59  ;;  %v3358_v42 = vperm.slane %v3284_v59, %v7057_v34  ;;  %v3299_v34 = vpop.permute.xlu2 %3298  ;;  %v3698_v63 = vunpack.c.l.bf16 %v3756_v29  ;;  %v3699_v2 = vunpack.c.h.bf16 %v3756_v29  ;;  %v3757_v59 = vld [vmem:[%s7608_s3 + $0x38] sm:$0xff]  }
 0x858   :  { %v3527_v53 = vadd.f32 %v3526_v57, %v3496_v43  ;;  %v3508_v17 = vmul.f32 %v3719_v55, %v3299_v34  ;;  %v3703_v38 = vunpack.c.h.bf16 %v3757_v59 }
 0x859   :  { %v3539_v27 = vadd.f32 %v3538_v13, %v3503_v11  ;;  %v3359_v51 = vsel %vm2743_vm2, %v3358_v42, %v3357_v15  ;;  %v3497_v22 = vmul.f32 %v3698_v63, %v7479_v45  ;;  %v3498_v8 = vmul.f32 %v3699_v2, %v7490_v41  ;;  %vm8257_vm2 = vmmov %vm8255_vm13 }
 0x85a   :  { %v3361_v4 = vsel %vm2747_vm3, %v3360_v39, %v3359_v51  ;;  %v3368_v15 = vperm.slane %v3299_v34, %v7103_v7  ;;  %v3726_v39 = vunpack.c.l.bf16 %v3763_v31  ;;  %vm8258_vm3 = vmmov %vm8256_vm1 }
 0x85b   :  { %v3540_v18 = vadd.f32 %v3539_v27, %v3504_v56  ;;  %v3363_v13 = vsel %vm2751_vm4, %v3362_v61, %v3361_v4  ;;  %v3723_v56 = vunpack.c.h.bf16 %v3762_v9  ;;  %v3702_v27 = vunpack.c.l.bf16 %v3757_v59 }
 0x85c   :  { %v3528_v14 = vadd.f32 %v3527_v53, %v3497_v22  ;;  %v3345_v4 = vperm.slane %v7481_v49, %v7129_v44  ;;  %v3347_v59 = vperm.slane %v7479_v45, %v7135_v1  ;;  %vm8259_vm4 = vcmask 786112  }
 0x85d   :  { %v3296_v21 = vpop.permute.xlu0 %3295  ;;  %v3541_v50 = vadd.f32 %v3540_v18, %v3505_v58  ;;  %v3341_v58 = vperm.slane %v7475_v60, %v7109_v19  ;;  %v3764_v60 = vld [vmem:[%s7608_s3 + $0x70] sm:$0xff]   ;;  %v3349_v22 = vperm.slane %v7490_v41, %v7152_v10  ;;  %v3353_v41 = vperm.slane %v7501_v62, %v7158_v16 }
 0x85e   :  { %v3293_v23 = vpop.permute.xlu1 %3292  ;;  %v3507_v37 = vmul.f32 %v3718_v47, %v3296_v21  ;;  %v3366_v28 = vperm.slane %v3296_v21, %v7089_v35  ;;  %v3339_v35 = vperm.slane %v7477_v3, %v7113_v26  ;;  %v3529_v29 = vadd.f32 %v3528_v14, %v3498_v8 }
 0x85f   :  { %v3506_v48 = vmul.f32 %v3715_v25, %v3293_v23  ;;  %v3364_v6 = vperm.slane %v3293_v23, %v7092_v5  ;;  %v3722_v5 = vunpack.c.l.bf16 %v3762_v9  ;;  %v3308_v0 = vpop.permute.xlu2 %3307  ;;  %v3499_v21 = vmul.f32 %v3702_v27, %v7488_v33 }
 0x860   :  { %v3340_v47 = vsel %vm8256_vm1, %v3339_v35, %v7473_v30  ;;  %v3727_v23 = vunpack.c.h.bf16 %v3763_v31  ;;  %v3511_v55 = vmul.f32 %v3726_v39, %v3308_v0  ;;  %v3374_v57 = vperm.slane %v3308_v0, %v7125_v46 }
 0x861   :  { %v3542_v52 = vadd.f32 %v3541_v50, %v3506_v48  ;;  %v3365_v20 = vsel %vm2755_vm5, %v3364_v6, %v3363_v13  ;;  %v3342_v50 = vsel %vm2771_vm9, %v3341_v58, %v3340_v47  ;;  %v3530_v30 = vadd.f32 %v3529_v29, %v3499_v21  ;;  %vm8260_vm5 = vmmov %vm8259_vm4 }
 0x862   :  { %v3367_v18 = vsel %vm2759_vm6, %v3366_v28, %v3365_v20  ;;  %v3730_v48 = vunpack.c.l.bf16 %v3764_v60  ;;  %v3731_v53 = vunpack.c.h.bf16 %v3764_v60  ;;  %vm8261_vm6 = vcmask 917312  }
 0x863   :  { %v3543_v11 = vadd.f32 %v3542_v52, %v3507_v37  ;;  %v3369_v43 = vsel %vm8257_vm2, %v3368_v15, %v3367_v18 }
 0x865   :  { %v3305_v42 = vpop.permute.xlu0 %3304  ;;  %v3544_v25 = vadd.f32 %v3543_v11, %v3508_v17 }
 0x866   :  { %v3302_v36 = vpop.permute.xlu1 %3301  ;;  %v3510_v51 = vmul.f32 %v3723_v56, %v3305_v42  ;;  %v3372_v12 = vperm.slane %v3305_v42, %v7109_v19  ;;  %v3343_v19 = vperm.slane %v7483_v24, %v7125_v46  ;;  %v3765_v46 = vld [vmem:[%s7608_s3 + $0x78] sm:$0xff]   ;;  %v3351_v56 = vperm.slane %v7488_v33, %v7162_v32  ;;  %s4103_s3 = smov [#allocation6]  }
 0x867   :  { %v3370_v40 = vperm.slane %v3302_v36, %v7113_v26  ;;  %v3509_v54 = vmul.f32 %v3722_v5, %v3302_v36  ;;  %v3500_v26 = vmul.f32 %v3703_v38, %v7501_v62  ;;  %v3317_v24 = vpop.permute.xlu2 %3316  ;;  %v3734_v31 = vunpack.c.l.bf16 %v3765_v46  ;;  %s3580_s22 = sshll.u32 %s4103_s3, 4  ;;  %s3581_s22 = int_to_ptr.vmem [resolvable:$true] %s3580_s22 }
 0x868   :  { %v3344_v28 = vsel %vm2775_vm10, %v3343_v19, %v3342_v50  ;;  %v3514_v8 = vmul.f32 %v3731_v53, %v3317_v24  ;;  %v3735_v35 = vunpack.c.h.bf16 %v3765_v46  ;;  %v3380_v14 = vperm.slane %v3317_v24, %v7152_v10 }
 0x869   :  { %v3545_v3 = vadd.f32 %v3544_v25, %v3509_v54  ;;  %v3371_v7 = vsel %vm8258_vm3, %v3370_v40, %v3369_v43  ;;  %v3531_v61 = vadd.f32 %v3530_v30, %v3500_v26 }
 0x86a   :  { %v3373_v6 = vsel %vm2771_vm9, %v3372_v12, %v3371_v7  ;;  %vm8262_vm9 = vmmov %vm8261_vm6 }
 0x86b   :  { %v3546_v34 = vadd.f32 %v3545_v3, %v3510_v51  ;;  %v3375_v11 = vsel %vm2775_vm10, %v3374_v57, %v3373_v6  ;;  %v3532_v20 = vrot.slane %v3531_v61, 4  ;;  %vm8263_vm10 = vcmask 982912  }
 0x86d   :  { %v3314_v63 = vpop.permute.xlu0 %3313  ;;  %v3547_v2 = vadd.f32 %v3546_v34, %v3511_v55  ;;  %v3533_v18 = vadd.f32 %v3532_v20, %v3531_v61 }
 0x86e   :  { %v3311_v9 = vpop.permute.xlu1 %3310  ;;  %v3378_v49 = vperm.slane %v3314_v63, %v7135_v1  ;;  %v3513_v13 = vmul.f32 %v3730_v48, %v3314_v63 }
 0x86f   :  { %v3376_v37 = vperm.slane %v3311_v9, %v7129_v44  ;;  %v3512_v52 = vmul.f32 %v3727_v23, %v3311_v9  ;;  %v3346_v44 = vsel %vm8259_vm4, %v3345_v4, %v3344_v28 }
 0x870   :  { %v3348_v1 = vsel %vm2783_vm12, %v3347_v59, %v3346_v44 }
 0x871   :  { %v3548_v5 = vadd.f32 %v3547_v2, %v3512_v52  ;;  %v3377_v45 = vsel %vm8260_vm5, %v3376_v37, %v3375_v11  ;;  %v3350_v38 = vsel %vm8261_vm6, %v3349_v22, %v3348_v1 }
 0x872   :  { %v3379_v42 = vsel %vm2783_vm12, %v3378_v49, %v3377_v45  ;;  %v3352_v54 = vsel %vm8263_vm10, %v3351_v56, %v3350_v38  ;;  %vm8264_vm12 = vmmov %vm8263_vm10 }
 0x873   :  { %v3549_v17 = vadd.f32 %v3548_v5, %v3513_v13  ;;  %v3381_v10 = vsel %vm8262_vm9, %v3380_v14, %v3379_v42  ;;  %v3354_v39 = vsel %vm8265_vm14, %v3353_v41, %v3352_v54 }
 0x875   :  { %v3323_v27 = vpop.permute.xlu0 %3322  ;;  %v3550_v25 = vadd.f32 %v3549_v17, %v3514_v8 }
 0x876   :  { %v3384_v36 = vperm.slane %v3323_v27, %v7158_v16  ;;  %v3320_v0 = vpop.permute.xlu1 %3319  ;;  %v3516_v15 = vmul.f32 %v3735_v35, %v3323_v27 }
 0x877   :  { %v3382_v33 = vperm.slane %v3320_v0, %v7162_v32  ;;  %v3515_v40 = vmul.f32 %v3734_v31, %v3320_v0  ;;  %v3534_v32 = vrot.slane %v3533_v18, 2 }
 0x879   :  { %v3383_v62 = vsel %vm8264_vm12, %v3382_v33, %v3381_v10  ;;  %v3551_v16 = vadd.f32 %v3550_v25, %v3515_v40  ;;  %v3535_v47 = vadd.f32 %v3534_v32, %v3533_v18 }
 0x87a   :  { %v3385_v58 = vsel %vm8266_vm15, %v3384_v36, %v3383_v62 }
 0x87b   :  { %v3552_v29 = vadd.f32 %v3551_v16, %v3516_v15  ;;  %v3386_v51 = vsel %vm8267_vm0, %v3385_v58, %v3354_v39  ;;  %v3536_v43 = vrot.slane %v3535_v47, 1 }
 0x87c   :  { %3388 = vst [vmem:[#allocation6] sm:$0x3] %v3386_v51 }
 0x87d   :  { %v3553_v3 = vrot.slane %v3552_v29, 4  ;;  %3585 = dma.vmem_to_hbm [thread:$0]  %s3581_s22, 32, %s3583_s25, [#allocation7]   ;;  %v3537_v34 = vadd.f32 %v3536_v43, %v3535_v47 }
 0x87f   :  { %v3554_v21 = vadd.f32 %v3553_v3, %v3552_v29 }
 0x881   :  { %v3555_v12 = vrot.slane %v3554_v21, 2 }
 0x883   :  { %v3556_v26 = vadd.f32 %v3555_v12, %v3554_v21 }
 0x885   :  { %v3557_v7 = vrot.slane %v3556_v26, 1 }
 0x887   :  { %v3558_v23 = vadd.f32 %v3557_v7, %v3556_v26 }
 0x889   :  { %v3561_v60 = vsel %vm8268_vm8, %v3558_v23, %v3537_v34 }
 0x88a   :  { %3563 = vst [vmem:[#allocation5] sm:$0x3] %v3561_v60 }
 0x88b   :  { %3574 = dma.vmem_to_hbm [thread:$0]  %s3570_s26, 32, %s3572_s29, [#allocation4]  }
 0x88c   :  { %4086 = dma.done.wait [#allocation4], 32  }
 0x88d   :  { %4087 = vsyncadd [#allocation4], 4294967264 }
 0x88e   :  { %4088 = dma.done.wait [#allocation7], 32  }
 0x88f   :  { %4089 = vsyncadd [#allocation7], 4294967264 }
 0x890   :  { %3594 = vsyncpa [#allocation3], 1 }
 0x891   :  { %3595 = vsyncpa [#allocation4], 1 }
 0x892   :  { %3596 = vsyncpa [#allocation7], 1 }

</bundles_post_ra>
